<compile_context>
chip_gen: v5e
topology: v5e:2x2
jax: 0.10.0
libtpu: 0.0.40
codegen_flags: <defaults>
</compile_context>

<pallas_src>
import jax
import jax.numpy as jnp
from jax.experimental import pallas as pl
from jax.experimental.pallas import tpu as pltpu

D_IN = 512
D_H = 256
N_CTRL = 4              # control branches (share input `emb`)
N_BRANCH = 5            # 4 control + 1 speed (speed is branch index 4)
OUT_W = 16              # lane-padded head width; real cols: 0..11 ctrl, 12 speed


def _uncertainty_kernel(emb_ref, img_ref,
                        w1c_ref, b1c_ref, w1s_ref, b1s_ref,
                        w2_ref, b2_ref, w3_ref, b3_ref, out_ref):
    """Fused forward for all 5 MLP branches.

    emb_ref/img_ref : (B, 512) f32
    w1c_ref : (512, 1024) bf16   b1c_ref : (1, 1024) f32   (4 ctrl branches, merged)
    w1s_ref : (512, 256)  bf16   b1s_ref : (1, 256)  f32   (speed branch)
    w2_ref  : (5, 256, 256) bf16 b2_ref  : (5, 1, 256) f32 (per-branch layer 2)
    w3_ref  : (1280, 16) bf16    b3_ref  : (1, 16) f32     (all heads, merged)
    out_ref : (B, 16) f32
    """
    emb = emb_ref[...].astype(jnp.bfloat16)   # control-branch input
    img = img_ref[...].astype(jnp.bfloat16)   # speed-branch input

    # ---- Layer 1: one long matmul for the 4 control branches, one for speed.
    h1c = jnp.dot(emb, w1c_ref[...], preferred_element_type=jnp.float32)
    h1c = jnp.maximum(h1c + b1c_ref[...], 0.0).astype(jnp.bfloat16)   # (B, 1024)
    h1s = jnp.dot(img, w1s_ref[...], preferred_element_type=jnp.float32)
    h1s = jnp.maximum(h1s + b1s_ref[...], 0.0).astype(jnp.bfloat16)   # (B, 256)

    # ---- Layer 2: per-branch (inputs differ), tiny static unroll.
    h2_list = []
    for n in range(N_CTRL):
        h1n = h1c[:, n * D_H:(n + 1) * D_H]
        h2 = jnp.dot(h1n, w2_ref[n], preferred_element_type=jnp.float32) + b2_ref[n]
        h2_list.append(jnp.maximum(h2, 0.0).astype(jnp.bfloat16))     # (B, 256)
    h2s = jnp.dot(h1s, w2_ref[N_CTRL], preferred_element_type=jnp.float32) + b2_ref[N_CTRL]
    h2_list.append(jnp.maximum(h2s, 0.0).astype(jnp.bfloat16))        # (B, 256)

    # ---- Heads: single fused matmul over K = 5*256 = 1280.
    # Heads occupy disjoint output columns -> MXU accumulation == concat(dim=1).
    h2_all = jnp.concatenate(h2_list, axis=1)                          # (B, 1280)
    out = jnp.dot(h2_all, w3_ref[...], preferred_element_type=jnp.float32)
    out_ref[...] = out + b3_ref[...]                                   # (B, 16)


def uncertainty_net_forward(img_emb, emb, packed):
    B = emb.shape[0]

    flops = 2 * B * (D_IN * N_CTRL * D_H            # merged ctrl layer 1
                     + D_IN * D_H                    # speed layer 1
                     + N_BRANCH * D_H * D_H          # layer 2
                     + N_BRANCH * D_H * OUT_W)       # merged heads
    bytes_accessed = (
        2 * (packed["w1c"].size + packed["w1s"].size
             + packed["w2"].size + packed["w3"].size)                  # bf16 weights
        + 4 * (packed["b1c"].size + packed["b1s"].size
               + packed["b2"].size + packed["b3"].size)                # f32 biases
        + 4 * (img_emb.size + emb.size)                                # inputs
        + 4 * B * OUT_W)                                               # output

    vmem_spec = pl.BlockSpec(memory_space=pltpu.MemorySpace.VMEM)
    out = pl.pallas_call(
        _uncertainty_kernel,
        out_shape=jax.ShapeDtypeStruct((B, OUT_W), jnp.float32),
        in_specs=[vmem_spec] * 10,
        out_specs=vmem_spec,
        cost_estimate=pl.CostEstimate(flops=flops, transcendentals=0,
                                      bytes_accessed=bytes_accessed),
    )(emb, img_emb,
      packed["w1c"], packed["b1c"], packed["w1s"], packed["b1s"],
      packed["w2"], packed["b2"], packed["w3"], packed["b3"])

    log_var_control = out[:, :3 * N_CTRL]                    # (B, 12)
    log_var_speed = out[:, 3 * N_CTRL:3 * N_CTRL + 1]        # (B, 1)
    return log_var_control, log_var_speed


def init_uncertainty_net_params(key):
    """Per-branch f32 parameters matching UncertaintyNet(structure=2)."""
    def linear(k, fan_in, fan_out):
        kw, kb = jax.random.split(k)
        bound = 1.0 / jnp.sqrt(fan_in)
        w = jax.random.uniform(kw, (fan_in, fan_out), jnp.float32, -bound, bound)
        b = jax.random.uniform(kb, (fan_out,), jnp.float32, -bound, bound)
        return w, b

    keys = jax.random.split(key, 3 * N_BRANCH)
    branches = []
    for n in range(N_BRANCH):
        d_out = 1 if n == N_CTRL else 3           # speed head is 1-wide
        w1, b1 = linear(keys[3 * n + 0], D_IN, D_H)
        w2, b2 = linear(keys[3 * n + 1], D_H, D_H)
        w3, b3 = linear(keys[3 * n + 2], D_H, d_out)
        branches.append(dict(w1=w1, b1=b1, w2=w2, b2=b2, w3=w3, b3=b3))
    return branches


def pack_params(branches):
    """Repack the 5 branches for the fused kernel:
      * layer 1 of the 4 control branches concatenated along the output dim,
      * per-branch layer 2 stacked,
      * all 5 heads placed in disjoint columns of one lane-padded (1280, 16)
        matrix (ctrl n -> cols 3n..3n+2, speed -> col 12),
      * weights cast to bf16, biases kept f32."""
    w1c = jnp.concatenate([branches[n]["w1"] for n in range(N_CTRL)], axis=1)
    b1c = jnp.concatenate([branches[n]["b1"] for n in range(N_CTRL)])[None, :]
    w1s = branches[N_CTRL]["w1"]
    b1s = branches[N_CTRL]["b1"][None, :]

    w2 = jnp.stack([p["w2"] for p in branches])                        # (5,256,256)
    b2 = jnp.stack([p["b2"][None, :] for p in branches])               # (5,1,256)

    w3 = jnp.zeros((N_BRANCH * D_H, OUT_W), jnp.float32)               # (1280,16)
    b3 = jnp.zeros((1, OUT_W), jnp.float32)
    for n in range(N_CTRL):                                            # ctrl n -> cols 3n..3n+2
        w3 = w3.at[n * D_H:(n + 1) * D_H, 3 * n:3 * n + 3].set(branches[n]["w3"])
        b3 = b3.at[0, 3 * n:3 * n + 3].set(branches[n]["b3"])
    w3 = w3.at[N_CTRL * D_H:, 12:13].set(branches[N_CTRL]["w3"])       # speed -> col 12
    b3 = b3.at[0, 12].set(branches[N_CTRL]["b3"][0])

    return dict(
        w1c=w1c.astype(jnp.bfloat16), b1c=b1c,
        w1s=w1s.astype(jnp.bfloat16), b1s=b1s,
        w2=w2.astype(jnp.bfloat16), b2=b2,
        w3=w3.astype(jnp.bfloat16), b3=b3)


def _reference_forward(img_emb, emb, branches):
    """Pure-JAX f32 reference for correctness checking."""
    def mlp(x, p):
        h1 = jnp.maximum(x @ p["w1"] + p["b1"], 0.0)
        h2 = jnp.maximum(h1 @ p["w2"] + p["b2"], 0.0)
        return h2 @ p["w3"] + p["b3"]

    log_var_control = jnp.concatenate(
        [mlp(emb, branches[n]) for n in range(N_CTRL)], axis=1)         # (B, 12)
    log_var_speed = mlp(img_emb, branches[N_CTRL])                      # (B, 1)
    return log_var_control, log_var_speed


if __name__ == "__main__":
    key = jax.random.PRNGKey(0)
    k_img, k_emb, k_params = jax.random.split(key, 3)

    B = 8
    img_emb = jax.random.normal(k_img, (B, D_IN), jnp.float32)
    emb = jax.random.normal(k_emb, (B, D_IN), jnp.float32)

    branches = init_uncertainty_net_params(k_params)
    packed = pack_params(branches)

    fwd = jax.jit(uncertainty_net_forward)
    log_var_control, log_var_speed = fwd(img_emb, emb, packed)
    jax.block_until_ready((log_var_control, log_var_speed))

    assert log_var_control.shape == (B, 12)
    assert log_var_speed.shape == (B, 1)

    ref_ctrl, ref_spd = _reference_forward(img_emb, emb, branches)
    # Kernel uses bf16 weights/activations (f32 accumulation) vs. f32 reference
    # -> loose tolerance.
    assert jnp.allclose(log_var_control, ref_ctrl, atol=5e-2, rtol=5e-2), (
        float(jnp.max(jnp.abs(log_var_control - ref_ctrl))))
    assert jnp.allclose(log_var_speed, ref_spd, atol=5e-2, rtol=5e-2), (
        float(jnp.max(jnp.abs(log_var_speed - ref_spd))))

    print("KERNEL_OK")
</pallas_src>

<mosaic_0001>
module attributes {stable_mosaic.version = 11 : i64} {
  func.func @_uncertainty_kernel(%arg0: memref<8x512xf32, #tpu.memory_space<vmem>>, %arg1: memref<8x512xf32, #tpu.memory_space<vmem>>, %arg2: memref<512x1024xbf16, #tpu.memory_space<vmem>>, %arg3: memref<1x1024xf32, #tpu.memory_space<vmem>>, %arg4: memref<512x256xbf16, #tpu.memory_space<vmem>>, %arg5: memref<1x256xf32, #tpu.memory_space<vmem>>, %arg6: memref<5x256x256xbf16, #tpu.memory_space<vmem>>, %arg7: memref<5x1x256xf32, #tpu.memory_space<vmem>>, %arg8: memref<1280x16xbf16, #tpu.memory_space<vmem>>, %arg9: memref<1x16xf32, #tpu.memory_space<vmem>>, %arg10: memref<8x16xf32, #tpu.memory_space<vmem>>) attributes {dimension_semantics = [], scalar_prefetch = 0 : i64, scratch_operands = 0 : i64, tpu.core_type = #tpu.core_type<tc>} {
    %c0 = arith.constant 0 : index
    %c0_0 = arith.constant 0 : index
    %0 = vector.load %arg0[%c0, %c0_0] : memref<8x512xf32, #tpu.memory_space<vmem>>, vector<8x512xf32>
    %1 = arith.truncf %0 : vector<8x512xf32> to vector<8x512xbf16>
    %c0_1 = arith.constant 0 : index
    %c0_2 = arith.constant 0 : index
    %2 = vector.load %arg1[%c0_1, %c0_2] : memref<8x512xf32, #tpu.memory_space<vmem>>, vector<8x512xf32>
    %3 = arith.truncf %2 : vector<8x512xf32> to vector<8x512xbf16>
    %c0_3 = arith.constant 0 : index
    %c0_4 = arith.constant 0 : index
    %4 = vector.load %arg2[%c0_3, %c0_4] : memref<512x1024xbf16, #tpu.memory_space<vmem>>, vector<512x1024xbf16>
    %cst = arith.constant dense<0.000000e+00> : vector<8x1024xf32>
    %5 = tpu.matmul %1, %4, %cst {dimension_numbers = #tpu.dot_dimension_numbers<[1], [0], [0], [1], [0, 0, 1, 1], [], []>} : vector<8x512xbf16>, vector<512x1024xbf16>, vector<8x1024xf32> -> vector<8x1024xf32>
    %c0_5 = arith.constant 0 : index
    %c0_6 = arith.constant 0 : index
    %6 = vector.load %arg3[%c0_5, %c0_6] : memref<1x1024xf32, #tpu.memory_space<vmem>>, vector<1x1024xf32>
    %7 = vector.broadcast %6 : vector<1x1024xf32> to vector<8x1024xf32>
    %8 = arith.addf %5, %7 : vector<8x1024xf32>
    %cst_7 = arith.constant 0.000000e+00 : f32
    %9 = vector.broadcast %cst_7 : f32 to vector<8x1024xf32>
    %10 = arith.maximumf %8, %9 : vector<8x1024xf32>
    %11 = arith.truncf %10 : vector<8x1024xf32> to vector<8x1024xbf16>
    %c0_8 = arith.constant 0 : index
    %c0_9 = arith.constant 0 : index
    %12 = vector.load %arg4[%c0_8, %c0_9] : memref<512x256xbf16, #tpu.memory_space<vmem>>, vector<512x256xbf16>
    %cst_10 = arith.constant dense<0.000000e+00> : vector<8x256xf32>
    %13 = tpu.matmul %3, %12, %cst_10 {dimension_numbers = #tpu.dot_dimension_numbers<[1], [0], [0], [1], [0, 0, 1, 1], [], []>} : vector<8x512xbf16>, vector<512x256xbf16>, vector<8x256xf32> -> vector<8x256xf32>
    %c0_11 = arith.constant 0 : index
    %c0_12 = arith.constant 0 : index
    %14 = vector.load %arg5[%c0_11, %c0_12] : memref<1x256xf32, #tpu.memory_space<vmem>>, vector<1x256xf32>
    %15 = vector.broadcast %14 : vector<1x256xf32> to vector<8x256xf32>
    %16 = arith.addf %13, %15 : vector<8x256xf32>
    %cst_13 = arith.constant 0.000000e+00 : f32
    %17 = vector.broadcast %cst_13 : f32 to vector<8x256xf32>
    %18 = arith.maximumf %16, %17 : vector<8x256xf32>
    %19 = arith.truncf %18 : vector<8x256xf32> to vector<8x256xbf16>
    %20 = vector.extract_strided_slice %11 {offsets = [0, 0], sizes = [8, 256], strides = [1, 1]} : vector<8x1024xbf16> to vector<8x256xbf16>
    %c0_14 = arith.constant 0 : index
    %c0_15 = arith.constant 0 : index
    %c0_16 = arith.constant 0 : index
    %21 = vector.load %arg6[%c0_14, %c0_15, %c0_16] : memref<5x256x256xbf16, #tpu.memory_space<vmem>>, vector<1x256x256xbf16>
    %22 = vector.shape_cast %21 : vector<1x256x256xbf16> to vector<256x256xbf16>
    %cst_17 = arith.constant dense<0.000000e+00> : vector<8x256xf32>
    %23 = tpu.matmul %20, %22, %cst_17 {dimension_numbers = #tpu.dot_dimension_numbers<[1], [0], [0], [1], [0, 0, 1, 1], [], []>} : vector<8x256xbf16>, vector<256x256xbf16>, vector<8x256xf32> -> vector<8x256xf32>
    %c0_18 = arith.constant 0 : index
    %c0_19 = arith.constant 0 : index
    %c0_20 = arith.constant 0 : index
    %24 = vector.load %arg7[%c0_18, %c0_19, %c0_20] : memref<5x1x256xf32, #tpu.memory_space<vmem>>, vector<1x1x256xf32>
    %25 = vector.shape_cast %24 : vector<1x1x256xf32> to vector<1x256xf32>
    %26 = vector.broadcast %25 : vector<1x256xf32> to vector<8x256xf32>
    %27 = arith.addf %23, %26 : vector<8x256xf32>
    %cst_21 = arith.constant 0.000000e+00 : f32
    %28 = vector.broadcast %cst_21 : f32 to vector<8x256xf32>
    %29 = arith.maximumf %27, %28 : vector<8x256xf32>
    %30 = arith.truncf %29 : vector<8x256xf32> to vector<8x256xbf16>
    %31 = vector.extract_strided_slice %11 {offsets = [0, 256], sizes = [8, 256], strides = [1, 1]} : vector<8x1024xbf16> to vector<8x256xbf16>
    %c1 = arith.constant 1 : index
    %c0_22 = arith.constant 0 : index
    %c0_23 = arith.constant 0 : index
    %32 = vector.load %arg6[%c1, %c0_22, %c0_23] : memref<5x256x256xbf16, #tpu.memory_space<vmem>>, vector<1x256x256xbf16>
    %33 = vector.shape_cast %32 : vector<1x256x256xbf16> to vector<256x256xbf16>
    %cst_24 = arith.constant dense<0.000000e+00> : vector<8x256xf32>
    %34 = tpu.matmul %31, %33, %cst_24 {dimension_numbers = #tpu.dot_dimension_numbers<[1], [0], [0], [1], [0, 0, 1, 1], [], []>} : vector<8x256xbf16>, vector<256x256xbf16>, vector<8x256xf32> -> vector<8x256xf32>
    %c1_25 = arith.constant 1 : index
    %c0_26 = arith.constant 0 : index
    %c0_27 = arith.constant 0 : index
    %35 = vector.load %arg7[%c1_25, %c0_26, %c0_27] : memref<5x1x256xf32, #tpu.memory_space<vmem>>, vector<1x1x256xf32>
    %36 = vector.shape_cast %35 : vector<1x1x256xf32> to vector<1x256xf32>
    %37 = vector.broadcast %36 : vector<1x256xf32> to vector<8x256xf32>
    %38 = arith.addf %34, %37 : vector<8x256xf32>
    %cst_28 = arith.constant 0.000000e+00 : f32
    %39 = vector.broadcast %cst_28 : f32 to vector<8x256xf32>
    %40 = arith.maximumf %38, %39 : vector<8x256xf32>
    %41 = arith.truncf %40 : vector<8x256xf32> to vector<8x256xbf16>
    %42 = vector.extract_strided_slice %11 {offsets = [0, 512], sizes = [8, 256], strides = [1, 1]} : vector<8x1024xbf16> to vector<8x256xbf16>
    %c2 = arith.constant 2 : index
    %c0_29 = arith.constant 0 : index
    %c0_30 = arith.constant 0 : index
    %43 = vector.load %arg6[%c2, %c0_29, %c0_30] : memref<5x256x256xbf16, #tpu.memory_space<vmem>>, vector<1x256x256xbf16>
    %44 = vector.shape_cast %43 : vector<1x256x256xbf16> to vector<256x256xbf16>
    %cst_31 = arith.constant dense<0.000000e+00> : vector<8x256xf32>
    %45 = tpu.matmul %42, %44, %cst_31 {dimension_numbers = #tpu.dot_dimension_numbers<[1], [0], [0], [1], [0, 0, 1, 1], [], []>} : vector<8x256xbf16>, vector<256x256xbf16>, vector<8x256xf32> -> vector<8x256xf32>
    %c2_32 = arith.constant 2 : index
    %c0_33 = arith.constant 0 : index
    %c0_34 = arith.constant 0 : index
    %46 = vector.load %arg7[%c2_32, %c0_33, %c0_34] : memref<5x1x256xf32, #tpu.memory_space<vmem>>, vector<1x1x256xf32>
    %47 = vector.shape_cast %46 : vector<1x1x256xf32> to vector<1x256xf32>
    %48 = vector.broadcast %47 : vector<1x256xf32> to vector<8x256xf32>
    %49 = arith.addf %45, %48 : vector<8x256xf32>
    %cst_35 = arith.constant 0.000000e+00 : f32
    %50 = vector.broadcast %cst_35 : f32 to vector<8x256xf32>
    %51 = arith.maximumf %49, %50 : vector<8x256xf32>
    %52 = arith.truncf %51 : vector<8x256xf32> to vector<8x256xbf16>
    %53 = vector.extract_strided_slice %11 {offsets = [0, 768], sizes = [8, 256], strides = [1, 1]} : vector<8x1024xbf16> to vector<8x256xbf16>
    %c3 = arith.constant 3 : index
    %c0_36 = arith.constant 0 : index
    %c0_37 = arith.constant 0 : index
    %54 = vector.load %arg6[%c3, %c0_36, %c0_37] : memref<5x256x256xbf16, #tpu.memory_space<vmem>>, vector<1x256x256xbf16>
    %55 = vector.shape_cast %54 : vector<1x256x256xbf16> to vector<256x256xbf16>
    %cst_38 = arith.constant dense<0.000000e+00> : vector<8x256xf32>
    %56 = tpu.matmul %53, %55, %cst_38 {dimension_numbers = #tpu.dot_dimension_numbers<[1], [0], [0], [1], [0, 0, 1, 1], [], []>} : vector<8x256xbf16>, vector<256x256xbf16>, vector<8x256xf32> -> vector<8x256xf32>
    %c3_39 = arith.constant 3 : index
    %c0_40 = arith.constant 0 : index
    %c0_41 = arith.constant 0 : index
    %57 = vector.load %arg7[%c3_39, %c0_40, %c0_41] : memref<5x1x256xf32, #tpu.memory_space<vmem>>, vector<1x1x256xf32>
    %58 = vector.shape_cast %57 : vector<1x1x256xf32> to vector<1x256xf32>
    %59 = vector.broadcast %58 : vector<1x256xf32> to vector<8x256xf32>
    %60 = arith.addf %56, %59 : vector<8x256xf32>
    %cst_42 = arith.constant 0.000000e+00 : f32
    %61 = vector.broadcast %cst_42 : f32 to vector<8x256xf32>
    %62 = arith.maximumf %60, %61 : vector<8x256xf32>
    %63 = arith.truncf %62 : vector<8x256xf32> to vector<8x256xbf16>
    %c4 = arith.constant 4 : index
    %c0_43 = arith.constant 0 : index
    %c0_44 = arith.constant 0 : index
    %64 = vector.load %arg6[%c4, %c0_43, %c0_44] : memref<5x256x256xbf16, #tpu.memory_space<vmem>>, vector<1x256x256xbf16>
    %65 = vector.shape_cast %64 : vector<1x256x256xbf16> to vector<256x256xbf16>
    %cst_45 = arith.constant dense<0.000000e+00> : vector<8x256xf32>
    %66 = tpu.matmul %19, %65, %cst_45 {dimension_numbers = #tpu.dot_dimension_numbers<[1], [0], [0], [1], [0, 0, 1, 1], [], []>} : vector<8x256xbf16>, vector<256x256xbf16>, vector<8x256xf32> -> vector<8x256xf32>
    %c4_46 = arith.constant 4 : index
    %c0_47 = arith.constant 0 : index
    %c0_48 = arith.constant 0 : index
    %67 = vector.load %arg7[%c4_46, %c0_47, %c0_48] : memref<5x1x256xf32, #tpu.memory_space<vmem>>, vector<1x1x256xf32>
    %68 = vector.shape_cast %67 : vector<1x1x256xf32> to vector<1x256xf32>
    %69 = vector.broadcast %68 : vector<1x256xf32> to vector<8x256xf32>
    %70 = arith.addf %66, %69 : vector<8x256xf32>
    %cst_49 = arith.constant 0.000000e+00 : f32
    %71 = vector.broadcast %cst_49 : f32 to vector<8x256xf32>
    %72 = arith.maximumf %70, %71 : vector<8x256xf32>
    %73 = arith.truncf %72 : vector<8x256xf32> to vector<8x256xbf16>
    %74 = tpu.concatenate %30, %41, %52, %63, %73 in 1 : vector<8x256xbf16>, vector<8x256xbf16>, vector<8x256xbf16>, vector<8x256xbf16>, vector<8x256xbf16> -> vector<8x1280xbf16>
    %c0_50 = arith.constant 0 : index
    %c0_51 = arith.constant 0 : index
    %75 = vector.load %arg8[%c0_50, %c0_51] : memref<1280x16xbf16, #tpu.memory_space<vmem>>, vector<1280x16xbf16>
    %cst_52 = arith.constant dense<0.000000e+00> : vector<8x16xf32>
    %76 = tpu.matmul %74, %75, %cst_52 {dimension_numbers = #tpu.dot_dimension_numbers<[1], [0], [0], [1], [0, 0, 1, 1], [], []>} : vector<8x1280xbf16>, vector<1280x16xbf16>, vector<8x16xf32> -> vector<8x16xf32>
    %c0_53 = arith.constant 0 : index
    %c0_54 = arith.constant 0 : index
    %77 = vector.load %arg9[%c0_53, %c0_54] : memref<1x16xf32, #tpu.memory_space<vmem>>, vector<1x16xf32>
    %78 = vector.broadcast %77 : vector<1x16xf32> to vector<8x16xf32>
    %79 = arith.addf %76, %78 : vector<8x16xf32>
    %c0_55 = arith.constant 0 : index
    %c0_56 = arith.constant 0 : index
    %80 = vector.load %arg10[%c0_55, %c0_56] : memref<8x16xf32, #tpu.memory_space<vmem>>, vector<8x16xf32>
    tpu.vector_store %arg10[%c0_55, %c0_56], %79 {strides = array<i32>} : memref<8x16xf32, #tpu.memory_space<vmem>>, vector<8x16xf32>,
    return
  }
}

</mosaic_0001>

<bundles_post_ra>
// kernel: uncertainty_net_forward.1
= control target key start
LH: loop header
LB: loop body
LE: loop exit
PB: predicated region body
PF: predicated region fallthrough
CT: control target
= control target key end

     0   :  { %15 = vsyncpa [#allocation3], 0  ;;  %s8409_s0 = inlined_call_operand.vmem [shape: f32[8,512], index: 0, kind: input, shape index: {}]   ;;  %s8410_s1 = inlined_call_operand.vmem [shape: f32[8,512], index: 1, kind: input, shape index: {}]   ;;  %s8411_s2 = inlined_call_operand.hbm [shape: bf16[512,1024], index: 2, kind: input, shape index: {}]   ;;  %s8412_s3 = inlined_call_operand.vmem [shape: f32[1,1024], index: 3, kind: input, shape index: {}]   ;;  %s8413_s4 = inlined_call_operand.vmem [shape: bf16[512,256], index: 4, kind: input, shape index: {}]   ;;  %s8414_s5 = inlined_call_operand.vmem [shape: f32[1,256], index: 5, kind: input, shape index: {}]   ;;  %s8415_s6 = inlined_call_operand.hbm [shape: bf16[5,256,256], index: 6, kind: input, shape index: {}]   ;;  %s8416_s7 = inlined_call_operand.vmem [shape: f32[5,1,256], index: 7, kind: input, shape index: {}]   ;;  %s8417_s8 = inlined_call_operand.vmem [shape: bf16[1280,16], index: 8, kind: input, shape index: {}]   ;;  %s8418_s9 = inlined_call_operand.vmem [shape: f32[1,16], index: 9, kind: input, shape index: {}]   ;;  %s8419_s10 = inlined_call_operand.vmem [shape: f32[8,16], index: 10, kind: output, shape index: {}]  }
   0x1   :  { %s25_s15 = sshll.u32 %s8411_s2, 4  ;;  %s26_s15 = int_to_ptr.hbm [resolvable:$true] %s25_s15 }
   0x2   :  { %16 = vsyncpa [#allocation5], 0  ;;  %s7546_s16 = smov [#allocation2]   ;;  %s44_s20 = sshll.u32 %s8415_s6, 4  ;;  %s45_s20 = int_to_ptr.hbm [resolvable:$true] %s44_s20 }
   0x3   :  { %s27_s17 = sshll.u32 %s7546_s16, 4  ;;  %s7547_s21 = smov 512   ;;  %s28_s17 = int_to_ptr.vmem [resolvable:$true] %s27_s17 }
   0x4   :  { %s7548_s22 = smov 32   ;;  %s7549_s23 = smov [#allocation4]  }
   0x5   :  { %33 = dma.hbm_to_vmem [thread:$0]  %s26_s15, 32768, %s28_s17, [#allocation3], %s7547_s21, %s7547_s21, %s7548_s22  }
   0x6   :  { %s46_s24 = sshll.u32 %s7549_s23, 4  ;;  %s7550_s25 = smov 128   ;;  %s47_s24 = int_to_ptr.vmem [resolvable:$true] %s46_s24 }
   0x7   :  { %s7551_s26 = smov 8  }
   0x8   :  { %52 = dma.hbm_to_vmem [thread:$0]  %s45_s20, 20480, %s47_s24, [#allocation5], %s7550_s25, %s7550_s25, %s7551_s26  }
   0x9   :  { %7542 = dma.done.wait [#allocation3], 32768  }
   0xa   :  { %7543 = vsyncadd [#allocation3], 4294934528 }
   0xb   :  { %7544 = dma.done.wait [#allocation5], 20480  }
   0xc   :  { %7545 = vsyncadd [#allocation5], 4294946816  ;;  %v4907_v0 = vld [vmem:[#allocation2 + $0x1c0] sm:$0xf]  ;;  %vm4673_vm0 = vcmask 130048  }
   0xd   :  { %v6985_v1 = vld [vmem:[#allocation2 + $0x1dc] sm:$0xf0] }
   0xe   :  { %v5163_v2 = vld [vmem:[#allocation2 + $0x3c0] sm:$0xf]  ;;  %v4908_v3 = vor.u32 %v6985_v1, %v4907_v0 }
   0xf   :  { %v7049_v4 = vld [vmem:[#allocation2 + $0x3dc] sm:$0xf0] }
  0x10   :  { %v5419_v5 = vld [vmem:[#allocation2 + $0x5c0] sm:$0xf]  ;;  %v5164_v7 = vor.u32 %v7049_v4, %v5163_v2  ;;  %1637 = vmatpush.bf16.msra.mxu0 %v4908_v3 }
  0x11   :  { %v7113_v6 = vld [vmem:[#allocation2 + $0x5dc] sm:$0xf0] }
  0x12   :  { %v5420_v8 = vor.u32 %v7113_v6, %v5419_v5  ;;  %v5675_v9 = vld [vmem:[#allocation2 + $0x7c0] sm:$0xf]  ;;  %1650 = vmatpush.bf16.msra.mxu1 %v5164_v7 }
  0x13   :  { %v7177_v10 = vld [vmem:[#allocation2 + $0x7dc] sm:$0xf0] }
  0x14   :  { %v4875_v11 = vld [vmem:[#allocation2 + $0x180] sm:$0xf]  ;;  %v5676_v12 = vor.u32 %v7177_v10, %v5675_v9  ;;  %1663 = vmatpush.bf16.msra.mxu2 %v5420_v8 }
  0x15   :  { %v6977_v13 = vld [vmem:[#allocation2 + $0x19c] sm:$0xf0] }
  0x16   :  { %v5131_v14 = vld [vmem:[#allocation2 + $0x380] sm:$0xf]  ;;  %v4876_v16 = vor.u32 %v6977_v13, %v4875_v11  ;;  %1676 = vmatpush.bf16.msra.mxu3 %v5676_v12 }
  0x17   :  { %v7041_v15 = vld [vmem:[#allocation2 + $0x39c] sm:$0xf0] }
  0x18   :  { %v5132_v17 = vor.u32 %v7041_v15, %v5131_v14  ;;  %v5387_v18 = vld [vmem:[#allocation2 + $0x580] sm:$0xf]  ;;  %1638 = vmatpush.bf16.msra.mxu0 %v4876_v16 }
  0x19   :  { %v7105_v19 = vld [vmem:[#allocation2 + $0x59c] sm:$0xf0] }
  0x1a   :  { %v5643_v20 = vld [vmem:[#allocation2 + $0x780] sm:$0xf]  ;;  %v5388_v21 = vor.u32 %v7105_v19, %v5387_v18  ;;  %1651 = vmatpush.bf16.msra.mxu1 %v5132_v17 }
  0x1b   :  { %v7169_v22 = vld [vmem:[#allocation2 + $0x79c] sm:$0xf0] }
  0x1c   :  { %v4843_v23 = vld [vmem:[#allocation2 + $0x140] sm:$0xf]  ;;  %v5644_v25 = vor.u32 %v7169_v22, %v5643_v20  ;;  %1664 = vmatpush.bf16.msra.mxu2 %v5388_v21 }
  0x1d   :  { %v6969_v24 = vld [vmem:[#allocation2 + $0x15c] sm:$0xf0] }
  0x1e   :  { %v5099_v26 = vld [vmem:[#allocation2 + $0x340] sm:$0xf]  ;;  %v4844_v29 = vor.u32 %v6969_v24, %v4843_v23  ;;  %1677 = vmatpush.bf16.msra.mxu3 %v5644_v25 }
  0x1f   :  { %v7033_v27 = vld [vmem:[#allocation2 + $0x35c] sm:$0xf0] }
  0x20   :  { %v5355_v28 = vld [vmem:[#allocation2 + $0x540] sm:$0xf]  ;;  %v5100_v33 = vor.u32 %v7033_v27, %v5099_v26  ;;  %1639 = vmatpush.bf16.msra.mxu0 %v4844_v29  ;;  %v4909_v29 = vld [vmem:[#allocation2 + $0x1e0] sm:$0xf0] }
  0x21   :  { %v7097_v30 = vld [vmem:[#allocation2 + $0x55c] sm:$0xf0] }
  0x22   :  { %v5611_v31 = vld [vmem:[#allocation2 + $0x740] sm:$0xf]  ;;  %v5356_v34 = vor.u32 %v7097_v30, %v5355_v28  ;;  %1652 = vmatpush.bf16.msra.mxu1 %v5100_v33  ;;  %v6981_v28 = vld [vmem:[#allocation2 + $0x1c4] sm:$0xf] }
  0x23   :  { %v7161_v32 = vld [vmem:[#allocation2 + $0x75c] sm:$0xf0]  ;;  %v7045_v30 = vld [vmem:[#allocation2 + $0x3c4] sm:$0xf] }
  0x24   :  { %v4811_v35 = vld [vmem:[#allocation2 + $0x100] sm:$0xf]  ;;  %v5612_v38 = vor.u32 %v7161_v32, %v5611_v31  ;;  %1665 = vmatpush.bf16.msra.mxu2 %v5356_v34  ;;  %v5165_v32 = vld [vmem:[#allocation2 + $0x3e0] sm:$0xf0] }
  0x25   :  { %v6961_v36 = vld [vmem:[#allocation2 + $0x11c] sm:$0xf0]  ;;  %v7109_v33 = vld [vmem:[#allocation2 + $0x5c4] sm:$0xf] }
  0x26   :  { %v5067_v37 = vld [vmem:[#allocation2 + $0x300] sm:$0xf]  ;;  %v4812_v44 = vor.u32 %v6961_v36, %v4811_v35  ;;  %1678 = vmatpush.bf16.msra.mxu3 %v5612_v38  ;;  %v5421_v34 = vld [vmem:[#allocation2 + $0x5e0] sm:$0xf0] }
  0x27   :  { %v7025_v39 = vld [vmem:[#allocation2 + $0x31c] sm:$0xf0]  ;;  %v5677_v38 = vld [vmem:[#allocation2 + $0x7e0] sm:$0xf0] }
  0x28   :  { %v5323_v40 = vld [vmem:[#allocation2 + $0x500] sm:$0xf]  ;;  %v5068_v45 = vor.u32 %v7025_v39, %v5067_v37  ;;  %1640 = vmatpush.bf16.msra.mxu0 %v4812_v44  ;;  %v7173_v37 = vld [vmem:[#allocation2 + $0x7c4] sm:$0xf] }
  0x29   :  { %v7089_v41 = vld [vmem:[#allocation2 + $0x51c] sm:$0xf0]  ;;  %v4877_v44 = vld [vmem:[#allocation2 + $0x1a0] sm:$0xf0] }
  0x2a   :  { %v5579_v42 = vld [vmem:[#allocation2 + $0x700] sm:$0xf]  ;;  %v5324_v46 = vor.u32 %v7089_v41, %v5323_v40  ;;  %1653 = vmatpush.bf16.msra.mxu1 %v5068_v45  ;;  %v4912_v40 = vor.u32 %v6981_v28, %v4909_v29  ;;  %v5168_v41 = vor.u32 %v7045_v30, %v5165_v32  ;;  %v7037_v45 = vld [vmem:[#allocation2 + $0x384] sm:$0xf] }
  0x2b   :  { %v7153_v43 = vld [vmem:[#allocation2 + $0x71c] sm:$0xf0]  ;;  %v7077_v28 = vld [vmem:[#allocation2 + $0x4c4] sm:$0xf] }
  0x2c   :  { %v4779_v47 = vld [vmem:[#allocation2 + $0xc0] sm:$0xf]  ;;  %v5580_v50 = vor.u32 %v7153_v43, %v5579_v42  ;;  %1666 = vmatpush.bf16.msra.mxu2 %v5324_v46  ;;  %v5424_v42 = vor.u32 %v7109_v33, %v5421_v34  ;;  %v6973_v43 = vld [vmem:[#allocation2 + $0x184] sm:$0xf]  ;;  %v5680_v46 = vor.u32 %v7173_v37, %v5677_v38 }
  0x2d   :  { %v6953_v48 = vld [vmem:[#allocation2 + $0xdc] sm:$0xf0]  ;;  %v5293_v29 = vld [vmem:[#allocation2 + $0x4e0] sm:$0xf0] }
  0x2e   :  { %v5035_v49 = vld [vmem:[#allocation2 + $0x2c0] sm:$0xf]  ;;  %v4780_v56 = vor.u32 %v6953_v48, %v4779_v47  ;;  %1679 = vmatpush.bf16.msra.mxu3 %v5580_v50  ;;  %v5133_v47 = vld [vmem:[#allocation2 + $0x3a0] sm:$0xf0]  ;;  %v5296_v34 = vor.u32 %v7077_v28, %v5293_v29  ;;  %v5395_v28 = vld [vmem:[#allocation2 + $0x588] sm:$0xf] }
  0x2f   :  { %v7017_v51 = vld [vmem:[#allocation2 + $0x2dc] sm:$0xf0]  ;;  %v7101_v48 = vld [vmem:[#allocation2 + $0x584] sm:$0xf]  ;;  %v7106_v29 = vld [vmem:[#allocation2 + $0x5a4] sm:$0xf0] }
  0x30   :  { %v5291_v52 = vld [vmem:[#allocation2 + $0x4c0] sm:$0xf]  ;;  %v5036_v57 = vor.u32 %v7017_v51, %v5035_v49  ;;  %1641 = vmatpush.bf16.msra.mxu0 %v4780_v56  ;;  %v5389_v49 = vld [vmem:[#allocation2 + $0x5a0] sm:$0xf0] }
  0x31   :  { %v7081_v53 = vld [vmem:[#allocation2 + $0x4dc] sm:$0xf0]  ;;  %v7165_v50 = vld [vmem:[#allocation2 + $0x784] sm:$0xf] }
  0x32   :  { %v5547_v54 = vld [vmem:[#allocation2 + $0x6c0] sm:$0xf]  ;;  %v5292_v58 = vor.u32 %v7081_v53, %v5291_v52  ;;  %1654 = vmatpush.bf16.msra.mxu1 %v5036_v57  ;;  %v5645_v51 = vld [vmem:[#allocation2 + $0x7a0] sm:$0xf0]  ;;  %v69_v52 = vld [vmem:[%s8409_s0 + $0x10] sm:$0xff]  ;;  %v4880_v53 = vor.u32 %v6973_v43, %v4877_v44 }
  0x33   :  { %v7145_v55 = vld [vmem:[#allocation2 + $0x6dc] sm:$0xf0]  ;;  %v7029_v56 = vld [vmem:[#allocation2 + $0x344] sm:$0xf]  ;;  %v7616_v57 = vpack.c.bf16 %v69_v52, %v69_v52 }
  0x34   :  { %v4747_v59 = vld [vmem:[#allocation2 + $0x80] sm:$0xf]  ;;  %v5548_v62 = vor.u32 %v7145_v55, %v5547_v54  ;;  %1667 = vmatpush.bf16.msra.mxu2 %v5292_v58  ;;  %v6965_v54 = vld [vmem:[#allocation2 + $0x144] sm:$0xf]  ;;  %v5136_v58 = vor.u32 %v7037_v45, %v5133_v47 }
  0x35   :  { %v6945_v60 = vld [vmem:[#allocation2 + $0x9c] sm:$0xf0]  ;;  %v4845_v55 = vld [vmem:[#allocation2 + $0x160] sm:$0xf0] }
  0x36   :  { %v5003_v61 = vld [vmem:[#allocation2 + $0x280] sm:$0xf]  ;;  %v4748_v4 = vor.u32 %v6945_v60, %v4747_v59  ;;  %1680 = vmatpush.bf16.msra.mxu3 %v5548_v62  ;;  %v5392_v59 = vor.u32 %v7101_v48, %v5389_v49  ;;  %v5101_v60 = vld [vmem:[#allocation2 + $0x360] sm:$0xf0] }
  0x37   :  { %v7009_v63 = vld [vmem:[#allocation2 + $0x29c] sm:$0xf0]  ;;  %v5357_v62 = vld [vmem:[#allocation2 + $0x560] sm:$0xf0] }
  0x38   :  { %v5259_v0 = vld [vmem:[#allocation2 + $0x480] sm:$0xf]  ;;  %v5004_v5 = vor.u32 %v7009_v63, %v5003_v61  ;;  %1642 = vmatpush.bf16.msra.mxu0 %v4748_v4  ;;  %v7093_v61 = vld [vmem:[#allocation2 + $0x544] sm:$0xf]  ;;  %v5648_v63 = vor.u32 %v7165_v50, %v5645_v51 }
  0x39   :  { %v7073_v1 = vld [vmem:[#allocation2 + $0x49c] sm:$0xf0]  ;;  %v5613_v4 = vld [vmem:[#allocation2 + $0x760] sm:$0xf0] }
  0x3a   :  { %v5515_v2 = vld [vmem:[#allocation2 + $0x680] sm:$0xf]  ;;  %v5260_v6 = vor.u32 %v7073_v1, %v5259_v0  ;;  %1655 = vmatpush.bf16.msra.mxu1 %v5004_v5  ;;  %v70_v1 = vld [vmem:[%s8409_s0 + $0x18] sm:$0xff]  ;;  %v7141_v30 = vld [vmem:[#allocation2 + $0x6c4] sm:$0xf] }
  0x3b   :  { %v7137_v3 = vld [vmem:[#allocation2 + $0x69c] sm:$0xf0]  ;;  %v7005_v37 = vld [vmem:[#allocation2 + $0x284] sm:$0xf] }
  0x3c   :  { %v4715_v7 = vld [vmem:[#allocation2 + $0x40] sm:$0xf]  ;;  %v5516_v10 = vor.u32 %v7137_v3, %v5515_v2  ;;  %1668 = vmatpush.bf16.msra.mxu2 %v5260_v6  ;;  %v68_v2 = vld [vmem:[%s8409_s0 + $0x8] sm:$0xff]  ;;  %v7157_v3 = vld [vmem:[#allocation2 + $0x744] sm:$0xf]  ;;  %v7630_v6 = vpack.c.bf16 %v70_v1, %v70_v1 }
  0x3d   :  { %v6937_v8 = vld [vmem:[#allocation2 + $0x5c] sm:$0xf0]  ;;  %v5517_v43 = vld [vmem:[#allocation2 + $0x6a0] sm:$0xf0] }
  0x3e   :  { %v4971_v9 = vld [vmem:[#allocation2 + $0x240] sm:$0xf]  ;;  %v4716_v16 = vor.u32 %v6937_v8, %v4715_v7  ;;  %1681 = vmatpush.bf16.msra.mxu3 %v5516_v10  ;;  %v7632_v7 = vpack.c.bf16 %v68_v2, %v68_v2  ;;  %v4848_v8 = vor.u32 %v6965_v54, %v4845_v55  ;;  %v5360_v10 = vor.u32 %v7093_v61, %v5357_v62  ;;  %v6933_v47 = vld [vmem:[#allocation2 + $0x44] sm:$0xf] }
  0x3f   :  { %v7001_v11 = vld [vmem:[#allocation2 + $0x25c] sm:$0xf0]  ;;  %v4717_v48 = vld [vmem:[#allocation2 + $0x60] sm:$0xf0] }
  0x40   :  { %v5227_v12 = vld [vmem:[#allocation2 + $0x440] sm:$0xf]  ;;  %v4972_v19 = vor.u32 %v7001_v11, %v4971_v9  ;;  %1643 = vmatpush.bf16.msra.mxu0 %v4716_v16  ;;  %v5104_v9 = vor.u32 %v7029_v56, %v5101_v60  ;;  %v6957_v11 = vld [vmem:[#allocation2 + $0x104] sm:$0xf]  ;;  %v4720_v56 = vor.u32 %v6933_v47, %v4717_v48  ;;  %v4819_v47 = vld [vmem:[#allocation2 + $0x108] sm:$0xf] }
  0x41   :  { %v7065_v13 = vld [vmem:[#allocation2 + $0x45c] sm:$0xf0]  ;;  %v7085_v16 = vld [vmem:[#allocation2 + $0x504] sm:$0xf]  ;;  %v6962_v48 = vld [vmem:[#allocation2 + $0x124] sm:$0xf0] }
  0x42   :  { %v5483_v14 = vld [vmem:[#allocation2 + $0x640] sm:$0xf]  ;;  %v5228_v20 = vor.u32 %v7065_v13, %v5227_v12  ;;  %1656 = vmatpush.bf16.msra.mxu1 %v4972_v19  ;;  %v4813_v12 = vld [vmem:[#allocation2 + $0x120] sm:$0xf0] }
  0x43   :  { %v7129_v15 = vld [vmem:[#allocation2 + $0x65c] sm:$0xf0]  ;;  %v7021_v13 = vld [vmem:[#allocation2 + $0x304] sm:$0xf] }
  0x44   :  { %v4683_v17 = vld [vmem:[#allocation2] sm:$0xf]  ;;  %v5484_v24 = vor.u32 %v7129_v15, %v5483_v14  ;;  %1669 = vmatpush.bf16.msra.mxu2 %v5228_v20  ;;  %v5616_v14 = vor.u32 %v7157_v3, %v5613_v4  ;;  %v5069_v15 = vld [vmem:[#allocation2 + $0x320] sm:$0xf0]  ;;  %v4816_v20 = vor.u32 %v6957_v11, %v4813_v12  ;;  %v7050_v12 = vld [vmem:[#allocation2 + $0x3e4] sm:$0xf0] }
  0x45   :  { %v6929_v18 = vld [vmem:[#allocation2 + $0x1c] sm:$0xf0]  ;;  %v5581_v19 = vld [vmem:[#allocation2 + $0x720] sm:$0xf0] }
  0x46   :  { %v4939_v21 = vld [vmem:[#allocation2 + $0x200] sm:$0xf]  ;;  %v4684_v31 = vor.u32 %v6929_v18, %v4683_v17  ;;  %1682 = vmatpush.bf16.msra.mxu3 %v5484_v24  ;;  %v5325_v17 = vld [vmem:[#allocation2 + $0x520] sm:$0xf0] }
  0x47   :  { %v6993_v22 = vld [vmem:[#allocation2 + $0x21c] sm:$0xf0]  ;;  %v7149_v18 = vld [vmem:[#allocation2 + $0x704] sm:$0xf] }
  0x48   :  { %v5195_v23 = vld [vmem:[#allocation2 + $0x400] sm:$0xf]  ;;  %v4940_v35 = vor.u32 %v6993_v22, %v4939_v21  ;;  %1644 = vmatpush.bf16.msra.mxu0 %v4684_v31  ;;  %v5072_v21 = vor.u32 %v7021_v13, %v5069_v15  ;;  %v5328_v22 = vor.u32 %v7085_v16, %v5325_v17  ;;  %v4781_v24 = vld [vmem:[#allocation2 + $0xe0] sm:$0xf0]  ;;  %v5427_v13 = vld [vmem:[#allocation2 + $0x5c8] sm:$0xf] }
  0x49   :  { %v7057_v25 = vld [vmem:[#allocation2 + $0x41c] sm:$0xf0]  ;;  %v5549_v31 = vld [vmem:[#allocation2 + $0x6e0] sm:$0xf0]  ;;  %v5683_v17 = vld [vmem:[#allocation2 + $0x7c8] sm:$0xf] }
  0x4a   :  { %v5451_v26 = vld [vmem:[#allocation2 + $0x600] sm:$0xf]  ;;  %v5196_v36 = vor.u32 %v7057_v25, %v5195_v23  ;;  %1657 = vmatpush.bf16.msra.mxu1 %v4940_v35  ;;  %v6949_v23 = vld [vmem:[#allocation2 + $0xc4] sm:$0xf]  ;;  %v5552_v38 = vor.u32 %v7141_v30, %v5549_v31  ;;  %v5651_v30 = vld [vmem:[#allocation2 + $0x788] sm:$0xf] }
  0x4b   :  { %v7121_v27 = vld [vmem:[#allocation2 + $0x61c] sm:$0xf0]  ;;  %v7013_v25 = vld [vmem:[#allocation2 + $0x2c4] sm:$0xf]  ;;  %v4784_v32 = vor.u32 %v6949_v23, %v4781_v24  ;;  %v4883_v23 = vld [vmem:[#allocation2 + $0x188] sm:$0xf] }
  0x4c   :  { %v5452_v39 = vor.u32 %v7121_v27, %v5451_v26  ;;  %1670 = vmatpush.bf16.msra.mxu2 %v5196_v36  ;;  %1689 = vmatpush.bf16.msrb.mxu0 %v4912_v40  ;;  %v67_v0 = vld [vmem:[%s8409_s0] sm:$0xff]  ;;  %v5584_v26 = vor.u32 %v7149_v18, %v5581_v19  ;;  %v7178_v18 = vld [vmem:[#allocation2 + $0x7e4] sm:$0xf0] }
  0x4d   :  { %v7628_v5 = vpack.c.bf16 %v67_v0, %v67_v0  ;;  %1658 = vmatmul.bf16.vlgmr.msra.gmra.mxu1 %v7632_v7  ;;  %v5037_v27 = vld [vmem:[#allocation2 + $0x2e0] sm:$0xf0]  ;;  %v6978_v24 = vld [vmem:[#allocation2 + $0x1a4] sm:$0xf0] }
  0x4e   :  { %1683 = vmatpush.bf16.msra.mxu3 %v5452_v39  ;;  %1702 = vmatpush.bf16.msrb.mxu1 %v5168_v41  ;;  %v5040_v33 = vor.u32 %v7013_v25, %v5037_v27  ;;  %v6941_v35 = vld [vmem:[#allocation2 + $0x84] sm:$0xf]  ;;  %v5139_v25 = vld [vmem:[#allocation2 + $0x388] sm:$0xf] }
  0x4f   :  { %1671 = vmatmul.bf16.vlgmr.msra.gmra.mxu2 %v7616_v57  ;;  %1645 = vmatmul.bf16.vlgmr.msra.gmra.mxu0 %v7628_v5  ;;  %v4749_v36 = vld [vmem:[#allocation2 + $0xa0] sm:$0xf0]  ;;  %v7042_v27 = vld [vmem:[#allocation2 + $0x3a4] sm:$0xf0] }
  0x50   :  { %1715 = vmatpush.bf16.msrb.mxu2 %v5424_v42  ;;  %1690 = vmatpush.bf16.msrb.mxu0 %v4880_v53  ;;  %v5005_v39 = vld [vmem:[#allocation2 + $0x2a0] sm:$0xf0]  ;;  %v4752_v44 = vor.u32 %v6941_v35, %v4749_v36  ;;  %v7170_v31 = vld [vmem:[#allocation2 + $0x7a4] sm:$0xf0] }
  0x51   :  { %1684 = vmatmul.bf16.vlgmr.msra.gmra.mxu3 %v7630_v6  ;;  %v7069_v40 = vld [vmem:[#allocation2 + $0x484] sm:$0xf]  ;;  %v5008_v45 = vor.u32 %v7005_v37, %v5005_v39  ;;  %v4851_v35 = vld [vmem:[#allocation2 + $0x148] sm:$0xf] }
  0x52   :  { %1728 = vmatpush.bf16.msrb.mxu3 %v5680_v46  ;;  %1703 = vmatpush.bf16.msrb.mxu1 %v5136_v58  ;;  %v5261_v41 = vld [vmem:[#allocation2 + $0x4a0] sm:$0xf0]  ;;  %v6970_v36 = vld [vmem:[#allocation2 + $0x164] sm:$0xf0] }
  0x53   :  { %v7133_v42 = vld [vmem:[#allocation2 + $0x684] sm:$0xf]  ;;  %v5264_v46 = vor.u32 %v7069_v40, %v5261_v41  ;;  %v5107_v37 = vld [vmem:[#allocation2 + $0x348] sm:$0xf] }
  0x54   :  { %1716 = vmatpush.bf16.msrb.mxu2 %v5392_v59  ;;  %1691 = vmatpush.bf16.msrb.mxu0 %v4848_v8  ;;  %v6997_v49 = vld [vmem:[#allocation2 + $0x244] sm:$0xf]  ;;  %v5520_v50 = vor.u32 %v7133_v42, %v5517_v43  ;;  %v4915_v8 = vld [vmem:[#allocation2 + $0x1c8] sm:$0xf] }
  0x55   :  { %v4973_v51 = vld [vmem:[#allocation2 + $0x260] sm:$0xf0]  ;;  %v7034_v39 = vld [vmem:[#allocation2 + $0x364] sm:$0xf0] }
  0x56   :  { %1729 = vmatpush.bf16.msrb.mxu3 %v5648_v63  ;;  %1704 = vmatpush.bf16.msrb.mxu1 %v5104_v9  ;;  %v7061_v52 = vld [vmem:[#allocation2 + $0x444] sm:$0xf]  ;;  %v4976_v60 = vor.u32 %v6997_v49, %v4973_v51  ;;  %v6986_v9 = vld [vmem:[#allocation2 + $0x1e4] sm:$0xf0] }
  0x57   :  { %v5229_v53 = vld [vmem:[#allocation2 + $0x460] sm:$0xf0]  ;;  %v5363_v40 = vld [vmem:[#allocation2 + $0x548] sm:$0xf] }
  0x58   :  { %1717 = vmatpush.bf16.msrb.mxu2 %v5360_v10  ;;  %1692 = vmatpush.bf16.msrb.mxu0 %v4816_v20  ;;  %v7125_v54 = vld [vmem:[#allocation2 + $0x644] sm:$0xf]  ;;  %v5232_v61 = vor.u32 %v7061_v52, %v5229_v53  ;;  %v5171_v10 = vld [vmem:[#allocation2 + $0x3c8] sm:$0xf]  ;;  %v4916_v20 = vor.u32 %v6986_v9, %v4915_v8 }
  0x59   :  { %v5485_v55 = vld [vmem:[#allocation2 + $0x660] sm:$0xf0]  ;;  %v7098_v41 = vld [vmem:[#allocation2 + $0x564] sm:$0xf0] }
  0x5a   :  { %1730 = vmatpush.bf16.msrb.mxu3 %v5616_v14  ;;  %1705 = vmatpush.bf16.msrb.mxu1 %v5072_v21  ;;  %v6925_v58 = vld [vmem:[#allocation2 + $0x4] sm:$0xf]  ;;  %v5488_v1 = vor.u32 %v7125_v54, %v5485_v55  ;;  %v7114_v14 = vld [vmem:[#allocation2 + $0x5e4] sm:$0xf0]  ;;  %v5172_v21 = vor.u32 %v7050_v12, %v5171_v10 }
  0x5b   :  { %v4685_v59 = vld [vmem:[#allocation2 + $0x20] sm:$0xf0]  ;;  %v5619_v42 = vld [vmem:[#allocation2 + $0x748] sm:$0xf] }
  0x5c   :  { %1718 = vmatpush.bf16.msrb.mxu2 %v5328_v22  ;;  %1693 = vmatpush.bf16.msrb.mxu0 %v4784_v32  ;;  %v6989_v62 = vld [vmem:[#allocation2 + $0x204] sm:$0xf]  ;;  %v4688_v11 = vor.u32 %v6925_v58, %v4685_v59  ;;  %v5428_v22 = vor.u32 %v7114_v14, %v5427_v13  ;;  %v4884_v32 = vor.u32 %v6978_v24, %v4883_v23  ;;  %v7162_v43 = vld [vmem:[#allocation2 + $0x764] sm:$0xf0] }
  0x5d   :  { %v4941_v63 = vld [vmem:[#allocation2 + $0x220] sm:$0xf0]  ;;  %v5075_v49 = vld [vmem:[#allocation2 + $0x308] sm:$0xf] }
  0x5e   :  { %1731 = vmatpush.bf16.msrb.mxu3 %v5584_v26  ;;  %1706 = vmatpush.bf16.msrb.mxu1 %v5040_v33  ;;  %v7053_v0 = vld [vmem:[#allocation2 + $0x404] sm:$0xf]  ;;  %v4944_v15 = vor.u32 %v6989_v62, %v4941_v63  ;;  %v5684_v26 = vor.u32 %v7178_v18, %v5683_v17  ;;  %v5140_v33 = vor.u32 %v7042_v27, %v5139_v25  ;;  %v7026_v51 = vld [vmem:[#allocation2 + $0x324] sm:$0xf0] }
  0x5f   :  { %v5197_v2 = vld [vmem:[#allocation2 + $0x420] sm:$0xf0]  ;;  %v5331_v52 = vld [vmem:[#allocation2 + $0x508] sm:$0xf]  ;;  %v5076_v58 = vor.u32 %v7026_v51, %v5075_v49  ;;  %v7110_v49 = vld [vmem:[#allocation2 + $0x5cc] sm:$0xf] }
  0x60   :  { %1719 = vmatpush.bf16.msrb.mxu2 %v5296_v34  ;;  %1694 = vmatpush.bf16.msrb.mxu0 %v4752_v44  ;;  %v7117_v3 = vld [vmem:[#allocation2 + $0x604] sm:$0xf]  ;;  %v5200_v16 = vor.u32 %v7053_v0, %v5197_v2  ;;  %v5396_v34 = vor.u32 %v7106_v29, %v5395_v28  ;;  %v4852_v44 = vor.u32 %v6970_v36, %v4851_v35  ;;  %v7090_v53 = vld [vmem:[#allocation2 + $0x524] sm:$0xf0] }
  0x61   :  { %v5453_v4 = vld [vmem:[#allocation2 + $0x620] sm:$0xf0]  ;;  %v5587_v54 = vld [vmem:[#allocation2 + $0x708] sm:$0xf]  ;;  %v5332_v59 = vor.u32 %v7090_v53, %v5331_v52  ;;  %v7174_v53 = vld [vmem:[#allocation2 + $0x7cc] sm:$0xf] }
  0x62   :  { %1732 = vmatpush.bf16.msrb.mxu3 %v5552_v38  ;;  %1707 = vmatpush.bf16.msrb.mxu1 %v5008_v45  ;;  %v5456_v19 = vor.u32 %v7117_v3, %v5453_v4  ;;  %v5652_v38 = vor.u32 %v7170_v31, %v5651_v30  ;;  %v5108_v45 = vor.u32 %v7034_v39, %v5107_v37  ;;  %v7154_v55 = vld [vmem:[#allocation2 + $0x724] sm:$0xf0] }
  0x63   :  { %v5043_v62 = vld [vmem:[#allocation2 + $0x2c8] sm:$0xf]  ;;  %v5588_v63 = vor.u32 %v7154_v55, %v5587_v54  ;;  %v5685_v54 = vld [vmem:[#allocation2 + $0x7e8] sm:$0xf0] }
  0x64   :  { %1720 = vmatpush.bf16.msrb.mxu2 %v5264_v46  ;;  %1695 = vmatpush.bf16.msrb.mxu0 %v4720_v56  ;;  %v5364_v46 = vor.u32 %v7098_v41, %v5363_v40  ;;  %v4820_v56 = vor.u32 %v6962_v48, %v4819_v47  ;;  %v7018_v0 = vld [vmem:[#allocation2 + $0x2e4] sm:$0xf0]  ;;  %v5173_v48 = vld [vmem:[#allocation2 + $0x3e8] sm:$0xf0] }
  0x65   :  { %v7082_v2 = vld [vmem:[#allocation2 + $0x4e4] sm:$0xf0]  ;;  %v5044_v9 = vor.u32 %v7018_v0, %v5043_v62  ;;  %v7038_v62 = vld [vmem:[#allocation2 + $0x38c] sm:$0xf] }
  0x66   :  { %1733 = vmatpush.bf16.msrb.mxu3 %v5520_v50  ;;  %1708 = vmatpush.bf16.msrb.mxu1 %v4976_v60  ;;  %v5620_v50 = vor.u32 %v7162_v43, %v5619_v42  ;;  %v4787_v60 = vld [vmem:[#allocation2 + $0xc8] sm:$0xf]  ;;  %v5141_v0 = vld [vmem:[#allocation2 + $0x3a8] sm:$0xf0] }
  0x67   :  { %v5555_v3 = vld [vmem:[#allocation2 + $0x6c8] sm:$0xf] }
  0x68   :  { %1721 = vmatpush.bf16.msrb.mxu2 %v5232_v61  ;;  %1696 = vmatpush.bf16.msrb.mxu0 %v4688_v11  ;;  %v6954_v61 = vld [vmem:[#allocation2 + $0xe4] sm:$0xf0] }
  0x69   :  { %v7146_v4 = vld [vmem:[#allocation2 + $0x6e4] sm:$0xf0]  ;;  %v4788_v8 = vor.u32 %v6954_v61, %v4787_v60  ;;  %v6974_v60 = vld [vmem:[#allocation2 + $0x18c] sm:$0xf] }
  0x6a   :  { %1734 = vmatpush.bf16.msrb.mxu3 %v5488_v1  ;;  %1709 = vmatpush.bf16.msrb.mxu1 %v4944_v15  ;;  %v5299_v1 = vld [vmem:[#allocation2 + $0x4c8] sm:$0xf]  ;;  %v5556_v14 = vor.u32 %v7146_v4, %v5555_v3  ;;  %v4885_v61 = vld [vmem:[#allocation2 + $0x1a8] sm:$0xf0] }
  0x6b   :  { %1697 = vmatmul.bf16.vlgmr.msrb.gmra.mxu0 %v7628_v5  ;;  %v5300_v10 = vor.u32 %v7082_v2, %v5299_v1  ;;  %v4755_v11 = vld [vmem:[#allocation2 + $0x88] sm:$0xf]  ;;  %v7102_v1 = vld [vmem:[#allocation2 + $0x58c] sm:$0xf] }
  0x6c   :  { %1722 = vmatpush.bf16.msrb.mxu2 %v5200_v16  ;;  %1741 = vmatpush.bf16.msra.mxu0 %v4916_v20  ;;  %v6946_v12 = vld [vmem:[#allocation2 + $0xa4] sm:$0xf0]  ;;  %v5397_v2 = vld [vmem:[#allocation2 + $0x5a8] sm:$0xf0] }
  0x6d   :  { %1710 = vmatmul.bf16.vlgmr.msrb.gmra.mxu1 %v7632_v7  ;;  %v5011_v13 = vld [vmem:[#allocation2 + $0x288] sm:$0xf]  ;;  %v4756_v20 = vor.u32 %v6946_v12, %v4755_v11  ;;  %v7166_v3 = vld [vmem:[#allocation2 + $0x78c] sm:$0xf] }
  0x6e   :  { %1735 = vmatpush.bf16.msrb.mxu3 %v5456_v19  ;;  %1754 = vmatpush.bf16.msra.mxu1 %v5172_v21  ;;  %v7010_v15 = vld [vmem:[#allocation2 + $0x2a4] sm:$0xf0]  ;;  %v5653_v4 = vld [vmem:[#allocation2 + $0x7a8] sm:$0xf0] }
  0x6f   :  { %1723 = vmatmul.bf16.vlgmr.msrb.gmra.mxu2 %v7616_v57  ;;  %v5267_v16 = vld [vmem:[#allocation2 + $0x488] sm:$0xf]  ;;  %v5012_v21 = vor.u32 %v7010_v15, %v5011_v13  ;;  %v6966_v11 = vld [vmem:[#allocation2 + $0x14c] sm:$0xf] }
  0x70   :  { %1767 = vmatpush.bf16.msra.mxu2 %v5428_v22  ;;  %1742 = vmatpush.bf16.msra.mxu0 %v4884_v32  ;;  %v7074_v17 = vld [vmem:[#allocation2 + $0x4a4] sm:$0xf0]  ;;  %v4853_v12 = vld [vmem:[#allocation2 + $0x168] sm:$0xf0] }
  0x71   :  { %1736 = vmatmul.bf16.vlgmr.msrb.gmra.mxu3 %v7630_v6  ;;  %v5523_v18 = vld [vmem:[#allocation2 + $0x688] sm:$0xf]  ;;  %v5268_v22 = vor.u32 %v7074_v17, %v5267_v16  ;;  %v7030_v13 = vld [vmem:[#allocation2 + $0x34c] sm:$0xf] }
  0x72   :  { %1780 = vmatpush.bf16.msra.mxu3 %v5684_v26  ;;  %1755 = vmatpush.bf16.msra.mxu1 %v5140_v33  ;;  %v7138_v19 = vld [vmem:[#allocation2 + $0x6a4] sm:$0xf0]  ;;  %v5109_v15 = vld [vmem:[#allocation2 + $0x368] sm:$0xf0] }
  0x73   :  { %v4723_v23 = vld [vmem:[#allocation2 + $0x48] sm:$0xf]  ;;  %v5524_v26 = vor.u32 %v7138_v19, %v5523_v18  ;;  %v7094_v16 = vld [vmem:[#allocation2 + $0x54c] sm:$0xf] }
  0x74   :  { %1768 = vmatpush.bf16.msra.mxu2 %v5396_v34  ;;  %1743 = vmatpush.bf16.msra.mxu0 %v4852_v44  ;;  %v6938_v24 = vld [vmem:[#allocation2 + $0x64] sm:$0xf0]  ;;  %v6982_v44 = vld [vmem:[#allocation2 + $0x1cc] sm:$0xf] }
  0x75   :  { %v4979_v25 = vld [vmem:[#allocation2 + $0x248] sm:$0xf]  ;;  %v4724_v32 = vor.u32 %v6938_v24, %v4723_v23  ;;  %v5365_v17 = vld [vmem:[#allocation2 + $0x568] sm:$0xf0] }
  0x76   :  { %1781 = vmatpush.bf16.msra.mxu3 %v5652_v38  ;;  %1756 = vmatpush.bf16.msra.mxu1 %v5108_v45  ;;  %v7002_v27 = vld [vmem:[#allocation2 + $0x264] sm:$0xf0]  ;;  %v4917_v45 = vld [vmem:[#allocation2 + $0x1e8] sm:$0xf0] }
  0x77   :  { %v5235_v28 = vld [vmem:[#allocation2 + $0x448] sm:$0xf]  ;;  %v4980_v35 = vor.u32 %v7002_v27, %v4979_v25  ;;  %v7158_v18 = vld [vmem:[#allocation2 + $0x74c] sm:$0xf] }
  0x78   :  { %1769 = vmatpush.bf16.msra.mxu2 %v5364_v46  ;;  %1744 = vmatpush.bf16.msra.mxu0 %v4820_v56  ;;  %v7066_v29 = vld [vmem:[#allocation2 + $0x464] sm:$0xf0]  ;;  %v7046_v46 = vld [vmem:[#allocation2 + $0x3cc] sm:$0xf]  ;;  %v4920_v56 = vor.u32 %v6982_v44, %v4917_v45 }
  0x79   :  { %v5491_v30 = vld [vmem:[#allocation2 + $0x648] sm:$0xf]  ;;  %v5236_v36 = vor.u32 %v7066_v29, %v5235_v28  ;;  %v5621_v19 = vld [vmem:[#allocation2 + $0x768] sm:$0xf0] }
  0x7a   :  { %1782 = vmatpush.bf16.msra.mxu3 %v5620_v50  ;;  %1757 = vmatpush.bf16.msra.mxu1 %v5076_v58  ;;  %v7130_v31 = vld [vmem:[#allocation2 + $0x664] sm:$0xf0]  ;;  %v5429_v50 = vld [vmem:[#allocation2 + $0x5e8] sm:$0xf0]  ;;  %v5176_v58 = vor.u32 %v7046_v46, %v5173_v48 }
  0x7b   :  { %v4691_v33 = vld [vmem:[#allocation2 + $0x8] sm:$0xf]  ;;  %v5492_v40 = vor.u32 %v7130_v31, %v5491_v30  ;;  %v6958_v23 = vld [vmem:[#allocation2 + $0x10c] sm:$0xf] }
  0x7c   :  { %1770 = vmatpush.bf16.msra.mxu2 %v5332_v59  ;;  %1745 = vmatpush.bf16.msra.mxu0 %v4788_v8  ;;  %v6930_v34 = vld [vmem:[#allocation2 + $0x24] sm:$0xf0]  ;;  %v5432_v59 = vor.u32 %v7110_v49, %v5429_v50  ;;  %v4888_v8 = vor.u32 %v6974_v60, %v4885_v61  ;;  %v4821_v24 = vld [vmem:[#allocation2 + $0x128] sm:$0xf0] }
  0x7d   :  { %v4947_v37 = vld [vmem:[#allocation2 + $0x208] sm:$0xf]  ;;  %v4692_v47 = vor.u32 %v6930_v34, %v4691_v33  ;;  %v7022_v25 = vld [vmem:[#allocation2 + $0x30c] sm:$0xf] }
  0x7e   :  { %1783 = vmatpush.bf16.msra.mxu3 %v5588_v63  ;;  %1758 = vmatpush.bf16.msra.mxu1 %v5044_v9  ;;  %v6994_v38 = vld [vmem:[#allocation2 + $0x224] sm:$0xf0]  ;;  %v5688_v63 = vor.u32 %v7174_v53, %v5685_v54  ;;  %v5144_v9 = vor.u32 %v7038_v62, %v5141_v0  ;;  %v5077_v27 = vld [vmem:[#allocation2 + $0x328] sm:$0xf0] }
  0x7f   :  { %v5203_v39 = vld [vmem:[#allocation2 + $0x408] sm:$0xf]  ;;  %v4948_v51 = vor.u32 %v6994_v38, %v4947_v37  ;;  %v7086_v28 = vld [vmem:[#allocation2 + $0x50c] sm:$0xf]  ;;  %v5080_v33 = vor.u32 %v7022_v25, %v5077_v27  ;;  %v5435_v25 = vld [vmem:[#allocation2 + $0x5d0] sm:$0xf] }
  0x80   :  { %1771 = vmatpush.bf16.msra.mxu2 %v5300_v10  ;;  %1746 = vmatpush.bf16.msra.mxu0 %v4756_v20  ;;  %v7058_v41 = vld [vmem:[#allocation2 + $0x424] sm:$0xf0]  ;;  %v5400_v10 = vor.u32 %v7102_v1, %v5397_v2  ;;  %v4856_v20 = vor.u32 %v6966_v11, %v4853_v12  ;;  %v5333_v29 = vld [vmem:[#allocation2 + $0x528] sm:$0xf0] }
  0x81   :  { %v5459_v42 = vld [vmem:[#allocation2 + $0x608] sm:$0xf]  ;;  %v5204_v52 = vor.u32 %v7058_v41, %v5203_v39  ;;  %v7150_v30 = vld [vmem:[#allocation2 + $0x70c] sm:$0xf]  ;;  %v5336_v34 = vor.u32 %v7086_v28, %v5333_v29  ;;  %v5691_v29 = vld [vmem:[#allocation2 + $0x7d0] sm:$0xf] }
  0x82   :  { %1784 = vmatpush.bf16.msra.mxu3 %v5556_v14  ;;  %1759 = vmatpush.bf16.msra.mxu1 %v5012_v21  ;;  %v7122_v43 = vld [vmem:[#allocation2 + $0x624] sm:$0xf0]  ;;  %v5656_v14 = vor.u32 %v7166_v3, %v5653_v4  ;;  %v5112_v21 = vor.u32 %v7030_v13, %v5109_v15  ;;  %v5589_v31 = vld [vmem:[#allocation2 + $0x728] sm:$0xf0] }
  0x83   :  { %v5460_v55 = vor.u32 %v7122_v43, %v5459_v42  ;;  %v7014_v37 = vld [vmem:[#allocation2 + $0x2cc] sm:$0xf]  ;;  %v5592_v38 = vor.u32 %v7150_v30, %v5589_v31  ;;  %v7179_v30 = vld [vmem:[#allocation2 + $0x7ec] sm:$0xf0] }
  0x84   :  { %1772 = vmatpush.bf16.msra.mxu2 %v5268_v22  ;;  %1747 = vmatpush.bf16.msra.mxu0 %v4724_v32  ;;  %v5368_v22 = vor.u32 %v7094_v16, %v5365_v17  ;;  %v4824_v32 = vor.u32 %v6958_v23, %v4821_v24  ;;  %v5045_v39 = vld [vmem:[#allocation2 + $0x2e8] sm:$0xf0]  ;;  %v7051_v24 = vld [vmem:[#allocation2 + $0x3ec] sm:$0xf0] }
  0x85   :  { %v5301_v41 = vld [vmem:[#allocation2 + $0x4e8] sm:$0xf0]  ;;  %v5048_v45 = vor.u32 %v7014_v37, %v5045_v39  ;;  %v5147_v37 = vld [vmem:[#allocation2 + $0x390] sm:$0xf] }
  0x86   :  { %1785 = vmatpush.bf16.msra.mxu3 %v5524_v26  ;;  %1760 = vmatpush.bf16.msra.mxu1 %v4980_v35  ;;  %v5624_v26 = vor.u32 %v7158_v18, %v5621_v19  ;;  %v6950_v35 = vld [vmem:[#allocation2 + $0xcc] sm:$0xf]  ;;  %v7043_v39 = vld [vmem:[#allocation2 + $0x3ac] sm:$0xf0] }
  0x87   :  { %v7142_v42 = vld [vmem:[#allocation2 + $0x6cc] sm:$0xf] }
  0x88   :  { %1773 = vmatpush.bf16.msra.mxu2 %v5236_v36  ;;  %1748 = vmatpush.bf16.msra.mxu0 %v4692_v47  ;;  %v4789_v36 = vld [vmem:[#allocation2 + $0xe8] sm:$0xf0] }
  0x89   :  { %v5557_v43 = vld [vmem:[#allocation2 + $0x6e8] sm:$0xf0]  ;;  %v4792_v44 = vor.u32 %v6950_v35, %v4789_v36  ;;  %v4891_v35 = vld [vmem:[#allocation2 + $0x190] sm:$0xf] }
  0x8a   :  { %1786 = vmatpush.bf16.msra.mxu3 %v5492_v40  ;;  %1761 = vmatpush.bf16.msra.mxu1 %v4948_v51  ;;  %v7078_v40 = vld [vmem:[#allocation2 + $0x4cc] sm:$0xf]  ;;  %v5560_v50 = vor.u32 %v7142_v42, %v5557_v43  ;;  %v6979_v36 = vld [vmem:[#allocation2 + $0x1ac] sm:$0xf0] }
  0x8b   :  { %1749 = vmatmul.bf16.vlgmr.msra.gmra.mxu0 %v7628_v5  ;;  %v5304_v46 = vor.u32 %v7078_v40, %v5301_v41  ;;  %v6942_v47 = vld [vmem:[#allocation2 + $0x8c] sm:$0xf]  ;;  %v5403_v40 = vld [vmem:[#allocation2 + $0x590] sm:$0xf] }
  0x8c   :  { %1774 = vmatpush.bf16.msra.mxu2 %v5204_v52  ;;  %1793 = vmatpush.bf16.msrb.mxu0 %v4920_v56  ;;  %v4757_v48 = vld [vmem:[#allocation2 + $0xa8] sm:$0xf0]  ;;  %v7107_v41 = vld [vmem:[#allocation2 + $0x5ac] sm:$0xf0] }
  0x8d   :  { %1762 = vmatmul.bf16.vlgmr.msra.gmra.mxu1 %v7632_v7  ;;  %v7006_v49 = vld [vmem:[#allocation2 + $0x28c] sm:$0xf]  ;;  %v4760_v56 = vor.u32 %v6942_v47, %v4757_v48  ;;  %v5659_v42 = vld [vmem:[#allocation2 + $0x790] sm:$0xf] }
  0x8e   :  { %1787 = vmatpush.bf16.msra.mxu3 %v5460_v55  ;;  %1806 = vmatpush.bf16.msrb.mxu1 %v5176_v58  ;;  %v5013_v51 = vld [vmem:[#allocation2 + $0x2a8] sm:$0xf0]  ;;  %v7171_v43 = vld [vmem:[#allocation2 + $0x7ac] sm:$0xf0] }
  0x8f   :  { %1775 = vmatmul.bf16.vlgmr.msra.gmra.mxu2 %v7616_v57  ;;  %v7070_v52 = vld [vmem:[#allocation2 + $0x48c] sm:$0xf]  ;;  %v5016_v58 = vor.u32 %v7006_v49, %v5013_v51  ;;  %v4859_v47 = vld [vmem:[#allocation2 + $0x150] sm:$0xf] }
  0x90   :  { %1819 = vmatpush.bf16.msrb.mxu2 %v5432_v59  ;;  %1794 = vmatpush.bf16.msrb.mxu0 %v4888_v8  ;;  %v5269_v53 = vld [vmem:[#allocation2 + $0x4a8] sm:$0xf0]  ;;  %v6971_v48 = vld [vmem:[#allocation2 + $0x16c] sm:$0xf0] }
  0x91   :  { %1788 = vmatmul.bf16.vlgmr.msra.gmra.mxu3 %v7630_v6  ;;  %v7134_v54 = vld [vmem:[#allocation2 + $0x68c] sm:$0xf]  ;;  %v5272_v59 = vor.u32 %v7070_v52, %v5269_v53  ;;  %v5115_v49 = vld [vmem:[#allocation2 + $0x350] sm:$0xf] }
  0x92   :  { %1832 = vmatpush.bf16.msrb.mxu3 %v5688_v63  ;;  %1807 = vmatpush.bf16.msrb.mxu1 %v5144_v9  ;;  %v5525_v55 = vld [vmem:[#allocation2 + $0x6a8] sm:$0xf0]  ;;  %v7035_v51 = vld [vmem:[#allocation2 + $0x36c] sm:$0xf0] }
  0x93   :  { %v6934_v60 = vld [vmem:[#allocation2 + $0x4c] sm:$0xf]  ;;  %v5528_v63 = vor.u32 %v7134_v54, %v5525_v55  ;;  %v5371_v52 = vld [vmem:[#allocation2 + $0x550] sm:$0xf] }
  0x94   :  { %1820 = vmatpush.bf16.msrb.mxu2 %v5400_v10  ;;  %1795 = vmatpush.bf16.msrb.mxu0 %v4856_v20  ;;  %v4725_v61 = vld [vmem:[#allocation2 + $0x68] sm:$0xf0]  ;;  %v4923_v20 = vld [vmem:[#allocation2 + $0x1d0] sm:$0xf] }
  0x95   :  { %v6998_v62 = vld [vmem:[#allocation2 + $0x24c] sm:$0xf]  ;;  %v4728_v8 = vor.u32 %v6934_v60, %v4725_v61  ;;  %v7099_v53 = vld [vmem:[#allocation2 + $0x56c] sm:$0xf0] }
  0x96   :  { %1833 = vmatpush.bf16.msrb.mxu3 %v5656_v14  ;;  %1808 = vmatpush.bf16.msrb.mxu1 %v5112_v21  ;;  %v4981_v0 = vld [vmem:[#allocation2 + $0x268] sm:$0xf0]  ;;  %v6987_v21 = vld [vmem:[#allocation2 + $0x1ec] sm:$0xf0] }
  0x97   :  { %v7062_v1 = vld [vmem:[#allocation2 + $0x44c] sm:$0xf]  ;;  %v4984_v11 = vor.u32 %v6998_v62, %v4981_v0  ;;  %v5627_v54 = vld [vmem:[#allocation2 + $0x750] sm:$0xf] }
  0x98   :  { %1821 = vmatpush.bf16.msrb.mxu2 %v5368_v22  ;;  %1796 = vmatpush.bf16.msrb.mxu0 %v4824_v32  ;;  %v5237_v2 = vld [vmem:[#allocation2 + $0x468] sm:$0xf0]  ;;  %v5179_v22 = vld [vmem:[#allocation2 + $0x3d0] sm:$0xf]  ;;  %v4924_v32 = vor.u32 %v6987_v21, %v4923_v20 }
  0x99   :  { %v7126_v3 = vld [vmem:[#allocation2 + $0x64c] sm:$0xf]  ;;  %v5240_v12 = vor.u32 %v7062_v1, %v5237_v2  ;;  %v7163_v55 = vld [vmem:[#allocation2 + $0x76c] sm:$0xf0] }
  0x9a   :  { %1834 = vmatpush.bf16.msrb.mxu3 %v5624_v26  ;;  %1809 = vmatpush.bf16.msrb.mxu1 %v5080_v33  ;;  %v5493_v4 = vld [vmem:[#allocation2 + $0x668] sm:$0xf0]  ;;  %v7115_v26 = vld [vmem:[#allocation2 + $0x5ec] sm:$0xf0]  ;;  %v5180_v33 = vor.u32 %v7051_v24, %v5179_v22 }
  0x9b   :  { %v6926_v9 = vld [vmem:[#allocation2 + $0xc] sm:$0xf]  ;;  %v5496_v16 = vor.u32 %v7126_v3, %v5493_v4  ;;  %v4827_v60 = vld [vmem:[#allocation2 + $0x110] sm:$0xf] }
  0x9c   :  { %1822 = vmatpush.bf16.msrb.mxu2 %v5336_v34  ;;  %1797 = vmatpush.bf16.msrb.mxu0 %v4792_v44  ;;  %v4693_v10 = vld [vmem:[#allocation2 + $0x28] sm:$0xf0]  ;;  %v5436_v34 = vor.u32 %v7115_v26, %v5435_v25  ;;  %v4892_v44 = vor.u32 %v6979_v36, %v4891_v35  ;;  %v6963_v61 = vld [vmem:[#allocation2 + $0x12c] sm:$0xf0] }
  0x9d   :  { %v6990_v13 = vld [vmem:[#allocation2 + $0x20c] sm:$0xf]  ;;  %v4696_v23 = vor.u32 %v6926_v9, %v4693_v10  ;;  %v5083_v62 = vld [vmem:[#allocation2 + $0x310] sm:$0xf] }
  0x9e   :  { %1835 = vmatpush.bf16.msrb.mxu3 %v5592_v38  ;;  %1810 = vmatpush.bf16.msrb.mxu1 %v5048_v45  ;;  %v4949_v14 = vld [vmem:[#allocation2 + $0x228] sm:$0xf0]  ;;  %v5692_v38 = vor.u32 %v7179_v30, %v5691_v29  ;;  %v5148_v45 = vor.u32 %v7043_v39, %v5147_v37  ;;  %v7027_v0 = vld [vmem:[#allocation2 + $0x32c] sm:$0xf0] }
  0x9f   :  { %v7054_v15 = vld [vmem:[#allocation2 + $0x40c] sm:$0xf]  ;;  %v4952_v27 = vor.u32 %v6990_v13, %v4949_v14  ;;  %v5339_v1 = vld [vmem:[#allocation2 + $0x510] sm:$0xf]  ;;  %v5084_v9 = vor.u32 %v7027_v0, %v5083_v62  ;;  %v7111_v62 = vld [vmem:[#allocation2 + $0x5d4] sm:$0xf] }
  0xa0   :  { %1823 = vmatpush.bf16.msrb.mxu2 %v5304_v46  ;;  %1798 = vmatpush.bf16.msrb.mxu0 %v4760_v56  ;;  %v5205_v17 = vld [vmem:[#allocation2 + $0x428] sm:$0xf0]  ;;  %v5404_v46 = vor.u32 %v7107_v41, %v5403_v40  ;;  %v4860_v56 = vor.u32 %v6971_v48, %v4859_v47  ;;  %v7091_v2 = vld [vmem:[#allocation2 + $0x52c] sm:$0xf0] }
  0xa1   :  { %v7118_v18 = vld [vmem:[#allocation2 + $0x60c] sm:$0xf]  ;;  %v5208_v28 = vor.u32 %v7054_v15, %v5205_v17  ;;  %v5595_v3 = vld [vmem:[#allocation2 + $0x710] sm:$0xf]  ;;  %v5340_v10 = vor.u32 %v7091_v2, %v5339_v1  ;;  %v7175_v2 = vld [vmem:[#allocation2 + $0x7d4] sm:$0xf] }
  0xa2   :  { %1836 = vmatpush.bf16.msrb.mxu3 %v5560_v50  ;;  %1811 = vmatpush.bf16.msrb.mxu1 %v5016_v58  ;;  %v5461_v19 = vld [vmem:[#allocation2 + $0x628] sm:$0xf0]  ;;  %v5660_v50 = vor.u32 %v7171_v43, %v5659_v42  ;;  %v5116_v58 = vor.u32 %v7035_v51, %v5115_v49  ;;  %v7155_v4 = vld [vmem:[#allocation2 + $0x72c] sm:$0xf0] }
  0xa3   :  { %v5464_v31 = vor.u32 %v7118_v18, %v5461_v19  ;;  %v5051_v13 = vld [vmem:[#allocation2 + $0x2d0] sm:$0xf]  ;;  %v5596_v14 = vor.u32 %v7155_v4, %v5595_v3  ;;  %v5693_v3 = vld [vmem:[#allocation2 + $0x7f0] sm:$0xf0] }
  0xa4   :  { %1824 = vmatpush.bf16.msrb.mxu2 %v5272_v59  ;;  %1799 = vmatpush.bf16.msrb.mxu0 %v4728_v8  ;;  %v5372_v59 = vor.u32 %v7099_v53, %v5371_v52  ;;  %v4828_v8 = vor.u32 %v6963_v61, %v4827_v60  ;;  %v7019_v15 = vld [vmem:[#allocation2 + $0x2ec] sm:$0xf0]  ;;  %v5181_v61 = vld [vmem:[#allocation2 + $0x3f0] sm:$0xf0] }
  0xa5   :  { %v7083_v17 = vld [vmem:[#allocation2 + $0x4ec] sm:$0xf0]  ;;  %v5052_v21 = vor.u32 %v7019_v15, %v5051_v13  ;;  %v7039_v13 = vld [vmem:[#allocation2 + $0x394] sm:$0xf] }
  0xa6   :  { %1837 = vmatpush.bf16.msrb.mxu3 %v5528_v63  ;;  %1812 = vmatpush.bf16.msrb.mxu1 %v4984_v11  ;;  %v5628_v63 = vor.u32 %v7163_v55, %v5627_v54  ;;  %v4795_v11 = vld [vmem:[#allocation2 + $0xd0] sm:$0xf]  ;;  %v5149_v15 = vld [vmem:[#allocation2 + $0x3b0] sm:$0xf0] }
  0xa7   :  { %v5563_v18 = vld [vmem:[#allocation2 + $0x6d0] sm:$0xf] }
  0xa8   :  { %1825 = vmatpush.bf16.msrb.mxu2 %v5240_v12  ;;  %1800 = vmatpush.bf16.msrb.mxu0 %v4696_v23  ;;  %v6955_v12 = vld [vmem:[#allocation2 + $0xec] sm:$0xf0] }
  0xa9   :  { %v7147_v19 = vld [vmem:[#allocation2 + $0x6ec] sm:$0xf0]  ;;  %v4796_v20 = vor.u32 %v6955_v12, %v4795_v11  ;;  %v6975_v11 = vld [vmem:[#allocation2 + $0x194] sm:$0xf] }
  0xaa   :  { %1838 = vmatpush.bf16.msrb.mxu3 %v5496_v16  ;;  %1813 = vmatpush.bf16.msrb.mxu1 %v4952_v27  ;;  %v5307_v16 = vld [vmem:[#allocation2 + $0x4d0] sm:$0xf]  ;;  %v5564_v26 = vor.u32 %v7147_v19, %v5563_v18  ;;  %v4893_v12 = vld [vmem:[#allocation2 + $0x1b0] sm:$0xf0] }
  0xab   :  { %1801 = vmatmul.bf16.vlgmr.msrb.gmra.mxu0 %v7628_v5  ;;  %v5308_v22 = vor.u32 %v7083_v17, %v5307_v16  ;;  %v4763_v23 = vld [vmem:[#allocation2 + $0x90] sm:$0xf]  ;;  %v7103_v16 = vld [vmem:[#allocation2 + $0x594] sm:$0xf] }
  0xac   :  { %1826 = vmatpush.bf16.msrb.mxu2 %v5208_v28  ;;  %1845 = vmatpush.bf16.msra.mxu0 %v4924_v32  ;;  %v6947_v24 = vld [vmem:[#allocation2 + $0xac] sm:$0xf0]  ;;  %v5405_v17 = vld [vmem:[#allocation2 + $0x5b0] sm:$0xf0] }
  0xad   :  { %1814 = vmatmul.bf16.vlgmr.msrb.gmra.mxu1 %v7632_v7  ;;  %v5019_v25 = vld [vmem:[#allocation2 + $0x290] sm:$0xf]  ;;  %v4764_v32 = vor.u32 %v6947_v24, %v4763_v23  ;;  %v7167_v18 = vld [vmem:[#allocation2 + $0x794] sm:$0xf] }
  0xae   :  { %1839 = vmatpush.bf16.msrb.mxu3 %v5464_v31  ;;  %1858 = vmatpush.bf16.msra.mxu1 %v5180_v33  ;;  %v7011_v27 = vld [vmem:[#allocation2 + $0x2ac] sm:$0xf0]  ;;  %v5661_v19 = vld [vmem:[#allocation2 + $0x7b0] sm:$0xf0] }
  0xaf   :  { %1827 = vmatmul.bf16.vlgmr.msrb.gmra.mxu2 %v7616_v57  ;;  %v5275_v28 = vld [vmem:[#allocation2 + $0x490] sm:$0xf]  ;;  %v5020_v33 = vor.u32 %v7011_v27, %v5019_v25  ;;  %v6967_v23 = vld [vmem:[#allocation2 + $0x154] sm:$0xf] }
  0xb0   :  { %1871 = vmatpush.bf16.msra.mxu2 %v5436_v34  ;;  %1846 = vmatpush.bf16.msra.mxu0 %v4892_v44  ;;  %v7075_v29 = vld [vmem:[#allocation2 + $0x4ac] sm:$0xf0]  ;;  %v4861_v24 = vld [vmem:[#allocation2 + $0x170] sm:$0xf0] }
  0xb1   :  { %1840 = vmatmul.bf16.vlgmr.msrb.gmra.mxu3 %v7630_v6  ;;  %v5531_v30 = vld [vmem:[#allocation2 + $0x690] sm:$0xf]  ;;  %v5276_v34 = vor.u32 %v7075_v29, %v5275_v28  ;;  %v7031_v25 = vld [vmem:[#allocation2 + $0x354] sm:$0xf] }
  0xb2   :  { %1884 = vmatpush.bf16.msra.mxu3 %v5692_v38  ;;  %1859 = vmatpush.bf16.msra.mxu1 %v5148_v45  ;;  %v7139_v31 = vld [vmem:[#allocation2 + $0x6ac] sm:$0xf0]  ;;  %v5117_v27 = vld [vmem:[#allocation2 + $0x370] sm:$0xf0] }
  0xb3   :  { %v4731_v35 = vld [vmem:[#allocation2 + $0x50] sm:$0xf]  ;;  %v5532_v38 = vor.u32 %v7139_v31, %v5531_v30  ;;  %v7095_v28 = vld [vmem:[#allocation2 + $0x554] sm:$0xf] }
  0xb4   :  { %1872 = vmatpush.bf16.msra.mxu2 %v5404_v46  ;;  %1847 = vmatpush.bf16.msra.mxu0 %v4860_v56  ;;  %v6939_v36 = vld [vmem:[#allocation2 + $0x6c] sm:$0xf0]  ;;  %v6983_v56 = vld [vmem:[#allocation2 + $0x1d4] sm:$0xf] }
  0xb5   :  { %v4987_v37 = vld [vmem:[#allocation2 + $0x250] sm:$0xf]  ;;  %v4732_v44 = vor.u32 %v6939_v36, %v4731_v35  ;;  %v5373_v29 = vld [vmem:[#allocation2 + $0x570] sm:$0xf0] }
  0xb6   :  { %1885 = vmatpush.bf16.msra.mxu3 %v5660_v50  ;;  %1860 = vmatpush.bf16.msra.mxu1 %v5116_v58  ;;  %v7003_v39 = vld [vmem:[#allocation2 + $0x26c] sm:$0xf0]  ;;  %v4925_v58 = vld [vmem:[#allocation2 + $0x1f0] sm:$0xf0]  ;;  %v5376_v35 = vor.u32 %v7095_v28, %v5373_v29 }
  0xb7   :  { %v5243_v40 = vld [vmem:[#allocation2 + $0x450] sm:$0xf]  ;;  %v4988_v47 = vor.u32 %v7003_v39, %v4987_v37  ;;  %v7159_v30 = vld [vmem:[#allocation2 + $0x754] sm:$0xf] }
  0xb8   :  { %1873 = vmatpush.bf16.msra.mxu2 %v5372_v59  ;;  %1848 = vmatpush.bf16.msra.mxu0 %v4828_v8  ;;  %v7067_v41 = vld [vmem:[#allocation2 + $0x46c] sm:$0xf0]  ;;  %v7047_v59 = vld [vmem:[#allocation2 + $0x3d4] sm:$0xf]  ;;  %v4928_v8 = vor.u32 %v6983_v56, %v4925_v58 }
  0xb9   :  { %v5499_v42 = vld [vmem:[#allocation2 + $0x650] sm:$0xf]  ;;  %v5244_v48 = vor.u32 %v7067_v41, %v5243_v40  ;;  %v5629_v31 = vld [vmem:[#allocation2 + $0x770] sm:$0xf0] }
  0xba   :  { %1886 = vmatpush.bf16.msra.mxu3 %v5628_v63  ;;  %1861 = vmatpush.bf16.msra.mxu1 %v5084_v9  ;;  %v7131_v43 = vld [vmem:[#allocation2 + $0x66c] sm:$0xf0]  ;;  %v5437_v63 = vld [vmem:[#allocation2 + $0x5f0] sm:$0xf0]  ;;  %v5184_v9 = vor.u32 %v7047_v59, %v5181_v61  ;;  %v5632_v39 = vor.u32 %v7159_v30, %v5629_v31 }
  0xbb   :  { %v4699_v45 = vld [vmem:[#allocation2 + $0x10] sm:$0xf]  ;;  %v5500_v52 = vor.u32 %v7131_v43, %v5499_v42  ;;  %v4829_v36 = vld [vmem:[#allocation2 + $0x130] sm:$0xf0] }
  0xbc   :  { %1874 = vmatpush.bf16.msra.mxu2 %v5340_v10  ;;  %1849 = vmatpush.bf16.msra.mxu0 %v4796_v20  ;;  %v6931_v46 = vld [vmem:[#allocation2 + $0x2c] sm:$0xf0]  ;;  %v5440_v10 = vor.u32 %v7111_v62, %v5437_v63  ;;  %v4896_v20 = vor.u32 %v6975_v11, %v4893_v12  ;;  %v7023_v37 = vld [vmem:[#allocation2 + $0x314] sm:$0xf] }
  0xbd   :  { %v4955_v49 = vld [vmem:[#allocation2 + $0x210] sm:$0xf]  ;;  %v4700_v60 = vor.u32 %v6931_v46, %v4699_v45  ;;  %v5085_v40 = vld [vmem:[#allocation2 + $0x330] sm:$0xf0] }
  0xbe   :  { %1887 = vmatpush.bf16.msra.mxu3 %v5596_v14  ;;  %1862 = vmatpush.bf16.msra.mxu1 %v5052_v21  ;;  %v6995_v50 = vld [vmem:[#allocation2 + $0x22c] sm:$0xf0]  ;;  %v5696_v14 = vor.u32 %v7175_v2, %v5693_v3  ;;  %v5152_v21 = vor.u32 %v7039_v13, %v5149_v15  ;;  %v7087_v41 = vld [vmem:[#allocation2 + $0x514] sm:$0xf] }
  0xbf   :  { %v5211_v51 = vld [vmem:[#allocation2 + $0x410] sm:$0xf]  ;;  %v4956_v0 = vor.u32 %v6995_v50, %v4955_v49  ;;  %v5341_v42 = vld [vmem:[#allocation2 + $0x530] sm:$0xf0] }
  0xc0   :  { %1875 = vmatpush.bf16.msra.mxu2 %v5308_v22  ;;  %1850 = vmatpush.bf16.msra.mxu0 %v4764_v32  ;;  %v7059_v53 = vld [vmem:[#allocation2 + $0x42c] sm:$0xf0]  ;;  %v5408_v22 = vor.u32 %v7103_v16, %v5405_v17  ;;  %v4864_v32 = vor.u32 %v6967_v23, %v4861_v24  ;;  %v7151_v43 = vld [vmem:[#allocation2 + $0x714] sm:$0xf] }
  0xc1   :  { %v5467_v54 = vld [vmem:[#allocation2 + $0x610] sm:$0xf]  ;;  %v5212_v1 = vor.u32 %v7059_v53, %v5211_v51  ;;  %v6951_v49 = vld [vmem:[#allocation2 + $0xd4] sm:$0xf] }
  0xc2   :  { %1888 = vmatpush.bf16.msra.mxu3 %v5564_v26  ;;  %1863 = vmatpush.bf16.msra.mxu1 %v5020_v33  ;;  %v7123_v55 = vld [vmem:[#allocation2 + $0x62c] sm:$0xf0]  ;;  %v5664_v26 = vor.u32 %v7167_v18, %v5661_v19  ;;  %v6959_v33 = vld [vmem:[#allocation2 + $0x114] sm:$0xf] }
  0xc3   :  { %v5468_v4 = vor.u32 %v7123_v55, %v5467_v54  ;;  %v4832_v45 = vor.u32 %v6959_v33, %v4829_v36  ;;  %v4797_v50 = vld [vmem:[#allocation2 + $0xf0] sm:$0xf0] }
  0xc4   :  { %1876 = vmatpush.bf16.msra.mxu2 %v5276_v34  ;;  %1851 = vmatpush.bf16.msra.mxu0 %v4732_v44  ;;  %v5120_v34 = vor.u32 %v7031_v25, %v5117_v27  ;;  %v5597_v44 = vld [vmem:[#allocation2 + $0x730] sm:$0xf0] }
  0xc5   :  { %v7015_v51 = vld [vmem:[#allocation2 + $0x2d4] sm:$0xf] }
  0xc6   :  { %1889 = vmatpush.bf16.msra.mxu3 %v5532_v38  ;;  %1864 = vmatpush.bf16.msra.mxu1 %v4988_v47  ;;  %v7656_v38 = vld [vmem:[%s8412_s3] sm:$0xff]  ;;  %v5088_v47 = vor.u32 %v7023_v37, %v5085_v40  ;;  %v5053_v53 = vld [vmem:[#allocation2 + $0x2f0] sm:$0xf0] }
  0xc7   :  { %v341_v46 = vperm.slane %v7656_v38, 0  ;;  %v7079_v54 = vld [vmem:[#allocation2 + $0x4d4] sm:$0xf]  ;;  %v5056_v63 = vor.u32 %v7015_v51, %v5053_v53  ;;  %v5443_v51 = vld [vmem:[#allocation2 + $0x5d8] sm:$0xf] }
  0xc8   :  { %1877 = vmatpush.bf16.msra.mxu2 %v5244_v48  ;;  %1852 = vmatpush.bf16.msra.mxu0 %v4700_v60  ;;  %v5344_v48 = vor.u32 %v7087_v41, %v5341_v42  ;;  %v5309_v55 = vld [vmem:[#allocation2 + $0x4f0] sm:$0xf0]  ;;  %v4800_v60 = vor.u32 %v6951_v49, %v4797_v50  ;;  %v7052_v50 = vld [vmem:[#allocation2 + $0x3f4] sm:$0xf0] }
  0xc9   :  { %v7143_v56 = vld [vmem:[#allocation2 + $0x6d4] sm:$0xf] }
  0xca   :  { %1890 = vmatpush.bf16.msra.mxu3 %v5500_v52  ;;  %1865 = vmatpush.bf16.msra.mxu1 %v4956_v0  ;;  %v5600_v52 = vor.u32 %v7151_v43, %v5597_v44  ;;  %v5565_v58 = vld [vmem:[#allocation2 + $0x6f0] sm:$0xf0]  ;;  %v1659_v62 = vpop.f32.mrf.mxu1  ;;  %v5312_v0 = vor.u32 %v7079_v54, %v5309_v55  ;;  %v5699_v55 = vld [vmem:[#allocation2 + $0x7d8] sm:$0xf] }
  0xcb   :  { %1853 = vmatmul.bf16.vlgmr.msra.gmra.mxu0 %v7628_v5  ;;  %v4765_v2 = vld [vmem:[#allocation2 + $0xb0] sm:$0xf0] }
  0xcc   :  { %1878 = vmatpush.bf16.msra.mxu2 %v5212_v1  ;;  %1897 = vmatpush.bf16.msrb.mxu0 %v4928_v8  ;;  %v1646_v59 = vpop.f32.mrf.mxu0  ;;  %v6943_v1 = vld [vmem:[#allocation2 + $0x94] sm:$0xf]  ;;  %v5568_v8 = vor.u32 %v7143_v56, %v5565_v58  ;;  %v7180_v56 = vld [vmem:[#allocation2 + $0x7f4] sm:$0xf0] }
  0xcd   :  { %1866 = vmatmul.bf16.vlgmr.msra.gmra.mxu1 %v7632_v7  ;;  %v1647_v61 = vadd.f32 %v1646_v59, %v341_v46  ;;  %v7007_v3 = vld [vmem:[#allocation2 + $0x294] sm:$0xf]  ;;  %v4768_v15 = vor.u32 %v6943_v1, %v4765_v2  ;;  %v4931_v46 = vld [vmem:[#allocation2 + $0x1d8] sm:$0xf]  ;;  %v5700_v2 = vor.u32 %v7180_v56, %v5699_v55 }
  0xce   :  { %1891 = vmatpush.bf16.msra.mxu3 %v5468_v4  ;;  %1910 = vmatpush.bf16.msrb.mxu1 %v5184_v9  ;;  %v5021_v9 = vld [vmem:[#allocation2 + $0x2b0] sm:$0xf0]  ;;  %v5155_v1 = vld [vmem:[#allocation2 + $0x398] sm:$0xf] }
  0xcf   :  { %1879 = vmatmul.bf16.vlgmr.msra.gmra.mxu2 %v7616_v57  ;;  %v5277_v11 = vld [vmem:[#allocation2 + $0x4b0] sm:$0xf0]  ;;  %v1660_v12 = vadd.f32 %v1659_v62, %v1647_v61  ;;  %v5024_v17 = vor.u32 %v7007_v3, %v5021_v9  ;;  %v7044_v3 = vld [vmem:[#allocation2 + $0x3b4] sm:$0xf0] }
  0xd0   :  { %1923 = vmatpush.bf16.msrb.mxu2 %v5440_v10  ;;  %1898 = vmatpush.bf16.msrb.mxu0 %v4896_v20  ;;  %v7071_v10 = vld [vmem:[#allocation2 + $0x494] sm:$0xf]  ;;  %v5667_v9 = vld [vmem:[#allocation2 + $0x798] sm:$0xf] }
  0xd1   :  { %1892 = vmatmul.bf16.vlgmr.msra.gmra.mxu3 %v7630_v6  ;;  %v7135_v13 = vld [vmem:[#allocation2 + $0x694] sm:$0xf]  ;;  %v5280_v18 = vor.u32 %v7071_v10, %v5277_v11  ;;  %v7172_v10 = vld [vmem:[#allocation2 + $0x7b4] sm:$0xf0] }
  0xd2   :  { %1936 = vmatpush.bf16.msrb.mxu3 %v5696_v14  ;;  %1911 = vmatpush.bf16.msrb.mxu1 %v5152_v21  ;;  %v1672_v4 = vpop.f32.mrf.mxu2  ;;  %v5533_v14 = vld [vmem:[#allocation2 + $0x6b0] sm:$0xf0] }
  0xd3   :  { %v1673_v16 = vadd.f32 %v1672_v4, %v1660_v12  ;;  %v6935_v19 = vld [vmem:[#allocation2 + $0x54] sm:$0xf]  ;;  %v5411_v4 = vld [vmem:[#allocation2 + $0x598] sm:$0xf]  ;;  %v5156_v12 = vor.u32 %v7044_v3, %v5155_v1 }
  0xd4   :  { %1924 = vmatpush.bf16.msrb.mxu2 %v5408_v22  ;;  %1899 = vmatpush.bf16.msrb.mxu0 %v4864_v32  ;;  %v4733_v20 = vld [vmem:[#allocation2 + $0x70] sm:$0xf0]  ;;  %v5536_v22 = vor.u32 %v7135_v13, %v5533_v14  ;;  %v1648_v30 = vpop.f32.mrf.mxu0  ;;  %v4867_v14 = vld [vmem:[#allocation2 + $0x158] sm:$0xf] }
  0xd5   :  { %v6999_v21 = vld [vmem:[#allocation2 + $0x254] sm:$0xf]  ;;  %v4736_v31 = vor.u32 %v6935_v19, %v4733_v20  ;;  %v5379_v19 = vld [vmem:[#allocation2 + $0x558] sm:$0xf]  ;;  %v342_v30 = vperm.slane %v7656_v38, 1 }
  0xd6   :  { %1937 = vmatpush.bf16.msrb.mxu3 %v5664_v26  ;;  %1912 = vmatpush.bf16.msrb.mxu1 %v5120_v34  ;;  %v4989_v23 = vld [vmem:[#allocation2 + $0x270] sm:$0xf0]  ;;  %v1685_v26 = vpop.f32.mrf.mxu3  ;;  %v1661_v34 = vpop.f32.mrf.mxu1  ;;  %v7100_v20 = vld [vmem:[#allocation2 + $0x574] sm:$0xf0] }
  0xd7   :  { %v7063_v24 = vld [vmem:[#allocation2 + $0x454] sm:$0xf]  ;;  %v7659_v29 = vadd.f32 %v1685_v26, %v1673_v16  ;;  %v5123_v16 = vld [vmem:[#allocation2 + $0x358] sm:$0xf]  ;;  %v5380_v26 = vor.u32 %v7100_v20, %v5379_v19 }
  0xd8   :  { %1925 = vmatpush.bf16.msrb.mxu2 %v5376_v35  ;;  %1900 = vmatpush.bf16.msrb.mxu0 %v4832_v45  ;;  %v5245_v25 = vld [vmem:[#allocation2 + $0x470] sm:$0xf0]  ;;  %v4992_v35 = vor.u32 %v6999_v21, %v4989_v23  ;;  %v5635_v21 = vld [vmem:[#allocation2 + $0x758] sm:$0xf] }
  0xd9   :  { %v7127_v27 = vld [vmem:[#allocation2 + $0x654] sm:$0xf]  ;;  %v5248_v36 = vor.u32 %v7063_v24, %v5245_v25  ;;  %v4835_v24 = vld [vmem:[#allocation2 + $0x118] sm:$0xf]  ;;  %v2053_v19 = vmax.f32 %v7659_v29, 0.0 }
  0xda   :  { %1938 = vmatpush.bf16.msrb.mxu3 %v5632_v39  ;;  %1913 = vmatpush.bf16.msrb.mxu1 %v5088_v47  ;;  %v5501_v28 = vld [vmem:[#allocation2 + $0x670] sm:$0xf0]  ;;  %v1674_v41 = vpop.f32.mrf.mxu2  ;;  %v6988_v47 = vld [vmem:[#allocation2 + $0x1f4] sm:$0xf0] }
  0xdb   :  { %v6927_v32 = vld [vmem:[#allocation2 + $0x14] sm:$0xf]  ;;  %v5504_v42 = vor.u32 %v7127_v27, %v5501_v28  ;;  %v4932_v59 = vor.u32 %v6988_v47, %v4931_v46  ;;  %v6964_v27 = vld [vmem:[#allocation2 + $0x134] sm:$0xf0] }
  0xdc   :  { %1926 = vmatpush.bf16.msrb.mxu2 %v5344_v48  ;;  %1901 = vmatpush.bf16.msrb.mxu0 %v4800_v60  ;;  %v4701_v33 = vld [vmem:[#allocation2 + $0x30] sm:$0xf0]  ;;  %v5187_v48 = vld [vmem:[#allocation2 + $0x3d8] sm:$0xf] }
  0xdd   :  { %v6991_v37 = vld [vmem:[#allocation2 + $0x214] sm:$0xf]  ;;  %v4704_v49 = vor.u32 %v6927_v32, %v4701_v33  ;;  %v5188_v61 = vor.u32 %v7052_v50, %v5187_v48  ;;  %v5091_v28 = vld [vmem:[#allocation2 + $0x318] sm:$0xf] }
  0xde   :  { %1939 = vmatpush.bf16.msrb.mxu3 %v5600_v52  ;;  %1914 = vmatpush.bf16.msrb.mxu1 %v5056_v63  ;;  %v4957_v39 = vld [vmem:[#allocation2 + $0x230] sm:$0xf0]  ;;  %v7116_v52 = vld [vmem:[#allocation2 + $0x5f4] sm:$0xf0]  ;;  %v1687_v60 = vpop.f32.mrf.mxu3 }
  0xdf   :  { %v7055_v40 = vld [vmem:[#allocation2 + $0x414] sm:$0xf]  ;;  %v4960_v53 = vor.u32 %v6991_v37, %v4957_v39  ;;  %v5444_v62 = vor.u32 %v7116_v52, %v5443_v51  ;;  %v4899_v63 = vld [vmem:[#allocation2 + $0x198] sm:$0xf]  ;;  %v4836_v37 = vor.u32 %v6964_v27, %v4835_v24 }
  0xe0   :  { %1927 = vmatpush.bf16.msrb.mxu2 %v5312_v0  ;;  %1902 = vmatpush.bf16.msrb.mxu0 %v4768_v15  ;;  %v5213_v43 = vld [vmem:[#allocation2 + $0x430] sm:$0xf0]  ;;  %v6980_v0 = vld [vmem:[#allocation2 + $0x1b4] sm:$0xf0] }
  0xe1   :  { %v7119_v44 = vld [vmem:[#allocation2 + $0x614] sm:$0xf]  ;;  %v5216_v54 = vor.u32 %v7055_v40, %v5213_v43  ;;  %v4900_v11 = vor.u32 %v6980_v0, %v4899_v63  ;;  %v6972_v15 = vld [vmem:[#allocation2 + $0x174] sm:$0xf0] }
  0xe2   :  { %1940 = vmatpush.bf16.msrb.mxu3 %v5568_v8  ;;  %1915 = vmatpush.bf16.msrb.mxu1 %v5024_v17  ;;  %v5469_v45 = vld [vmem:[#allocation2 + $0x630] sm:$0xf0]  ;;  %v7108_v8 = vld [vmem:[#allocation2 + $0x5b4] sm:$0xf0]  ;;  %v5668_v17 = vor.u32 %v7172_v10, %v5667_v9  ;;  %v4868_v23 = vor.u32 %v6972_v15, %v4867_v14 }
  0xe3   :  { %v5472_v58 = vor.u32 %v7119_v44, %v5469_v45  ;;  %v5412_v13 = vor.u32 %v7108_v8, %v5411_v4  ;;  %v7028_v32 = vld [vmem:[#allocation2 + $0x334] sm:$0xf0] }
  0xe4   :  { %1928 = vmatpush.bf16.msrb.mxu2 %v5280_v18  ;;  %1903 = vmatpush.bf16.msrb.mxu0 %v4736_v31  ;;  %v7036_v18 = vld [vmem:[#allocation2 + $0x374] sm:$0xf0]  ;;  %v5092_v40 = vor.u32 %v7028_v32, %v5091_v28 }
  0xe5   :  { %v5124_v25 = vor.u32 %v7036_v18, %v5123_v16  ;;  %v5347_v33 = vld [vmem:[#allocation2 + $0x518] sm:$0xf] }
  0xe6   :  { %1941 = vmatpush.bf16.msrb.mxu3 %v5536_v22  ;;  %1916 = vmatpush.bf16.msrb.mxu1 %v4992_v35  ;;  %v7164_v22 = vld [vmem:[#allocation2 + $0x774] sm:$0xf0] }
  0xe7   :  { %v5636_v31 = vor.u32 %v7164_v22, %v5635_v21  ;;  %v7092_v34 = vld [vmem:[#allocation2 + $0x534] sm:$0xf0] }
  0xe8   :  { %1929 = vmatpush.bf16.msrb.mxu2 %v5248_v36  ;;  %1904 = vmatpush.bf16.msrb.mxu0 %v4704_v49  ;;  %v5603_v35 = vld [vmem:[#allocation2 + $0x718] sm:$0xf]  ;;  %v1698_v39 = vpop.f32.mrf.mxu0  ;;  %v5348_v41 = vor.u32 %v7092_v34, %v5347_v33 }
  0xe9   :  { %v7156_v36 = vld [vmem:[#allocation2 + $0x734] sm:$0xf0] }
  0xea   :  { %1942 = vmatpush.bf16.msrb.mxu3 %v5504_v42  ;;  %1917 = vmatpush.bf16.msrb.mxu1 %v4960_v53  ;;  %v1699_v42 = vadd.f32 %v1698_v39, %v342_v30  ;;  %v1711_v43 = vpop.f32.mrf.mxu1  ;;  %v4803_v44 = vld [vmem:[#allocation2 + $0xd8] sm:$0xf]  ;;  %v5604_v47 = vor.u32 %v7156_v36, %v5603_v35 }
  0xeb   :  { %1905 = vmatmul.bf16.vlgmr.msrb.gmra.mxu0 %v7628_v5  ;;  %v6956_v45 = vld [vmem:[#allocation2 + $0xf4] sm:$0xf0] }
  0xec   :  { %1930 = vmatpush.bf16.msrb.mxu2 %v5216_v54  ;;  %1949 = vmatpush.bf16.msra.mxu0 %v4932_v59  ;;  %v5059_v46 = vld [vmem:[#allocation2 + $0x2d8] sm:$0xf]  ;;  %v1712_v51 = vadd.f32 %v1711_v43, %v1699_v42  ;;  %v4804_v54 = vor.u32 %v6956_v45, %v4803_v44  ;;  %v6984_v42 = vld [vmem:[#allocation2 + $0x1dc] sm:$0xf] }
  0xed   :  { %1918 = vmatmul.bf16.vlgmr.msrb.gmra.mxu1 %v7632_v7  ;;  %v7020_v48 = vld [vmem:[#allocation2 + $0x2f4] sm:$0xf0]  ;;  %v4933_v43 = vld [vmem:[#allocation2 + $0x1f8] sm:$0xf0] }
  0xee   :  { %1943 = vmatpush.bf16.msrb.mxu3 %v5472_v58  ;;  %1962 = vmatpush.bf16.msra.mxu1 %v5188_v61  ;;  %v5315_v49 = vld [vmem:[#allocation2 + $0x4d8] sm:$0xf]  ;;  %v5060_v55 = vor.u32 %v7020_v48, %v5059_v46  ;;  %v7048_v44 = vld [vmem:[#allocation2 + $0x3dc] sm:$0xf] }
  0xef   :  { %1931 = vmatmul.bf16.vlgmr.msrb.gmra.mxu2 %v7616_v57  ;;  %v7084_v50 = vld [vmem:[#allocation2 + $0x4f4] sm:$0xf0]  ;;  %v5189_v46 = vld [vmem:[#allocation2 + $0x3f8] sm:$0xf0] }
  0xf0   :  { %1975 = vmatpush.bf16.msra.mxu2 %v5444_v62  ;;  %1950 = vmatpush.bf16.msra.mxu0 %v4900_v11  ;;  %v5571_v52 = vld [vmem:[#allocation2 + $0x6d8] sm:$0xf]  ;;  %v5316_v56 = vor.u32 %v7084_v50, %v5315_v49  ;;  %v5445_v48 = vld [vmem:[#allocation2 + $0x5f8] sm:$0xf0] }
  0xf1   :  { %1944 = vmatmul.bf16.vlgmr.msrb.gmra.mxu3 %v7630_v6  ;;  %v7148_v53 = vld [vmem:[#allocation2 + $0x6f4] sm:$0xf0] }
  0xf2   :  { %1988 = vmatpush.bf16.msra.mxu3 %v5700_v2  ;;  %1963 = vmatpush.bf16.msra.mxu1 %v5156_v12  ;;  %v1724_v58 = vpop.f32.mrf.mxu2  ;;  %v4771_v59 = vld [vmem:[#allocation2 + $0x98] sm:$0xf]  ;;  %v5572_v62 = vor.u32 %v7148_v53, %v5571_v52  ;;  %v1700_v12 = vpop.f32.mrf.mxu0  ;;  %v5701_v52 = vld [vmem:[#allocation2 + $0x7f8] sm:$0xf0] }
  0xf3   :  { %v6948_v60 = vld [vmem:[#allocation2 + $0xb4] sm:$0xf0]  ;;  %v1725_v63 = vadd.f32 %v1724_v58, %v1712_v51  ;;  %v1713_v18 = vpop.f32.mrf.mxu1  ;;  %v7176_v51 = vld [vmem:[#allocation2 + $0x7dc] sm:$0xf] }
  0xf4   :  { %1976 = vmatpush.bf16.msra.mxu2 %v5412_v13  ;;  %1951 = vmatpush.bf16.msra.mxu0 %v4868_v23  ;;  %v5027_v61 = vld [vmem:[#allocation2 + $0x298] sm:$0xf]  ;;  %v1737_v0 = vpop.f32.mrf.mxu3  ;;  %v4772_v10 = vor.u32 %v6948_v60, %v4771_v59  ;;  %v6976_v58 = vld [vmem:[#allocation2 + $0x19c] sm:$0xf] }
  0xf5   :  { %v7012_v1 = vld [vmem:[#allocation2 + $0x2b4] sm:$0xf0]  ;;  %v1738_v9 = vadd.f32 %v1737_v0, %v1725_v63  ;;  %v4901_v59 = vld [vmem:[#allocation2 + $0x1b8] sm:$0xf0] }
  0xf6   :  { %1989 = vmatpush.bf16.msra.mxu3 %v5668_v17  ;;  %1964 = vmatpush.bf16.msra.mxu1 %v5124_v25  ;;  %v5283_v2 = vld [vmem:[#allocation2 + $0x498] sm:$0xf]  ;;  %v5028_v13 = vor.u32 %v7012_v1, %v5027_v61  ;;  %v7040_v60 = vld [vmem:[#allocation2 + $0x39c] sm:$0xf]  ;;  %v5704_v61 = vor.u32 %v7176_v51, %v5701_v52 }
  0xf7   :  { %v7076_v3 = vld [vmem:[#allocation2 + $0x4b4] sm:$0xf0]  ;;  %v2054_v20 = vmax.f32 %v1738_v9, 0.0  ;;  %v7104_v63 = vld [vmem:[#allocation2 + $0x59c] sm:$0xf] }
  0xf8   :  { %1977 = vmatpush.bf16.msra.mxu2 %v5380_v26  ;;  %1952 = vmatpush.bf16.msra.mxu0 %v4836_v37  ;;  %v5539_v4 = vld [vmem:[#allocation2 + $0x698] sm:$0xf]  ;;  %v5284_v14 = vor.u32 %v7076_v3, %v5283_v2  ;;  %v5413_v0 = vld [vmem:[#allocation2 + $0x5b8] sm:$0xf0]  ;;  %v4904_v3 = vor.u32 %v6976_v58, %v4901_v59 }
  0xf9   :  { %v7140_v8 = vld [vmem:[#allocation2 + $0x6b4] sm:$0xf0]  ;;  %v7667_v26 = vpack.c.bf16 %v2054_v20, %v2053_v19  ;;  %v7168_v1 = vld [vmem:[#allocation2 + $0x79c] sm:$0xf] }
  0xfa   :  { %1990 = vmatpush.bf16.msra.mxu3 %v5636_v31  ;;  %1965 = vmatpush.bf16.msra.mxu1 %v5092_v40  ;;  %v4739_v11 = vld [vmem:[#allocation2 + $0x58] sm:$0xf]  ;;  %v5540_v21 = vor.u32 %v7140_v8, %v5539_v4  ;;  %v1726_v35 = vpop.f32.mrf.mxu2  ;;  %v5669_v2 = vld [vmem:[#allocation2 + $0x7b8] sm:$0xf0]  ;;  %v5416_v8 = vor.u32 %v7104_v63, %v5413_v0 }
  0xfb   :  { %v6940_v15 = vld [vmem:[#allocation2 + $0x74] sm:$0xf0]  ;;  %v6968_v9 = vld [vmem:[#allocation2 + $0x15c] sm:$0xf]  ;;  %v5672_v12 = vor.u32 %v7168_v1, %v5669_v2 }
  0xfc   :  { %1978 = vmatpush.bf16.msra.mxu2 %v5348_v41  ;;  %1953 = vmatpush.bf16.msra.mxu0 %v4804_v54  ;;  %v4995_v16 = vld [vmem:[#allocation2 + $0x258] sm:$0xf]  ;;  %v4740_v27 = vor.u32 %v6940_v15, %v4739_v11  ;;  %v1739_v41 = vpop.f32.mrf.mxu3  ;;  %v4936_v54 = vor.u32 %v6984_v42, %v4933_v43  ;;  %v7032_v11 = vld [vmem:[#allocation2 + $0x35c] sm:$0xf] }
  0xfd   :  { %v7004_v17 = vld [vmem:[#allocation2 + $0x274] sm:$0xf0]  ;;  %v5381_v15 = vld [vmem:[#allocation2 + $0x578] sm:$0xf0] }
  0xfe   :  { %1991 = vmatpush.bf16.msra.mxu3 %v5604_v47  ;;  %1966 = vmatpush.bf16.msra.mxu1 %v5060_v55  ;;  %v5251_v22 = vld [vmem:[#allocation2 + $0x458] sm:$0xf]  ;;  %v4996_v31 = vor.u32 %v7004_v17, %v4995_v16  ;;  %v7112_v47 = vld [vmem:[#allocation2 + $0x5dc] sm:$0xf]  ;;  %v5192_v55 = vor.u32 %v7048_v44, %v5189_v46 }
  0xff   :  { %v7068_v23 = vld [vmem:[#allocation2 + $0x474] sm:$0xf0]  ;;  %v7160_v16 = vld [vmem:[#allocation2 + $0x75c] sm:$0xf] }
 0x100   :  { %1979 = vmatpush.bf16.msra.mxu2 %v5316_v56  ;;  %v5507_v24 = vld [vmem:[#allocation2 + $0x658] sm:$0xf]  ;;  %1954 = vmatpush.bf16.msra.mxu0 %v4772_v10  ;;  %v5252_v32 = vor.u32 %v7068_v23, %v5251_v22  ;;  %v5448_v56 = vor.u32 %v7112_v47, %v5445_v48  ;;  %v4869_v10 = vld [vmem:[#allocation2 + $0x178] sm:$0xf0] }
 0x101   :  { %v7132_v25 = vld [vmem:[#allocation2 + $0x674] sm:$0xf0]  ;;  %v5637_v17 = vld [vmem:[#allocation2 + $0x778] sm:$0xf0]  ;;  %v4872_v18 = vor.u32 %v6968_v9, %v4869_v10 }
 0x102   :  { %1992 = vmatpush.bf16.msra.mxu3 %v5572_v62  ;;  %v4707_v28 = vld [vmem:[#allocation2 + $0x18] sm:$0xf]  ;;  %1967 = vmatpush.bf16.msra.mxu1 %v5028_v13  ;;  %v5508_v36 = vor.u32 %v7132_v25, %v5507_v24  ;;  %v5157_v62 = vld [vmem:[#allocation2 + $0x3b8] sm:$0xf0]  ;;  %v343_v24 = vperm.slane %v7656_v38, 2  ;;  %v5640_v25 = vor.u32 %v7160_v16, %v5637_v17 }
 0x103   :  { %v6932_v30 = vld [vmem:[#allocation2 + $0x34] sm:$0xf0]  ;;  %v5160_v4 = vor.u32 %v7040_v60, %v5157_v62  ;;  %v5125_v13 = vld [vmem:[#allocation2 + $0x378] sm:$0xf0] }
 0x104   :  { %1980 = vmatpush.bf16.msra.mxu2 %v5284_v14  ;;  %v4963_v33 = vld [vmem:[#allocation2 + $0x218] sm:$0xf]  ;;  %1955 = vmatpush.bf16.msra.mxu0 %v4740_v27  ;;  %v4708_v45 = vor.u32 %v6932_v30, %v4707_v28  ;;  %v7096_v14 = vld [vmem:[#allocation2 + $0x55c] sm:$0xf]  ;;  %v5128_v20 = vor.u32 %v7032_v11, %v5125_v13 }
 0x105   :  { %v6996_v34 = vld [vmem:[#allocation2 + $0x234] sm:$0xf0]  ;;  %v6960_v19 = vld [vmem:[#allocation2 + $0x11c] sm:$0xf] }
 0x106   :  { %v5219_v29 = vld [vmem:[#allocation2 + $0x418] sm:$0xf]  ;;  %1993 = vmatpush.bf16.msra.mxu3 %v5540_v21  ;;  %1968 = vmatpush.bf16.msra.mxu1 %v4996_v31  ;;  %v4964_v49 = vor.u32 %v6996_v34, %v4963_v33  ;;  %v5384_v21 = vor.u32 %v7096_v14, %v5381_v15  ;;  %v4837_v22 = vld [vmem:[#allocation2 + $0x138] sm:$0xf0] }
 0x107   :  { %v7060_v37 = vld [vmem:[#allocation2 + $0x434] sm:$0xf0]  ;;  %v7024_v23 = vld [vmem:[#allocation2 + $0x31c] sm:$0xf]  ;;  %v4840_v33 = vor.u32 %v6960_v19, %v4837_v22 }
 0x108   :  { %v5475_v39 = vld [vmem:[#allocation2 + $0x618] sm:$0xf]  ;;  %1981 = vmatpush.bf16.msra.mxu2 %v5252_v32  ;;  %v5220_v50 = vor.u32 %v7060_v37, %v5219_v29  ;;  %1956 = vmatpush.bf16.msra.mxu0 %v4708_v45  ;;  %v5093_v27 = vld [vmem:[#allocation2 + $0x338] sm:$0xf0]  ;;  %v1750_v34 = vpop.f32.mrf.mxu0 }
 0x109   :  { %v7124_v40 = vld [vmem:[#allocation2 + $0x634] sm:$0xf0]  ;;  %v7088_v28 = vld [vmem:[#allocation2 + $0x51c] sm:$0xf]  ;;  %v5096_v29 = vor.u32 %v7024_v23, %v5093_v27 }
 0x10a   :  { %1994 = vmatpush.bf16.msra.mxu3 %v5508_v36  ;;  %v5476_v53 = vor.u32 %v7124_v40, %v5475_v39  ;;  %1969 = vmatpush.bf16.msra.mxu1 %v4964_v49  ;;  %v5349_v30 = vld [vmem:[#allocation2 + $0x538] sm:$0xf0]  ;;  %v1751_v40 = vadd.f32 %v1750_v34, %v343_v24  ;;  %v1763_v41 = vpop.f32.mrf.mxu1 }
 0x10b   :  { %1957 = vmatmul.bf16.vlgmr.msra.gmra.mxu0 %v7628_v5  ;;  %v7152_v31 = vld [vmem:[#allocation2 + $0x71c] sm:$0xf]  ;;  %v5352_v35 = vor.u32 %v7088_v28, %v5349_v30 }
 0x10c   :  { %1982 = vmatpush.bf16.msra.mxu2 %v5220_v50  ;;  %2001 = vmatpush.bf16.msrb.mxu0 %v4936_v54  ;;  %v5605_v32 = vld [vmem:[#allocation2 + $0x738] sm:$0xf0]  ;;  %v1764_v48 = vadd.f32 %v1763_v41, %v1751_v40  ;;  %v5891_v40 = vld [vmem:[%s8413_s4 + $0x170] sm:$0xf]  ;;  %v7228_v41 = vld [vmem:[%s8413_s4 + $0x174] sm:$0xf0] }
 0x10d   :  { %1970 = vmatmul.bf16.vlgmr.msra.gmra.mxu1 %v7632_v7  ;;  %v6952_v36 = vld [vmem:[#allocation2 + $0xdc] sm:$0xf]  ;;  %v5608_v42 = vor.u32 %v7152_v31, %v5605_v32 }
 0x10e   :  { %1995 = vmatpush.bf16.msra.mxu3 %v5476_v53  ;;  %2014 = vmatpush.bf16.msrb.mxu1 %v5192_v55  ;;  %v4805_v37 = vld [vmem:[#allocation2 + $0xf8] sm:$0xf0] }
 0x10f   :  { %1983 = vmatmul.bf16.vlgmr.msra.gmra.mxu2 %v7616_v57  ;;  %v7016_v39 = vld [vmem:[#allocation2 + $0x2dc] sm:$0xf]  ;;  %v4808_v49 = vor.u32 %v6952_v36, %v4805_v37  ;;  %v5827_v36 = vld [vmem:[%s8413_s4 + $0xf0] sm:$0xf] }
 0x110   :  { %2027 = vmatpush.bf16.msrb.mxu2 %v5448_v56  ;;  %2002 = vmatpush.bf16.msrb.mxu0 %v4904_v3  ;;  %v5061_v43 = vld [vmem:[#allocation2 + $0x2f8] sm:$0xf0]  ;;  %v1752_v3 = vpop.f32.mrf.mxu0 }
 0x111   :  { %1996 = vmatmul.bf16.vlgmr.msra.gmra.mxu3 %v7630_v6  ;;  %v7080_v44 = vld [vmem:[#allocation2 + $0x4dc] sm:$0xf]  ;;  %v5064_v50 = vor.u32 %v7016_v39, %v5061_v43  ;;  %v7212_v39 = vld [vmem:[%s8413_s4 + $0xf4] sm:$0xf0] }
 0x112   :  { %2040 = vmatpush.bf16.msrb.mxu3 %v5704_v61  ;;  %2015 = vmatpush.bf16.msrb.mxu1 %v5160_v4  ;;  %v5317_v45 = vld [vmem:[#allocation2 + $0x4f8] sm:$0xf0]  ;;  %v1776_v55 = vpop.f32.mrf.mxu2 }
 0x113   :  { %v7144_v46 = vld [vmem:[#allocation2 + $0x6dc] sm:$0xf]  ;;  %v5320_v51 = vor.u32 %v7080_v44, %v5317_v45  ;;  %v1777_v61 = vadd.f32 %v1776_v55, %v1764_v48  ;;  %v5955_v44 = vld [vmem:[%s8413_s4 + $0x1f0] sm:$0xf]  ;;  %v7244_v45 = vld [vmem:[%s8413_s4 + $0x1f4] sm:$0xf0]  ;;  %v5828_v48 = vor.u32 %v7212_v39, %v5827_v36 }
 0x114   :  { %2028 = vmatpush.bf16.msrb.mxu2 %v5416_v8  ;;  %2003 = vmatpush.bf16.msrb.mxu0 %v4872_v18  ;;  %v5573_v47 = vld [vmem:[#allocation2 + $0x6f8] sm:$0xf0]  ;;  %v1789_v62 = vpop.f32.mrf.mxu3  ;;  %v5883_v55 = vld [vmem:[%s8413_s4 + $0x160] sm:$0xf]  ;;  %v7236_v36 = vld [vmem:[%s8413_s4 + $0x1b4] sm:$0xf0] }
 0x115   :  { %v6944_v52 = vld [vmem:[#allocation2 + $0x9c] sm:$0xf]  ;;  %v5576_v56 = vor.u32 %v7144_v46, %v5573_v47  ;;  %v7674_v2 = vadd.f32 %v1789_v62, %v1777_v61 }
 0x116   :  { %2041 = vmatpush.bf16.msrb.mxu3 %v5672_v12  ;;  %2016 = vmatpush.bf16.msrb.mxu1 %v5128_v20  ;;  %v4773_v53 = vld [vmem:[#allocation2 + $0xb8] sm:$0xf0]  ;;  %v1765_v12 = vpop.f32.mrf.mxu1 }
 0x117   :  { %v7008_v54 = vld [vmem:[#allocation2 + $0x29c] sm:$0xf]  ;;  %v4776_v1 = vor.u32 %v6944_v52, %v4773_v53  ;;  %v5819_v52 = vld [vmem:[%s8413_s4 + $0xe0] sm:$0xf]  ;;  %v5956_v53 = vor.u32 %v7244_v45, %v5955_v44 }
 0x118   :  { %2029 = vmatpush.bf16.msrb.mxu2 %v5384_v21  ;;  %2004 = vmatpush.bf16.msrb.mxu0 %v4840_v33  ;;  %v5029_v58 = vld [vmem:[#allocation2 + $0x2b8] sm:$0xf0]  ;;  %v5739_v12 = vld [vmem:[%s8413_s4 + $0x40] sm:$0xf] }
 0x119   :  { %v7072_v59 = vld [vmem:[#allocation2 + $0x49c] sm:$0xf]  ;;  %v5032_v4 = vor.u32 %v7008_v54, %v5029_v58  ;;  %v7210_v54 = vld [vmem:[%s8413_s4 + $0xe4] sm:$0xf0]  ;;  %v5947_v58 = vld [vmem:[%s8413_s4 + $0x1e0] sm:$0xf] }
 0x11a   :  { %2042 = vmatpush.bf16.msrb.mxu3 %v5640_v25  ;;  %2017 = vmatpush.bf16.msrb.mxu1 %v5096_v29  ;;  %v5285_v60 = vld [vmem:[#allocation2 + $0x4b8] sm:$0xf0]  ;;  %v1778_v28 = vpop.f32.mrf.mxu2  ;;  %v5763_v29 = vld [vmem:[%s8413_s4 + $0x70] sm:$0xf]  ;;  %v5820_v61 = vor.u32 %v7210_v54, %v5819_v52  ;;  %v5787_v44 = vld [vmem:[%s8413_s4 + $0xa0] sm:$0xf] }
 0x11b   :  { %v7136_v63 = vld [vmem:[#allocation2 + $0x69c] sm:$0xf]  ;;  %v5288_v8 = vor.u32 %v7072_v59, %v5285_v60  ;;  %v7242_v59 = vld [vmem:[%s8413_s4 + $0x1e4] sm:$0xf0]  ;;  %v7188_v28 = vld [vmem:[%s8413_s4 + $0x34] sm:$0xf0] }
 0x11c   :  { %2030 = vmatpush.bf16.msrb.mxu2 %v5352_v35  ;;  %v5541_v0 = vld [vmem:[#allocation2 + $0x6b8] sm:$0xf0]  ;;  %2005 = vmatpush.bf16.msrb.mxu0 %v4808_v49  ;;  %v1791_v34 = vpop.f32.mrf.mxu3  ;;  %v7196_v35 = vld [vmem:[%s8413_s4 + $0x74] sm:$0xf0]  ;;  %v5892_v49 = vor.u32 %v7228_v41, %v5891_v40  ;;  %v5948_v3 = vor.u32 %v7242_v59, %v5947_v58  ;;  %v7234_v52 = vld [vmem:[%s8413_s4 + $0x1a4] sm:$0xf0] }
 0x11d   :  { %v6936_v9 = vld [vmem:[#allocation2 + $0x5c] sm:$0xf]  ;;  %v5544_v13 = vor.u32 %v7136_v63, %v5541_v0  ;;  %v5764_v47 = vor.u32 %v7196_v35, %v5763_v29  ;;  %v5747_v63 = vld [vmem:[%s8413_s4 + $0x50] sm:$0xf]  ;;  %v7192_v0 = vld [vmem:[%s8413_s4 + $0x54] sm:$0xf0] }
 0x11e   :  { %2043 = vmatpush.bf16.msrb.mxu3 %v5608_v42  ;;  %2018 = vmatpush.bf16.msrb.mxu1 %v5064_v50  ;;  %v4741_v10 = vld [vmem:[#allocation2 + $0x78] sm:$0xf0]  ;;  %v5755_v50 = vld [vmem:[%s8413_s4 + $0x60] sm:$0xf]  ;;  %v7220_v34 = vld [vmem:[%s8413_s4 + $0x134] sm:$0xf0] }
 0x11f   :  { %v7000_v11 = vld [vmem:[#allocation2 + $0x25c] sm:$0xf]  ;;  %v4744_v19 = vor.u32 %v6936_v9, %v4741_v10  ;;  %v7224_v9 = vld [vmem:[%s8413_s4 + $0x154] sm:$0xf0]  ;;  %v5923_v35 = vld [vmem:[%s8413_s4 + $0x1b0] sm:$0xf] }
 0x120   :  { %2031 = vmatpush.bf16.msrb.mxu2 %v5320_v51  ;;  %v4997_v14 = vld [vmem:[#allocation2 + $0x278] sm:$0xf0]  ;;  %2006 = vmatpush.bf16.msrb.mxu0 %v4776_v1  ;;  %v7194_v51 = vld [vmem:[%s8413_s4 + $0x64] sm:$0xf0]  ;;  %v5811_v1 = vld [vmem:[%s8413_s4 + $0xd0] sm:$0xf]  ;;  %v5924_v45 = vor.u32 %v7236_v36, %v5923_v35 }
 0x121   :  { %v7064_v15 = vld [vmem:[#allocation2 + $0x45c] sm:$0xf]  ;;  %v5000_v22 = vor.u32 %v7000_v11, %v4997_v14  ;;  %v5756_v60 = vor.u32 %v7194_v51, %v5755_v50  ;;  %v7240_v10 = vld [vmem:[%s8413_s4 + $0x1d4] sm:$0xf0]  ;;  %v5748_v11 = vor.u32 %v7192_v0, %v5747_v63  ;;  %v5803_v14 = vld [vmem:[%s8413_s4 + $0xc0] sm:$0xf] }
 0x122   :  { %2044 = vmatpush.bf16.msrb.mxu3 %v5576_v56  ;;  %v5253_v16 = vld [vmem:[#allocation2 + $0x478] sm:$0xf0]  ;;  %2019 = vmatpush.bf16.msrb.mxu1 %v5032_v4  ;;  %v7226_v56 = vld [vmem:[%s8413_s4 + $0x164] sm:$0xf0]  ;;  %v7208_v4 = vld [vmem:[%s8413_s4 + $0xd4] sm:$0xf0] }
 0x123   :  { %v7128_v17 = vld [vmem:[#allocation2 + $0x65c] sm:$0xf]  ;;  %v5256_v23 = vor.u32 %v7064_v15, %v5253_v16  ;;  %v5884_v62 = vor.u32 %v7226_v56, %v5883_v55  ;;  %v344_v15 = vperm.slane %v7656_v38, 3  ;;  %v7206_v16 = vld [vmem:[%s8413_s4 + $0xc4] sm:$0xf0]  ;;  %v2055_v0 = vmax.f32 %v7674_v2, 0.0 }
 0x124   :  { %v5509_v18 = vld [vmem:[#allocation2 + $0x678] sm:$0xf0]  ;;  %2032 = vmatpush.bf16.msrb.mxu2 %v5288_v8  ;;  %2007 = vmatpush.bf16.msrb.mxu0 %v4744_v19  ;;  %v5875_v8 = vld [vmem:[%s8413_s4 + $0x150] sm:$0xf]  ;;  %v5931_v19 = vld [vmem:[%s8413_s4 + $0x1c0] sm:$0xf] }
 0x125   :  { %v6928_v20 = vld [vmem:[#allocation2 + $0x1c] sm:$0xf]  ;;  %v5512_v30 = vor.u32 %v7128_v17, %v5509_v18  ;;  %v5867_v17 = vld [vmem:[%s8413_s4 + $0x140] sm:$0xf]  ;;  %v7222_v18 = vld [vmem:[%s8413_s4 + $0x144] sm:$0xf0] }
 0x126   :  { %v4709_v21 = vld [vmem:[#allocation2 + $0x38] sm:$0xf0]  ;;  %2045 = vmatpush.bf16.msrb.mxu3 %v5544_v13  ;;  %2020 = vmatpush.bf16.msrb.mxu1 %v5000_v22  ;;  %v7190_v13 = vld [vmem:[%s8413_s4 + $0x44] sm:$0xf0]  ;;  %v5804_v22 = vor.u32 %v7206_v16, %v5803_v14  ;;  %v5915_v51 = vld [vmem:[%s8413_s4 + $0x1a0] sm:$0xf] }
 0x127   :  { %v6992_v24 = vld [vmem:[#allocation2 + $0x21c] sm:$0xf]  ;;  %v4712_v37 = vor.u32 %v6928_v20, %v4709_v21  ;;  %v7238_v38 = vld [vmem:[%s8413_s4 + $0x1c4] sm:$0xf0]  ;;  %v5740_v20 = vor.u32 %v7190_v13, %v5739_v12  ;;  %v5715_v55 = vld [vmem:[%s8413_s4 + $0x10] sm:$0xf] }
 0x128   :  { %v4965_v25 = vld [vmem:[#allocation2 + $0x238] sm:$0xf0]  ;;  %2033 = vmatpush.bf16.msrb.mxu2 %v5256_v23  ;;  %v1802_v21 = vpop.f32.mrf.mxu0  ;;  %v5868_v23 = vor.u32 %v7222_v18, %v5867_v17  ;;  %v7218_v50 = vld [vmem:[%s8413_s4 + $0x124] sm:$0xf0]  ;;  %v5771_v13 = vld [vmem:[%s8413_s4 + $0x80] sm:$0xf] }
 0x129   :  { %v7056_v27 = vld [vmem:[#allocation2 + $0x41c] sm:$0xf]  ;;  %v4968_v42 = vor.u32 %v6992_v24, %v4965_v25  ;;  %2008 = vmatpush.bf16.msrb.mxu0 %v4712_v37  ;;  %v1803_v24 = vadd.f32 %v1802_v21, %v344_v15  ;;  %v7182_v12 = vld [vmem:[%s8413_s4 + $0x4] sm:$0xf0]  ;;  %v5835_v15 = vld [vmem:[%s8413_s4 + $0x100] sm:$0xf] }
 0x12a   :  { %v5221_v31 = vld [vmem:[#allocation2 + $0x438] sm:$0xf0]  ;;  %2046 = vmatpush.bf16.msrb.mxu3 %v5512_v30  ;;  %v1815_v25 = vpop.f32.mrf.mxu1  ;;  %v5795_v30 = vld [vmem:[%s8413_s4 + $0xb0] sm:$0xf]  ;;  %v7198_v14 = vld [vmem:[%s8413_s4 + $0x84] sm:$0xf0] }
 0x12b   :  { %v7120_v32 = vld [vmem:[#allocation2 + $0x61c] sm:$0xf]  ;;  %v5224_v43 = vor.u32 %v7056_v27, %v5221_v31  ;;  %2021 = vmatpush.bf16.msrb.mxu1 %v4968_v42  ;;  %v5731_v27 = vld [vmem:[%s8413_s4 + $0x30] sm:$0xf]  ;;  %v5932_v31 = vor.u32 %v7238_v38, %v5931_v19  ;;  %v1816_v29 = vadd.f32 %v1815_v25, %v1803_v24  ;;  %v5723_v42 = vld [vmem:[%s8413_s4 + $0x20] sm:$0xf] }
 0x12c   :  { %v5477_v33 = vld [vmem:[#allocation2 + $0x638] sm:$0xf0]  ;;  %2009 = vmatmul.bf16.vlgmr.msrb.gmra.mxu0 %v7628_v5  ;;  %v5812_v5 = vor.u32 %v7208_v4, %v5811_v1  ;;  %v5732_v37 = vor.u32 %v7188_v28, %v5731_v27  ;;  %v5843_v4 = vld [vmem:[%s8413_s4 + $0x110] sm:$0xf]  ;;  %v7214_v17 = vld [vmem:[%s8413_s4 + $0x104] sm:$0xf0]  ;;  %v5772_v28 = vor.u32 %v7198_v14, %v5771_v13 }
 0x12d   :  { %v5480_v46 = vor.u32 %v7120_v32, %v5477_v33  ;;  %2034 = vmatpush.bf16.msrb.mxu2 %v5224_v43  ;;  %2455 = vmatpush.bf16.msra.mxu0 %v5764_v47  ;;  %v7204_v32 = vld [vmem:[%s8413_s4 + $0xb4] sm:$0xf0]  ;;  %v5859_v33 = vld [vmem:[%s8413_s4 + $0x130] sm:$0xf]  ;;  %v7186_v43 = vld [vmem:[%s8413_s4 + $0x24] sm:$0xf0] }
 0x12e   :  { %2022 = vmatmul.bf16.vlgmr.msrb.gmra.mxu1 %v7632_v7  ;;  %v5796_v39 = vor.u32 %v7204_v32, %v5795_v30  ;;  %v5860_v40 = vor.u32 %v7220_v34, %v5859_v33  ;;  %v5724_v54 = vor.u32 %v7186_v43, %v5723_v42  ;;  %v5899_v18 = vld [vmem:[%s8413_s4 + $0x180] sm:$0xf]  ;;  %v7230_v19 = vld [vmem:[%s8413_s4 + $0x184] sm:$0xf0]  ;;  %v5765_v21 = vld [vmem:[%s8413_s4 + $0x78] sm:$0xf0]  ;;  %v5836_v30 = vor.u32 %v7214_v17, %v5835_v15 }
 0x12f   :  { %2047 = vmatpush.bf16.msrb.mxu3 %v5480_v46  ;;  %2468 = vmatpush.bf16.msra.mxu1 %v5828_v48  ;;  %v7202_v48 = vld [vmem:[%s8413_s4 + $0xa4] sm:$0xf0]  ;;  %v5829_v24 = vld [vmem:[%s8413_s4 + $0xf8] sm:$0xf0]  ;;  %v7227_v25 = vld [vmem:[%s8413_s4 + $0x174] sm:$0xf]  ;;  %v5900_v34 = vor.u32 %v7230_v19, %v5899_v18 }
 0x130   :  { %2035 = vmatmul.bf16.vlgmr.msrb.gmra.mxu2 %v7616_v57  ;;  %v5939_v57 = vld [vmem:[%s8413_s4 + $0x1d0] sm:$0xf]  ;;  %v1804_v56 = vpop.f32.mrf.mxu0  ;;  %v5788_v58 = vor.u32 %v7202_v48, %v5787_v44  ;;  %v5893_v27 = vld [vmem:[%s8413_s4 + $0x178] sm:$0xf0]  ;;  %v7193_v35 = vld [vmem:[%s8413_s4 + $0x64] sm:$0xf] }
 0x131   :  { %2481 = vmatpush.bf16.msra.mxu2 %v5892_v49  ;;  %2456 = vmatpush.bf16.msra.mxu0 %v5756_v60  ;;  %v5940_v7 = vor.u32 %v7240_v10, %v5939_v57  ;;  %v5851_v49 = vld [vmem:[%s8413_s4 + $0x120] sm:$0xf]  ;;  %v7184_v60 = vld [vmem:[%s8413_s4 + $0x14] sm:$0xf0]  ;;  %v5957_v32 = vld [vmem:[%s8413_s4 + $0x1f8] sm:$0xf0] }
 0x132   :  { %2048 = vmatmul.bf16.vlgmr.msrb.gmra.mxu3 %v7630_v6  ;;  %v5876_v6 = vor.u32 %v7224_v9, %v5875_v8  ;;  %v1828_v41 = vpop.f32.mrf.mxu2  ;;  %v5852_v59 = vor.u32 %v7218_v50, %v5851_v49  ;;  %v1817_v63 = vpop.f32.mrf.mxu1  ;;  %v7216_v8 = vld [vmem:[%s8413_s4 + $0x114] sm:$0xf0]  ;;  %v5907_v9 = vld [vmem:[%s8413_s4 + $0x190] sm:$0xf]  ;;  %v5716_v10 = vor.u32 %v7184_v60, %v5715_v55  ;;  %v75_v36 = vld [vmem:[%s8410_s1] sm:$0xff] }
 0x133   :  { %2494 = vmatpush.bf16.msra.mxu3 %v5956_v53  ;;  %2469 = vmatpush.bf16.msra.mxu1 %v5820_v61  ;;  %v1829_v46 = vadd.f32 %v1828_v41, %v1816_v29  ;;  %v5779_v61 = vld [vmem:[%s8413_s4 + $0x90] sm:$0xf]  ;;  %v7232_v57 = vld [vmem:[%s8413_s4 + $0x194] sm:$0xf0]  ;;  %v5757_v41 = vld [vmem:[%s8413_s4 + $0x68] sm:$0xf0] }
 0x134   :  { %v1841_v47 = vpop.f32.mrf.mxu3  ;;  %v5908_v16 = vor.u32 %v7232_v57, %v5907_v9  ;;  %v77_v33 = vld [vmem:[%s8410_s1 + $0x10] sm:$0xff]  ;;  %v7209_v42 = vld [vmem:[%s8413_s4 + $0xe4] sm:$0xf]  ;;  %v76_v43 = vld [vmem:[%s8410_s1 + $0x8] sm:$0xff] }
 0x135   :  { %2482 = vmatpush.bf16.msra.mxu2 %v5884_v62  ;;  %2457 = vmatpush.bf16.msra.mxu0 %v5748_v11  ;;  %v1842_v53 = vadd.f32 %v1841_v47, %v1829_v46  ;;  %v7200_v62 = vld [vmem:[%s8413_s4 + $0x94] sm:$0xf0]  ;;  %v5707_v11 = vld [vmem:[%s8413_s4] sm:$0xf]  ;;  %v7225_v46 = vld [vmem:[%s8413_s4 + $0x164] sm:$0xf]  ;;  %v7930_v48 = vpack.c.bf16 %v77_v33, %v77_v33 }
 0x136   :  { %v5885_v47 = vld [vmem:[%s8413_s4 + $0x168] sm:$0xf0]  ;;  %v7241_v49 = vld [vmem:[%s8413_s4 + $0x1e4] sm:$0xf]  ;;  %v7207_v60 = vld [vmem:[%s8413_s4 + $0xd4] sm:$0xf] }
 0x137   :  { %2495 = vmatpush.bf16.msra.mxu3 %v5948_v3  ;;  %2470 = vmatpush.bf16.msra.mxu1 %v5812_v5  ;;  %v2056_v1 = vmax.f32 %v1842_v53, 0.0  ;;  %v5916_v3 = vor.u32 %v7234_v52, %v5915_v51  ;;  %v5780_v5 = vor.u32 %v7200_v62, %v5779_v61  ;;  %v5949_v50 = vld [vmem:[%s8413_s4 + $0x1e8] sm:$0xf0]  ;;  %v7938_v51 = vpack.c.bf16 %v75_v36, %v75_v36  ;;  %v5813_v62 = vld [vmem:[%s8413_s4 + $0xd8] sm:$0xf0] }
 0x138   :  { %v5760_v53 = vor.u32 %v7193_v35, %v5757_v41  ;;  %v5888_v56 = vor.u32 %v7225_v46, %v5885_v47  ;;  %v5952_v61 = vor.u32 %v7241_v49, %v5949_v50  ;;  %v7223_v63 = vld [vmem:[%s8413_s4 + $0x154] sm:$0xf]  ;;  %v5816_v9 = vor.u32 %v7207_v60, %v5813_v62  ;;  %v5805_v13 = vld [vmem:[%s8413_s4 + $0xc8] sm:$0xf0]  ;;  %v7221_v14 = vld [vmem:[%s8413_s4 + $0x144] sm:$0xf] }
 0x139   :  { %2483 = vmatpush.bf16.msra.mxu2 %v5876_v6  ;;  %2458 = vmatpush.bf16.msra.mxu0 %v5740_v20  ;;  %v7850_v2 = vpack.c.bf16 %v2056_v1, %v2055_v0  ;;  %v5844_v6 = vor.u32 %v7216_v8, %v5843_v4  ;;  %v7195_v20 = vld [vmem:[%s8413_s4 + $0x74] sm:$0xf]  ;;  %v5877_v0 = vld [vmem:[%s8413_s4 + $0x158] sm:$0xf0]  ;;  %v7189_v8 = vld [vmem:[%s8413_s4 + $0x44] sm:$0xf] }
 0x13a   :  { %v5768_v29 = vor.u32 %v7195_v20, %v5765_v21  ;;  %v7239_v1 = vld [vmem:[%s8413_s4 + $0x1d4] sm:$0xf]  ;;  %v5880_v57 = vor.u32 %v7223_v63, %v5877_v0  ;;  %v5869_v15 = vld [vmem:[%s8413_s4 + $0x148] sm:$0xf0]  ;;  %v5733_v21 = vld [vmem:[%s8413_s4 + $0x38] sm:$0xf0] }
 0x13b   :  { %2496 = vmatpush.bf16.msra.mxu3 %v5940_v7  ;;  %2471 = vmatpush.bf16.msra.mxu1 %v5804_v22  ;;  %v1830_v7 = vpop.f32.mrf.mxu2  ;;  %v7211_v22 = vld [vmem:[%s8413_s4 + $0xf4] sm:$0xf]  ;;  %v7185_v36 = vld [vmem:[%s8413_s4 + $0x24] sm:$0xf]  ;;  %v5917_v49 = vld [vmem:[%s8413_s4 + $0x1a8] sm:$0xf0] }
 0x13c   :  { %v1843_v38 = vpop.f32.mrf.mxu3  ;;  %v7237_v7 = vld [vmem:[%s8413_s4 + $0x1c4] sm:$0xf]  ;;  %v7187_v20 = vld [vmem:[%s8413_s4 + $0x34] sm:$0xf]  ;;  %v5717_v60 = vld [vmem:[%s8413_s4 + $0x18] sm:$0xf0] }
 0x13d   :  { %2484 = vmatpush.bf16.msra.mxu2 %v5868_v23  ;;  %2459 = vmatpush.bf16.msra.mxu0 %v5732_v37  ;;  %v5708_v23 = vor.u32 %v7182_v12, %v5707_v11  ;;  %v78_v37 = vld [vmem:[%s8410_s1 + $0x18] sm:$0xff]  ;;  %v7205_v11 = vld [vmem:[%s8413_s4 + $0xc4] sm:$0xf]  ;;  %v5872_v38 = vor.u32 %v7221_v14, %v5869_v15 }
 0x13e   :  { %v7940_v52 = vpack.c.bf16 %v78_v37, %v78_v37  ;;  %v7984_v12 = vld [vmem:[%s8412_s3] sm:$0xff]  ;;  %v5808_v19 = vor.u32 %v7205_v11, %v5805_v13  ;;  %v5725_v37 = vld [vmem:[%s8413_s4 + $0x28] sm:$0xf0]  ;;  %v5781_v0 = vld [vmem:[%s8413_s4 + $0x98] sm:$0xf0] }
 0x13f   :  { %2497 = vmatpush.bf16.msra.mxu3 %v5932_v31  ;;  %2472 = vmatpush.bf16.msra.mxu1 %v5796_v39  ;;  %v7243_v31 = vld [vmem:[%s8413_s4 + $0x1f4] sm:$0xf]  ;;  %v5832_v39 = vor.u32 %v7211_v22, %v5829_v24  ;;  %v7233_v47 = vld [vmem:[%s8413_s4 + $0x1a4] sm:$0xf]  ;;  %v5728_v50 = vor.u32 %v7185_v36, %v5725_v37  ;;  %v5773_v13 = vld [vmem:[%s8413_s4 + $0x88] sm:$0xf0] }
 0x140   :  { %v5960_v44 = vor.u32 %v7243_v31, %v5957_v32  ;;  %v7203_v22 = vld [vmem:[%s8413_s4 + $0xb4] sm:$0xf]  ;;  %v5925_v32 = vld [vmem:[%s8413_s4 + $0x1b8] sm:$0xf0]  ;;  %v5920_v63 = vor.u32 %v7233_v47, %v5917_v49  ;;  %v7213_v14 = vld [vmem:[%s8413_s4 + $0x104] sm:$0xf] }
 0x141   :  { %2485 = vmatpush.bf16.msra.mxu2 %v5860_v40  ;;  %2460 = vmatpush.bf16.msra.mxu0 %v5724_v54  ;;  %v5896_v40 = vor.u32 %v7227_v25, %v5893_v27  ;;  %v7942_v54 = vpack.c.bf16 %v76_v43, %v76_v43  ;;  %v5797_v27 = vld [vmem:[%s8413_s4 + $0xb8] sm:$0xf0]  ;;  %v7235_v31 = vld [vmem:[%s8413_s4 + $0x1b4] sm:$0xf]  ;;  %v7217_v43 = vld [vmem:[%s8413_s4 + $0x124] sm:$0xf] }
 0x142   :  { %v5928_v41 = vor.u32 %v7235_v31, %v5925_v32  ;;  %v6085_v31 = vld [vmem:[#allocation4 + $0xf8] sm:$0xf0]  ;;  %v7258_v36 = vld [vmem:[#allocation4 + $0x64] sm:$0xf0]  ;;  %v6075_v37 = vld [vmem:[#allocation4 + $0xe0] sm:$0xf] }
 0x143   :  { %2498 = vmatpush.bf16.msra.mxu3 %v5924_v45  ;;  %2473 = vmatpush.bf16.msra.mxu1 %v5788_v58  ;;  %v5821_v45 = vld [vmem:[%s8413_s4 + $0xe8] sm:$0xf0]  ;;  %v7191_v58 = vld [vmem:[%s8413_s4 + $0x54] sm:$0xf]  ;;  %v6003_v49 = vld [vmem:[#allocation4 + $0x50] sm:$0xf] }
 0x144   :  { %v5824_v55 = vor.u32 %v7209_v42, %v5821_v45  ;;  %v5789_v42 = vld [vmem:[%s8413_s4 + $0xa8] sm:$0xf0] }
 0x145   :  { %2486 = vmatpush.bf16.msra.mxu2 %v5852_v59  ;;  %2461 = vmatpush.bf16.msra.mxu0 %v5716_v10  ;;  %v5749_v59 = vld [vmem:[%s8413_s4 + $0x58] sm:$0xf0]  ;;  %v5741_v10 = vld [vmem:[%s8413_s4 + $0x48] sm:$0xf0] }
 0x146   :  { %v5752_v4 = vor.u32 %v7191_v58, %v5749_v59  ;;  %v5744_v17 = vor.u32 %v7189_v8, %v5741_v10  ;;  %v7183_v59 = vld [vmem:[%s8413_s4 + $0x14] sm:$0xf]  ;;  %v5909_v8 = vld [vmem:[%s8413_s4 + $0x198] sm:$0xf0]  ;;  %v5709_v10 = vld [vmem:[%s8413_s4 + $0x8] sm:$0xf0] }
 0x147   :  { %2499 = vmatpush.bf16.msra.mxu3 %v5916_v3  ;;  %2474 = vmatpush.bf16.msra.mxu1 %v5780_v5  ;;  %v5941_v3 = vld [vmem:[%s8413_s4 + $0x1d8] sm:$0xf0]  ;;  %v345_v5 = vperm.slane %v7984_v12, 4 }
 0x148   :  { %v1854_v18 = vpop.f32.mrf.mxu0 }
 0x149   :  { %2487 = vmatpush.bf16.msra.mxu2 %v5844_v6  ;;  %2462 = vmatpush.bf16.msra.mxu0 %v5708_v23  ;;  %v5944_v6 = vor.u32 %v7239_v1, %v5941_v3  ;;  %v1855_v23 = vadd.f32 %v1854_v18, %v345_v5  ;;  %v7215_v1 = vld [vmem:[%s8413_s4 + $0x114] sm:$0xf]  ;;  %v5845_v3 = vld [vmem:[%s8413_s4 + $0x118] sm:$0xf0]  ;;  %v5901_v18 = vld [vmem:[%s8413_s4 + $0x188] sm:$0xf0] }
 0x14a   :  { %v1867_v24 = vpop.f32.mrf.mxu1  ;;  %v5848_v5 = vor.u32 %v7215_v1, %v5845_v3 }
 0x14b   :  { %2500 = vmatpush.bf16.msra.mxu3 %v5908_v16  ;;  %2475 = vmatpush.bf16.msra.mxu1 %v5772_v28  ;;  %v5933_v16 = vld [vmem:[%s8413_s4 + $0x1c8] sm:$0xf0]  ;;  %v7219_v28 = vld [vmem:[%s8413_s4 + $0x134] sm:$0xf]  ;;  %v1868_v33 = vadd.f32 %v1867_v24, %v1855_v23  ;;  %v7276_v23 = vld [vmem:[#allocation4 + $0xf4] sm:$0xf0] }
 0x14c   :  { %2463 = vmatmul.bf16.vlgmr.msra.gmra.mxu0 %v7938_v51  ;;  %v5936_v25 = vor.u32 %v7237_v7, %v5933_v16  ;;  %v5837_v16 = vld [vmem:[%s8413_s4 + $0x108] sm:$0xf0]  ;;  %v7259_v24 = vld [vmem:[#allocation4 + $0x74] sm:$0xf] }
 0x14d   :  { %2488 = vmatpush.bf16.msra.mxu2 %v5836_v30  ;;  %2507 = vmatpush.bf16.msrb.mxu0 %v5768_v29  ;;  %v5861_v30 = vld [vmem:[%s8413_s4 + $0x138] sm:$0xf0]  ;;  %v5800_v29 = vor.u32 %v7203_v22, %v5797_v27 }
 0x14e   :  { %2476 = vmatmul.bf16.vlgmr.msra.gmra.mxu1 %v7942_v54  ;;  %v5864_v35 = vor.u32 %v7219_v28, %v5861_v30  ;;  %v5840_v28 = vor.u32 %v7213_v14, %v5837_v16  ;;  %v7275_v30 = vld [vmem:[#allocation4 + $0xf4] sm:$0xf]  ;;  %v7252_v16 = vld [vmem:[#allocation4 + $0x34] sm:$0xf0] }
 0x14f   :  { %2501 = vmatpush.bf16.msra.mxu3 %v5900_v34  ;;  %2520 = vmatpush.bf16.msrb.mxu1 %v5832_v39  ;;  %v5736_v34 = vor.u32 %v7187_v20, %v5733_v21  ;;  %v7201_v39 = vld [vmem:[%s8413_s4 + $0xa4] sm:$0xf]  ;;  %v7260_v20 = vld [vmem:[#allocation4 + $0x74] sm:$0xf0]  ;;  %v6083_v21 = vld [vmem:[#allocation4 + $0xf0] sm:$0xf] }
 0x150   :  { %2489 = vmatmul.bf16.vlgmr.msra.gmra.mxu2 %v7930_v48 }
 0x151   :  { %2533 = vmatpush.bf16.msrb.mxu2 %v5896_v40  ;;  %2508 = vmatpush.bf16.msrb.mxu0 %v5760_v53 }
 0x152   :  { %2502 = vmatmul.bf16.vlgmr.msra.gmra.mxu3 %v7940_v52  ;;  %v1880_v40 = vpop.f32.mrf.mxu2  ;;  %v1869_v62 = vpop.f32.mrf.mxu1 }
 0x153   :  { %2546 = vmatpush.bf16.msrb.mxu3 %v5960_v44  ;;  %2521 = vmatpush.bf16.msrb.mxu1 %v5824_v55  ;;  %v5853_v44 = vld [vmem:[%s8413_s4 + $0x128] sm:$0xf0]  ;;  %v1881_v45 = vadd.f32 %v1880_v40, %v1868_v33  ;;  %v1856_v55 = vpop.f32.mrf.mxu0  ;;  %v7274_v40 = vld [vmem:[#allocation4 + $0xe4] sm:$0xf0]  ;;  %v6069_v62 = vld [vmem:[#allocation4 + $0xd8] sm:$0xf0] }
 0x154   :  { %v1893_v46 = vpop.f32.mrf.mxu3  ;;  %v5856_v58 = vor.u32 %v7217_v43, %v5853_v44  ;;  %v7273_v43 = vld [vmem:[#allocation4 + $0xe4] sm:$0xf]  ;;  %v6077_v44 = vld [vmem:[#allocation4 + $0xe8] sm:$0xf0]  ;;  %v6067_v55 = vld [vmem:[#allocation4 + $0xd0] sm:$0xf] }
 0x155   :  { %2534 = vmatpush.bf16.msrb.mxu2 %v5888_v56  ;;  %2509 = vmatpush.bf16.msrb.mxu0 %v5752_v4  ;;  %v8050_v53 = vadd.f32 %v1893_v46, %v1881_v45  ;;  %v5792_v56 = vor.u32 %v7201_v39, %v5789_v42  ;;  %v7231_v4 = vld [vmem:[%s8413_s4 + $0x194] sm:$0xf]  ;;  %v6088_v39 = vor.u32 %v7275_v30, %v6085_v31  ;;  %v6013_v42 = vld [vmem:[#allocation4 + $0x68] sm:$0xf0]  ;;  %v5979_v30 = vld [vmem:[#allocation4 + $0x20] sm:$0xf] }
 0x156   :  { %v5912_v7 = vor.u32 %v7231_v4, %v5909_v8  ;;  %v6076_v46 = vor.u32 %v7274_v40, %v6075_v37  ;;  %v6059_v4 = vld [vmem:[#allocation4 + $0xc0] sm:$0xf]  ;;  %v346_v8 = vperm.slane %v7984_v12, 5  ;;  %v7250_v31 = vld [vmem:[#allocation4 + $0x24] sm:$0xf0] }
 0x157   :  { %2547 = vmatpush.bf16.msrb.mxu3 %v5952_v61  ;;  %2522 = vmatpush.bf16.msrb.mxu1 %v5816_v9  ;;  %v7199_v61 = vld [vmem:[%s8413_s4 + $0x94] sm:$0xf]  ;;  %v5720_v9 = vor.u32 %v7183_v59, %v5717_v60  ;;  %v6005_v60 = vld [vmem:[#allocation4 + $0x58] sm:$0xf0]  ;;  %v5981_v37 = vld [vmem:[#allocation4 + $0x28] sm:$0xf0] }
 0x158   :  { %v5784_v11 = vor.u32 %v7199_v61, %v5781_v0  ;;  %v7255_v59 = vld [vmem:[#allocation4 + $0x54] sm:$0xf]  ;;  %v5995_v0 = vld [vmem:[#allocation4 + $0x40] sm:$0xf]  ;;  %v6045_v40 = vld [vmem:[#allocation4 + $0xa8] sm:$0xf0] }
 0x159   :  { %2535 = vmatpush.bf16.msrb.mxu2 %v5880_v57  ;;  %2510 = vmatpush.bf16.msrb.mxu0 %v5744_v17  ;;  %v7181_v57 = vld [vmem:[%s8413_s4 + $0x4] sm:$0xf]  ;;  %v7271_v61 = vld [vmem:[#allocation4 + $0xd4] sm:$0xf]  ;;  %v6008_v3 = vor.u32 %v7255_v59, %v6005_v60 }
 0x15a   :  { %v1882_v15 = vpop.f32.mrf.mxu2  ;;  %v7229_v17 = vld [vmem:[%s8413_s4 + $0x184] sm:$0xf]  ;;  %v5712_v22 = vor.u32 %v7181_v57, %v5709_v10  ;;  %v7247_v60 = vld [vmem:[#allocation4 + $0x14] sm:$0xf] }
 0x15b   :  { %2548 = vmatpush.bf16.msrb.mxu3 %v5944_v6  ;;  %2523 = vmatpush.bf16.msrb.mxu1 %v5808_v19  ;;  %v7197_v6 = vld [vmem:[%s8413_s4 + $0x84] sm:$0xf]  ;;  %v5904_v32 = vor.u32 %v7229_v17, %v5901_v18  ;;  %v6051_v17 = vld [vmem:[#allocation4 + $0xb0] sm:$0xf] }
 0x15c   :  { %v1895_v19 = vpop.f32.mrf.mxu3  ;;  %v5776_v27 = vor.u32 %v7197_v6, %v5773_v13  ;;  %v7253_v57 = vld [vmem:[#allocation4 + $0x44] sm:$0xf] }
 0x15d   :  { %2536 = vmatpush.bf16.msrb.mxu2 %v5872_v38  ;;  %2511 = vmatpush.bf16.msrb.mxu0 %v5736_v34  ;;  %v6019_v38 = vld [vmem:[#allocation4 + $0x70] sm:$0xf]  ;;  %v6084_v34 = vor.u32 %v7276_v23, %v6083_v21  ;;  %v7269_v10 = vld [vmem:[#allocation4 + $0xc4] sm:$0xf]  ;;  %v7268_v19 = vld [vmem:[#allocation4 + $0xb4] sm:$0xf0] }
 0x15e   :  { %v6020_v33 = vor.u32 %v7260_v20, %v6019_v38  ;;  %v7251_v38 = vld [vmem:[#allocation4 + $0x34] sm:$0xf]  ;;  %v5989_v20 = vld [vmem:[#allocation4 + $0x38] sm:$0xf0] }
 0x15f   :  { %2549 = vmatpush.bf16.msrb.mxu3 %v5936_v25  ;;  %2524 = vmatpush.bf16.msrb.mxu1 %v5800_v29  ;;  %v6021_v25 = vld [vmem:[#allocation4 + $0x78] sm:$0xf0] }
 0x160   :  { %v6024_v29 = vor.u32 %v7259_v24, %v6021_v25  ;;  %v6053_v23 = vld [vmem:[#allocation4 + $0xb8] sm:$0xf0]  ;;  %v6052_v25 = vor.u32 %v7268_v19, %v6051_v17 }
 0x161   :  { %2537 = vmatpush.bf16.msrb.mxu2 %v5864_v35  ;;  %2512 = vmatpush.bf16.msrb.mxu0 %v5728_v50  ;;  %v6011_v35 = vld [vmem:[#allocation4 + $0x60] sm:$0xf]  ;;  %v7256_v50 = vld [vmem:[#allocation4 + $0x54] sm:$0xf0]  ;;  %v6150_v17 = vld [vmem:[#allocation4 + $0x178] sm:$0xf0] }
 0x162   :  { %v6012_v45 = vor.u32 %v7258_v36, %v6011_v35  ;;  %v7266_v35 = vld [vmem:[#allocation4 + $0xa4] sm:$0xf0]  ;;  %v7249_v36 = vld [vmem:[#allocation4 + $0x24] sm:$0xf] }
 0x163   :  { %2550 = vmatpush.bf16.msrb.mxu3 %v5928_v41  ;;  %2525 = vmatpush.bf16.msrb.mxu1 %v5792_v56  ;;  %v7257_v41 = vld [vmem:[#allocation4 + $0x64] sm:$0xf]  ;;  %v6080_v56 = vor.u32 %v7273_v43, %v6077_v44  ;;  %v5971_v43 = vld [vmem:[#allocation4 + $0x10] sm:$0xf] }
 0x164   :  { %v6016_v47 = vor.u32 %v7257_v41, %v6013_v42  ;;  %v5980_v42 = vor.u32 %v7250_v31, %v5979_v30  ;;  %v7290_v30 = vld [vmem:[#allocation4 + $0x164] sm:$0xf0]  ;;  %v6204_v31 = vld [vmem:[#allocation4 + $0x1e0] sm:$0xf] }
 0x165   :  { %2538 = vmatpush.bf16.msrb.mxu2 %v5856_v58  ;;  %2513 = vmatpush.bf16.msrb.mxu0 %v5720_v9  ;;  %v7272_v58 = vld [vmem:[#allocation4 + $0xd4] sm:$0xf0]  ;;  %v6072_v9 = vor.u32 %v7271_v61, %v6069_v62  ;;  %v5973_v61 = vld [vmem:[#allocation4 + $0x18] sm:$0xf0]  ;;  %v7263_v62 = vld [vmem:[#allocation4 + $0x94] sm:$0xf] }
 0x166   :  { %v6068_v1 = vor.u32 %v7272_v58, %v6067_v55 }
 0x167   :  { %2551 = vmatpush.bf16.msrb.mxu3 %v5920_v63  ;;  %2526 = vmatpush.bf16.msrb.mxu1 %v5784_v11  ;;  %v6004_v63 = vor.u32 %v7256_v50, %v6003_v49  ;;  %v6061_v11 = vld [vmem:[#allocation4 + $0xc8] sm:$0xf0]  ;;  %v6035_v49 = vld [vmem:[#allocation4 + $0x90] sm:$0xf]  ;;  %v7264_v50 = vld [vmem:[#allocation4 + $0x94] sm:$0xf0] }
 0x168   :  { %v6064_v18 = vor.u32 %v7269_v10, %v6061_v11  ;;  %v5965_v10 = vld [vmem:[#allocation4 + $0x8] sm:$0xf0]  ;;  %v7261_v11 = vld [vmem:[#allocation4 + $0x84] sm:$0xf] }
 0x169   :  { %2539 = vmatpush.bf16.msrb.mxu2 %v5848_v5  ;;  %2514 = vmatpush.bf16.msrb.mxu0 %v5712_v22  ;;  %v7267_v22 = vld [vmem:[#allocation4 + $0xb4] sm:$0xf] }
 0x16a   :  { %v1919_v15 = vpop.f32.mrf.mxu1 }
 0x16b   :  { %2552 = vmatpush.bf16.msrb.mxu3 %v5912_v7  ;;  %2527 = vmatpush.bf16.msrb.mxu1 %v5776_v27  ;;  %v5987_v7 = vld [vmem:[#allocation4 + $0x30] sm:$0xf]  ;;  %v5992_v27 = vor.u32 %v7251_v38, %v5989_v20  ;;  %v7307_v38 = vld [vmem:[#allocation4 + $0x1f4] sm:$0xf]  ;;  %v6214_v20 = vld [vmem:[#allocation4 + $0x1f8] sm:$0xf0] }
 0x16c   :  { %2515 = vmatmul.bf16.vlgmr.msrb.gmra.mxu0 %v7938_v51  ;;  %v7270_v51 = vld [vmem:[#allocation4 + $0xc4] sm:$0xf0]  ;;  %v5988_v24 = vor.u32 %v7252_v16, %v5987_v7  ;;  %v7308_v7 = vld [vmem:[#allocation4 + $0x1f4] sm:$0xf0]  ;;  %v7291_v16 = vld [vmem:[#allocation4 + $0x174] sm:$0xf] }
 0x16d   :  { %2540 = vmatpush.bf16.msrb.mxu2 %v5840_v28  ;;  %2768 = vmatpush.bf16.msra.mxu0 %v6020_v33  ;;  %v6060_v6 = vor.u32 %v7270_v51, %v6059_v4  ;;  %v6056_v33 = vor.u32 %v7267_v22, %v6053_v23  ;;  %v6036_v4 = vor.u32 %v7264_v50, %v6035_v49  ;;  %v7262_v51 = vld [vmem:[#allocation4 + $0x84] sm:$0xf0]  ;;  %v6134_v49 = vld [vmem:[#allocation4 + $0x158] sm:$0xf0]  ;;  %v7303_v50 = vld [vmem:[#allocation4 + $0x1d4] sm:$0xf] }
 0x16e   :  { %2528 = vmatmul.bf16.vlgmr.msrb.gmra.mxu1 %v7942_v54  ;;  %v1906_v54 = vpop.f32.mrf.mxu0 }
 0x16f   :  { %2553 = vmatpush.bf16.msrb.mxu3 %v5904_v32  ;;  %2781 = vmatpush.bf16.msra.mxu1 %v6084_v34  ;;  %v1907_v14 = vadd.f32 %v1906_v54, %v346_v8  ;;  %v6043_v32 = vld [vmem:[#allocation4 + $0xa0] sm:$0xf]  ;;  %v5976_v8 = vor.u32 %v7247_v60, %v5973_v61  ;;  %v7286_v61 = vld [vmem:[#allocation4 + $0x144] sm:$0xf0] }
 0x170   :  { %2541 = vmatmul.bf16.vlgmr.msrb.gmra.mxu2 %v7930_v48  ;;  %v7254_v48 = vld [vmem:[#allocation4 + $0x44] sm:$0xf0] }
 0x171   :  { %2794 = vmatpush.bf16.msra.mxu2 %v6024_v29  ;;  %2769 = vmatpush.bf16.msra.mxu0 %v6012_v45  ;;  %v5996_v5 = vor.u32 %v7254_v48, %v5995_v0  ;;  %v1920_v21 = vadd.f32 %v1919_v15, %v1907_v14  ;;  %v6044_v45 = vor.u32 %v7266_v35, %v6043_v32  ;;  %v7246_v48 = vld [vmem:[#allocation4 + $0x4] sm:$0xf0]  ;;  %v6212_v14 = vld [vmem:[#allocation4 + $0x1f0] sm:$0xf]  ;;  %v7305_v35 = vld [vmem:[#allocation4 + $0x1e4] sm:$0xf] }
 0x172   :  { %2554 = vmatmul.bf16.vlgmr.msrb.gmra.mxu3 %v7940_v52  ;;  %v5997_v52 = vld [vmem:[#allocation4 + $0x48] sm:$0xf0]  ;;  %v1932_v28 = vpop.f32.mrf.mxu2  ;;  %v1921_v55 = vpop.f32.mrf.mxu1  ;;  %v6217_v32 = vor.u32 %v7307_v38, %v6214_v20  ;;  %v6108_v20 = vld [vmem:[#allocation4 + $0x120] sm:$0xf] }
 0x173   :  { %2807 = vmatpush.bf16.msra.mxu3 %v6088_v39  ;;  %2782 = vmatpush.bf16.msra.mxu1 %v6076_v46  ;;  %v6000_v13 = vor.u32 %v7253_v57, %v5997_v52  ;;  %v1933_v34 = vadd.f32 %v1932_v28, %v1920_v21  ;;  %v7265_v39 = vld [vmem:[#allocation4 + $0xa4] sm:$0xf]  ;;  %v5984_v46 = vor.u32 %v7249_v36, %v5981_v37  ;;  %v2602_v21 = vunpack.c.l.b16 %v7667_v26  ;;  %v6140_v28 = vld [vmem:[#allocation4 + $0x160] sm:$0xf]  ;;  %v6206_v36 = vld [vmem:[#allocation4 + $0x1e8] sm:$0xf0] }
 0x174   :  { %v1945_v29 = vpop.f32.mrf.mxu3  ;;  %v6048_v59 = vor.u32 %v7265_v39, %v6045_v40  ;;  %v6141_v39 = vor.u32 %v7290_v30, %v6140_v28  ;;  %v6198_v55 = vld [vmem:[#allocation4 + $0x1d8] sm:$0xf0]  ;;  %v6110_v28 = vld [vmem:[#allocation4 + $0x128] sm:$0xf0] }
 0x175   :  { %2795 = vmatpush.bf16.msra.mxu2 %v6016_v47  ;;  %2770 = vmatpush.bf16.msra.mxu0 %v6004_v63  ;;  %v1946_v41 = vadd.f32 %v1945_v29, %v1933_v34  ;;  %v7248_v47 = vld [vmem:[#allocation4 + $0x14] sm:$0xf0]  ;;  %v6037_v63 = vld [vmem:[#allocation4 + $0x98] sm:$0xf0]  ;;  %v7289_v34 = vld [vmem:[#allocation4 + $0x164] sm:$0xf]  ;;  %v2604_v37 = vpack.c.b16 %v2602_v21, %v2602_v21 }
 0x176   :  { %v1908_v44 = vpop.f32.mrf.mxu0  ;;  %v6040_v52 = vor.u32 %v7263_v62, %v6037_v63  ;;  %v6142_v29 = vld [vmem:[#allocation4 + $0x168] sm:$0xf0]  ;;  %v6188_v62 = vld [vmem:[#allocation4 + $0x1c0] sm:$0xf]  ;;  %v347_v63 = vperm.slane %v7984_v12, 6 }
 0x177   :  { %2808 = vmatpush.bf16.msra.mxu3 %v6080_v56  ;;  %2783 = vmatpush.bf16.msra.mxu1 %v6068_v1  ;;  %v2057_v56 = vmax.f32 %v8050_v53, 0.0  ;;  %v2058_v58 = vmax.f32 %v1946_v41, 0.0  ;;  %v5972_v1 = vor.u32 %v7248_v47, %v5971_v43  ;;  %v7245_v53 = vld [vmem:[#allocation4 + $0x4] sm:$0xf]  ;;  %v6145_v41 = vor.u32 %v7289_v34, %v6142_v29  ;;  %v7288_v43 = vld [vmem:[#allocation4 + $0x154] sm:$0xf0] }
 0x178   :  { %v5968_v19 = vor.u32 %v7245_v53, %v5965_v10  ;;  %v6196_v44 = vld [vmem:[#allocation4 + $0x1d0] sm:$0xf]  ;;  %v7287_v47 = vld [vmem:[#allocation4 + $0x154] sm:$0xf]  ;;  %v7282_v21 = vld [vmem:[#allocation4 + $0x124] sm:$0xf0] }
 0x179   :  { %2796 = vmatpush.bf16.msra.mxu2 %v6008_v3  ;;  %2771 = vmatpush.bf16.msra.mxu0 %v5996_v5  ;;  %v8106_v0 = vpack.c.bf16 %v2058_v58, %v2057_v56  ;;  %v5963_v3 = vld [vmem:[#allocation4] sm:$0xf]  ;;  %v6029_v5 = vld [vmem:[#allocation4 + $0x88] sm:$0xf0]  ;;  %v6137_v60 = vor.u32 %v7287_v47, %v6134_v49  ;;  %v6116_v10 = vld [vmem:[#allocation4 + $0x130] sm:$0xf]  ;;  %v6109_v34 = vor.u32 %v7282_v21, %v6108_v20 }
 0x17a   :  { %v1934_v57 = vpop.f32.mrf.mxu2  ;;  %v5964_v15 = vor.u32 %v7246_v48, %v5963_v3  ;;  %v6032_v22 = vor.u32 %v7261_v11, %v6029_v5  ;;  %v6124_v58 = vld [vmem:[#allocation4 + $0x140] sm:$0xf]  ;;  %v7302_v3 = vld [vmem:[#allocation4 + $0x1c4] sm:$0xf0]  ;;  %v7285_v48 = vld [vmem:[#allocation4 + $0x144] sm:$0xf] }
 0x17b   :  { %2809 = vmatpush.bf16.msra.mxu3 %v6072_v9  ;;  %2784 = vmatpush.bf16.msra.mxu1 %v6060_v6  ;;  %v6027_v9 = vld [vmem:[#allocation4 + $0x80] sm:$0xf]  ;;  %v6148_v6 = vld [vmem:[#allocation4 + $0x170] sm:$0xf]  ;;  %v6189_v57 = vor.u32 %v7302_v3, %v6188_v62  ;;  %v7284_v11 = vld [vmem:[#allocation4 + $0x134] sm:$0xf0] }
 0x17c   :  { %v1947_v54 = vpop.f32.mrf.mxu3  ;;  %v6180_v5 = vld [vmem:[#allocation4 + $0x1b0] sm:$0xf]  ;;  %v6166_v47 = vld [vmem:[#allocation4 + $0x198] sm:$0xf0]  ;;  %v7293_v3 = vld [vmem:[#allocation4 + $0x184] sm:$0xf] }
 0x17d   :  { %2797 = vmatpush.bf16.msra.mxu2 %v6000_v13  ;;  %2772 = vmatpush.bf16.msra.mxu0 %v5988_v24  ;;  %v7292_v13 = vld [vmem:[#allocation4 + $0x174] sm:$0xf0]  ;;  %v2603_v24 = vunpack.c.h.b16 %v7667_v26  ;;  %v7338_v20 = vld [vmem:[#allocation4 + $0x2e4] sm:$0xf0]  ;;  %v7321_v21 = vld [vmem:[#allocation4 + $0x264] sm:$0xf] }
 0x17e   :  { %v6149_v23 = vor.u32 %v7292_v13, %v6148_v6  ;;  %v7300_v13 = vld [vmem:[#allocation4 + $0x1b4] sm:$0xf0] }
 0x17f   :  { %2810 = vmatpush.bf16.msra.mxu3 %v6064_v18  ;;  %2785 = vmatpush.bf16.msra.mxu1 %v6052_v25  ;;  %v6028_v18 = vor.u32 %v7262_v51, %v6027_v9  ;;  %v6213_v25 = vor.u32 %v7308_v7, %v6212_v14  ;;  %v2605_v40 = vpack.c.b16 %v2603_v24, %v2603_v24  ;;  %v6190_v9 = vld [vmem:[#allocation4 + $0x1c8] sm:$0xf0]  ;;  %v7283_v14 = vld [vmem:[#allocation4 + $0x134] sm:$0xf] }
 0x180   :  { %v6125_v51 = vor.u32 %v7286_v61, %v6124_v58  ;;  %v7299_v7 = vld [vmem:[#allocation4 + $0x1b4] sm:$0xf]  ;;  %v7277_v61 = vld [vmem:[#allocation4 + $0x104] sm:$0xf] }
 0x181   :  { %2798 = vmatpush.bf16.msra.mxu2 %v5992_v27  ;;  %2773 = vmatpush.bf16.msra.mxu0 %v5980_v42  ;;  %v6153_v27 = vor.u32 %v7291_v16, %v6150_v17  ;;  %v6132_v42 = vld [vmem:[#allocation4 + $0x150] sm:$0xf]  ;;  %v6182_v16 = vld [vmem:[#allocation4 + $0x1b8] sm:$0xf0] }
 0x182   :  { %v6133_v56 = vor.u32 %v7288_v43, %v6132_v42  ;;  %v6185_v24 = vor.u32 %v7299_v7, %v6182_v16  ;;  %v7296_v43 = vld [vmem:[#allocation4 + $0x194] sm:$0xf0] }
 0x183   :  { %2811 = vmatpush.bf16.msra.mxu3 %v6056_v33  ;;  %2786 = vmatpush.bf16.msra.mxu1 %v6044_v45  ;;  %v7306_v33 = vld [vmem:[#allocation4 + $0x1e4] sm:$0xf0]  ;;  %v6209_v45 = vor.u32 %v7305_v35, %v6206_v36 }
 0x184   :  { %v6205_v26 = vor.u32 %v7306_v33, %v6204_v31  ;;  %v6174_v33 = vld [vmem:[#allocation4 + $0x1a8] sm:$0xf0] }
 0x185   :  { %2799 = vmatpush.bf16.msra.mxu2 %v5984_v46  ;;  %2774 = vmatpush.bf16.msra.mxu0 %v5972_v1  ;;  %v7304_v46 = vld [vmem:[#allocation4 + $0x1d4] sm:$0xf0]  ;;  %v6201_v1 = vor.u32 %v7303_v50, %v6198_v55  ;;  %v6092_v50 = vld [vmem:[#allocation4 + $0x100] sm:$0xf]  ;;  %v7278_v55 = vld [vmem:[#allocation4 + $0x104] sm:$0xf0] }
 0x187   :  { %2812 = vmatpush.bf16.msra.mxu3 %v6048_v59  ;;  %2787 = vmatpush.bf16.msra.mxu1 %v6036_v4  ;;  %v6197_v59 = vor.u32 %v7304_v46, %v6196_v44  ;;  %v6126_v4 = vld [vmem:[#allocation4 + $0x148] sm:$0xf0]  ;;  %v7279_v44 = vld [vmem:[#allocation4 + $0x114] sm:$0xf] }
 0x188   :  { %v1958_v53 = vpop.f32.mrf.mxu0  ;;  %v7295_v46 = vld [vmem:[#allocation4 + $0x194] sm:$0xf] }
 0x189   :  { %2800 = vmatpush.bf16.msra.mxu2 %v5976_v8  ;;  %2775 = vmatpush.bf16.msra.mxu0 %v5964_v15  ;;  %v7301_v8 = vld [vmem:[#allocation4 + $0x1c4] sm:$0xf]  ;;  %v1959_v54 = vadd.f32 %v1958_v53, %v347_v63  ;;  %v6118_v15 = vld [vmem:[#allocation4 + $0x138] sm:$0xf0]  ;;  %v6169_v63 = vor.u32 %v7295_v46, %v6166_v47  ;;  %v6093_v53 = vor.u32 %v7278_v55, %v6092_v50  ;;  %v7334_v47 = vld [vmem:[#allocation4 + $0x2c4] sm:$0xf0] }
 0x18a   :  { %v1971_v6 = vpop.f32.mrf.mxu1  ;;  %v6193_v12 = vor.u32 %v7301_v8, %v6190_v9  ;;  %v6121_v38 = vor.u32 %v7283_v14, %v6118_v15  ;;  %v6277_v8 = vld [vmem:[#allocation4 + $0x270] sm:$0xf]  ;;  %v7324_v9 = vld [vmem:[#allocation4 + $0x274] sm:$0xf0]  ;;  %v2865_v15 = vunpack.c.h.b16 %v7850_v2  ;;  %v6255_v50 = vld [vmem:[#allocation4 + $0x248] sm:$0xf0] }
 0x18b   :  { %2813 = vmatpush.bf16.msra.mxu3 %v6040_v52  ;;  %2788 = vmatpush.bf16.msra.mxu1 %v6028_v18  ;;  %v6129_v52 = vor.u32 %v7285_v48, %v6126_v4  ;;  %v1972_v17 = vadd.f32 %v1971_v6, %v1959_v54  ;;  %v6117_v18 = vor.u32 %v7284_v11, %v6116_v10  ;;  %v6158_v48 = vld [vmem:[#allocation4 + $0x188] sm:$0xf0]  ;;  %v6279_v10 = vld [vmem:[#allocation4 + $0x278] sm:$0xf0]  ;;  %v7339_v54 = vld [vmem:[#allocation4 + $0x2f4] sm:$0xf] }
 0x18c   :  { %2776 = vmatmul.bf16.vlgmr.msra.gmra.mxu0 %v2604_v37  ;;  %v6343_v6 = vld [vmem:[#allocation4 + $0x2f8] sm:$0xf0]  ;;  %v6278_v14 = vor.u32 %v7324_v9, %v6277_v8  ;;  %v7333_v55 = vld [vmem:[#allocation4 + $0x2c4] sm:$0xf]  ;;  %v7315_v8 = vld [vmem:[#allocation4 + $0x234] sm:$0xf] }
 0x18d   :  { %2801 = vmatpush.bf16.msra.mxu2 %v5968_v19  ;;  %3030 = vmatpush.bf16.msrb.mxu0 %v6149_v23  ;;  %v6181_v19 = vor.u32 %v7300_v13, %v6180_v5  ;;  %v6161_v13 = vor.u32 %v7293_v3, %v6158_v48  ;;  %v6309_v3 = vld [vmem:[#allocation4 + $0x2b0] sm:$0xf]  ;;  %v6247_v9 = vld [vmem:[#allocation4 + $0x238] sm:$0xf0] }
 0x18e   :  { %2789 = vmatmul.bf16.vlgmr.msra.gmra.mxu1 %v2605_v40 }
 0x18f   :  { %2814 = vmatpush.bf16.msra.mxu3 %v6032_v22  ;;  %3043 = vmatpush.bf16.msrb.mxu1 %v6213_v25  ;;  %v6172_v22 = vld [vmem:[#allocation4 + $0x1a0] sm:$0xf]  ;;  %v7298_v25 = vld [vmem:[#allocation4 + $0x1a4] sm:$0xf0] }
 0x190   :  { %2802 = vmatmul.bf16.vlgmr.msra.gmra.mxu2 %v2604_v37  ;;  %v1960_v35 = vpop.f32.mrf.mxu0  ;;  %v6173_v36 = vor.u32 %v7298_v25, %v6172_v22  ;;  %v6271_v22 = vld [vmem:[#allocation4 + $0x268] sm:$0xf0] }
 0x191   :  { %3056 = vmatpush.bf16.msrb.mxu2 %v6153_v27  ;;  %3031 = vmatpush.bf16.msrb.mxu0 %v6141_v39  ;;  %v7281_v27 = vld [vmem:[#allocation4 + $0x124] sm:$0xf]  ;;  %v6100_v39 = vld [vmem:[#allocation4 + $0x110] sm:$0xf]  ;;  %v7336_v35 = vld [vmem:[#allocation4 + $0x2d4] sm:$0xf0] }
 0x192   :  { %2815 = vmatmul.bf16.vlgmr.msra.gmra.mxu3 %v2605_v40  ;;  %v1984_v23 = vpop.f32.mrf.mxu2  ;;  %v6113_v37 = vor.u32 %v7281_v27, %v6110_v28  ;;  %v7280_v40 = vld [vmem:[#allocation4 + $0x114] sm:$0xf0]  ;;  %v2867_v28 = vpack.c.b16 %v2865_v15, %v2865_v15  ;;  %v7313_v15 = vld [vmem:[#allocation4 + $0x224] sm:$0xf] }
 0x193   :  { %3069 = vmatpush.bf16.msrb.mxu3 %v6217_v32  ;;  %3044 = vmatpush.bf16.msrb.mxu1 %v6205_v26  ;;  %v1985_v30 = vadd.f32 %v1984_v23, %v1972_v17  ;;  %v7297_v32 = vld [vmem:[#allocation4 + $0x1a4] sm:$0xf]  ;;  %v6164_v26 = vld [vmem:[#allocation4 + $0x190] sm:$0xf]  ;;  %v6101_v49 = vor.u32 %v7280_v40, %v6100_v39  ;;  %v6269_v17 = vld [vmem:[#allocation4 + $0x260] sm:$0xf] }
 0x194   :  { %v1997_v31 = vpop.f32.mrf.mxu3  ;;  %v6177_v42 = vor.u32 %v7297_v32, %v6174_v33  ;;  %v7337_v23 = vld [vmem:[#allocation4 + $0x2e4] sm:$0xf]  ;;  %v7320_v32 = vld [vmem:[#allocation4 + $0x254] sm:$0xf0]  ;;  %v6325_v33 = vld [vmem:[#allocation4 + $0x2d0] sm:$0xf] }
 0x195   :  { %3057 = vmatpush.bf16.msrb.mxu2 %v6145_v41  ;;  %3032 = vmatpush.bf16.msrb.mxu0 %v6133_v56  ;;  %v8111_v29 = vadd.f32 %v1997_v31, %v1985_v30  ;;  %v1973_v41 = vpop.f32.mrf.mxu1  ;;  %v6165_v56 = vor.u32 %v7296_v43, %v6164_v26  ;;  %v6274_v30 = vor.u32 %v7321_v21, %v6271_v22  ;;  %v6261_v31 = vld [vmem:[#allocation4 + $0x250] sm:$0xf]  ;;  %v7335_v39 = vld [vmem:[#allocation4 + $0x2d4] sm:$0xf]  ;;  %v6327_v40 = vld [vmem:[#allocation4 + $0x2d8] sm:$0xf0] }
 0x196   :  { %v6262_v26 = vor.u32 %v7320_v32, %v6261_v31  ;;  %v6326_v41 = vor.u32 %v7336_v35, %v6325_v33  ;;  %v6253_v43 = vld [vmem:[#allocation4 + $0x240] sm:$0xf]  ;;  %v6330_v46 = vor.u32 %v7335_v39, %v6327_v40  ;;  %v6229_v21 = vld [vmem:[#allocation4 + $0x210] sm:$0xf]  ;;  %v7312_v22 = vld [vmem:[#allocation4 + $0x214] sm:$0xf0] }
 0x197   :  { %3070 = vmatpush.bf16.msrb.mxu3 %v6209_v45  ;;  %3045 = vmatpush.bf16.msrb.mxu1 %v6197_v59  ;;  %v6102_v45 = vld [vmem:[#allocation4 + $0x118] sm:$0xf0]  ;;  %v6156_v59 = vld [vmem:[#allocation4 + $0x180] sm:$0xf]  ;;  %v6230_v32 = vor.u32 %v7312_v22, %v6229_v21  ;;  %v7326_v39 = vld [vmem:[#allocation4 + $0x284] sm:$0xf0] }
 0x198   :  { %v6105_v58 = vor.u32 %v7279_v44, %v6102_v45  ;;  %v7318_v44 = vld [vmem:[#allocation4 + $0x244] sm:$0xf0]  ;;  %v6317_v45 = vld [vmem:[#allocation4 + $0x2c0] sm:$0xf]  ;;  %v6295_v31 = vld [vmem:[#allocation4 + $0x298] sm:$0xf0] }
 0x199   :  { %3058 = vmatpush.bf16.msrb.mxu2 %v6137_v60  ;;  %3033 = vmatpush.bf16.msrb.mxu0 %v6125_v51  ;;  %v7294_v60 = vld [vmem:[#allocation4 + $0x184] sm:$0xf0]  ;;  %v6341_v51 = vld [vmem:[#allocation4 + $0x2f0] sm:$0xf]  ;;  %v6221_v33 = vld [vmem:[#allocation4 + $0x200] sm:$0xf] }
 0x19a   :  { %v1986_v62 = vpop.f32.mrf.mxu2  ;;  %v6157_v11 = vor.u32 %v7294_v60, %v6156_v59  ;;  %v6318_v60 = vor.u32 %v7334_v47, %v6317_v45  ;;  %v7309_v40 = vld [vmem:[#allocation4 + $0x204] sm:$0xf]  ;;  %v7356_v47 = vld [vmem:[#allocation4 + $0x374] sm:$0xf0]  ;;  %v6454_v22 = vld [vmem:[#allocation4 + $0x3d0] sm:$0xf] }
 0x19b   :  { %3071 = vmatpush.bf16.msrb.mxu3 %v6201_v1  ;;  %3046 = vmatpush.bf16.msrb.mxu1 %v6189_v57  ;;  %v6094_v1 = vld [vmem:[#allocation4 + $0x108] sm:$0xf0]  ;;  %v7340_v57 = vld [vmem:[#allocation4 + $0x2f4] sm:$0xf0] }
 0x19c   :  { %v1999_v4 = vpop.f32.mrf.mxu3  ;;  %v6097_v5 = vor.u32 %v7277_v61, %v6094_v1  ;;  %v6342_v7 = vor.u32 %v7340_v57, %v6341_v51  ;;  %v7316_v1 = vld [vmem:[#allocation4 + $0x234] sm:$0xf0]  ;;  %v7331_v51 = vld [vmem:[#allocation4 + $0x2b4] sm:$0xf] }
 0x19d   :  { %3059 = vmatpush.bf16.msrb.mxu2 %v6129_v52  ;;  %3034 = vmatpush.bf16.msrb.mxu0 %v6117_v18  ;;  %v7323_v52 = vld [vmem:[#allocation4 + $0x274] sm:$0xf]  ;;  %v7322_v18 = vld [vmem:[#allocation4 + $0x264] sm:$0xf0]  ;;  %v7332_v4 = vld [vmem:[#allocation4 + $0x2b4] sm:$0xf0] }
 0x19e   :  { %v6282_v16 = vor.u32 %v7323_v52, %v6279_v10  ;;  %v6270_v27 = vor.u32 %v7322_v18, %v6269_v17  ;;  %v6310_v52 = vor.u32 %v7332_v4, %v6309_v3  ;;  %v6250_v10 = vor.u32 %v7315_v8, %v6247_v9  ;;  %v6303_v17 = vld [vmem:[#allocation4 + $0x2a8] sm:$0xf0]  ;;  %v7352_v21 = vld [vmem:[#allocation4 + $0x354] sm:$0xf0] }
 0x19f   :  { %3072 = vmatpush.bf16.msrb.mxu3 %v6193_v12  ;;  %3047 = vmatpush.bf16.msrb.mxu1 %v6181_v19  ;;  %v2864_v12 = vunpack.c.l.b16 %v7850_v2  ;;  %v6333_v19 = vld [vmem:[#allocation4 + $0x2e0] sm:$0xf]  ;;  %v3126_v3 = vunpack.c.l.b16 %v8106_v0 }
 0x1a0   :  { %v6334_v2 = vor.u32 %v7338_v20, %v6333_v19 }
 0x1a1   :  { %3060 = vmatpush.bf16.msrb.mxu2 %v6121_v38  ;;  %3035 = vmatpush.bf16.msrb.mxu0 %v6109_v34  ;;  %v6346_v38 = vor.u32 %v7339_v54, %v6343_v6  ;;  %v2866_v25 = vpack.c.b16 %v2864_v12, %v2864_v12  ;;  %v7314_v54 = vld [vmem:[#allocation4 + $0x224] sm:$0xf0]  ;;  %v6301_v6 = vld [vmem:[#allocation4 + $0x2a0] sm:$0xf] }
 0x1a3   :  { %3073 = vmatpush.bf16.msrb.mxu3 %v6185_v24  ;;  %3048 = vmatpush.bf16.msrb.mxu1 %v6173_v36  ;;  %v6335_v24 = vld [vmem:[#allocation4 + $0x2e8] sm:$0xf0]  ;;  %v7319_v36 = vld [vmem:[#allocation4 + $0x254] sm:$0xf] }
 0x1a4   :  { %v6338_v34 = vor.u32 %v7337_v23, %v6335_v24  ;;  %v6293_v23 = vld [vmem:[#allocation4 + $0x290] sm:$0xf] }
 0x1a5   :  { %3061 = vmatpush.bf16.msrb.mxu2 %v6113_v37  ;;  %3036 = vmatpush.bf16.msrb.mxu0 %v6101_v49  ;;  %v6263_v37 = vld [vmem:[#allocation4 + $0x258] sm:$0xf0]  ;;  %v7317_v49 = vld [vmem:[#allocation4 + $0x244] sm:$0xf] }
 0x1a6   :  { %v6258_v61 = vor.u32 %v7317_v49, %v6255_v50  ;;  %v6470_v49 = vld [vmem:[#allocation4 + $0x3f0] sm:$0xf] }
 0x1a7   :  { %3074 = vmatpush.bf16.msrb.mxu3 %v6177_v42  ;;  %3049 = vmatpush.bf16.msrb.mxu1 %v6165_v56  ;;  %v6266_v42 = vor.u32 %v7319_v36, %v6263_v37  ;;  %v6319_v56 = vld [vmem:[#allocation4 + $0x2c8] sm:$0xf0]  ;;  %v6285_v37 = vld [vmem:[#allocation4 + $0x280] sm:$0xf] }
 0x1a8   :  { %v6322_v48 = vor.u32 %v7333_v55, %v6319_v56  ;;  %v7372_v55 = vld [vmem:[#allocation4 + $0x3f4] sm:$0xf0]  ;;  %v7355_v56 = vld [vmem:[#allocation4 + $0x374] sm:$0xf] }
 0x1a9   :  { %3062 = vmatpush.bf16.msrb.mxu2 %v6105_v58  ;;  %3037 = vmatpush.bf16.msrb.mxu0 %v6093_v53  ;;  %v6254_v58 = vor.u32 %v7318_v44, %v6253_v43  ;;  %v8115_v59 = vpop.f32.mrf.mxu0  ;;  %v6311_v53 = vld [vmem:[#allocation4 + $0x2b8] sm:$0xf0]  ;;  %v7325_v43 = vld [vmem:[#allocation4 + $0x284] sm:$0xf]  ;;  %v6287_v44 = vld [vmem:[#allocation4 + $0x288] sm:$0xf0] }
 0x1aa   :  { %v6314_v12 = vor.u32 %v7331_v51, %v6311_v53  ;;  %v6290_v8 = vor.u32 %v7325_v43, %v6287_v44  ;;  %v3127_v51 = vunpack.c.h.b16 %v8106_v0  ;;  %v6471_v53 = vor.u32 %v7372_v55, %v6470_v49  ;;  %v6438_v49 = vld [vmem:[#allocation4 + $0x3b0] sm:$0xf] }
 0x1ab   :  { %3075 = vmatpush.bf16.msrb.mxu3 %v6169_v63  ;;  %3050 = vmatpush.bf16.msrb.mxu1 %v6157_v11  ;;  %v8117_v62 = vpop.f32.mrf.mxu1  ;;  %v6245_v63 = vld [vmem:[#allocation4 + $0x230] sm:$0xf] }
 0x1ac   :  { %3038 = vmatmul.bf16.vlgmr.msrb.gmra.mxu0 %v2866_v25  ;;  %v6246_v57 = vor.u32 %v7316_v1, %v6245_v63  ;;  %v7371_v63 = vld [vmem:[#allocation4 + $0x3f4] sm:$0xf]  ;;  %v6472_v1 = vld [vmem:[#allocation4 + $0x3f8] sm:$0xf0] }
 0x1ad   :  { %3063 = vmatpush.bf16.msrb.mxu2 %v6097_v5  ;;  %3292 = vmatpush.bf16.msra.mxu0 %v6278_v14  ;;  %v6237_v5 = vld [vmem:[#allocation4 + $0x220] sm:$0xf]  ;;  %v7330_v14 = vld [vmem:[#allocation4 + $0x2a4] sm:$0xf0] }
 0x1ae   :  { %3051 = vmatmul.bf16.vlgmr.msrb.gmra.mxu1 %v2867_v28  ;;  %v6238_v18 = vor.u32 %v7314_v54, %v6237_v5  ;;  %v6462_v5 = vld [vmem:[#allocation4 + $0x3e0] sm:$0xf]  ;;  %v6475_v54 = vor.u32 %v7371_v63, %v6472_v1 }
 0x1af   :  { %3076 = vmatpush.bf16.msrb.mxu3 %v6161_v13  ;;  %3305 = vmatpush.bf16.msra.mxu1 %v6342_v7  ;;  %v6239_v7 = vld [vmem:[#allocation4 + $0x228] sm:$0xf0] }
 0x1b0   :  { %3064 = vmatmul.bf16.vlgmr.msrb.gmra.mxu2 %v2866_v25  ;;  %v6242_v20 = vor.u32 %v7313_v15, %v6239_v7  ;;  %v7369_v15 = vld [vmem:[#allocation4 + $0x3e4] sm:$0xf]  ;;  %v6464_v7 = vld [vmem:[#allocation4 + $0x3e8] sm:$0xf0] }
 0x1b1   :  { %3318 = vmatpush.bf16.msra.mxu2 %v6282_v16  ;;  %3293 = vmatpush.bf16.msra.mxu0 %v6270_v27  ;;  %v7329_v16 = vld [vmem:[#allocation4 + $0x2a4] sm:$0xf]  ;;  %v2012_v19 = vpop.f32.mrf.mxu0  ;;  %v7328_v27 = vld [vmem:[#allocation4 + $0x294] sm:$0xf0] }
 0x1b2   :  { %3077 = vmatmul.bf16.vlgmr.msrb.gmra.mxu3 %v2867_v28  ;;  %v6306_v25 = vor.u32 %v7329_v16, %v6303_v17  ;;  %v7311_v28 = vld [vmem:[#allocation4 + $0x214] sm:$0xf]  ;;  %v6294_v35 = vor.u32 %v7328_v27, %v6293_v23  ;;  %v3128_v16 = vpack.c.b16 %v3126_v3, %v3126_v3  ;;  %v6467_v23 = vor.u32 %v7369_v15, %v6464_v7  ;;  %v6392_v27 = vld [vmem:[#allocation4 + $0x358] sm:$0xf0] }
 0x1b3   :  { %3331 = vmatpush.bf16.msra.mxu3 %v6346_v38  ;;  %3306 = vmatpush.bf16.msra.mxu1 %v6334_v2  ;;  %v8119_v11 = vpop.f32.mrf.mxu2  ;;  %v6302_v38 = vor.u32 %v7330_v14, %v6301_v6  ;;  %v2025_v24 = vpop.f32.mrf.mxu1  ;;  %v6231_v2 = vld [vmem:[#allocation4 + $0x218] sm:$0xf0]  ;;  %v7370_v6 = vld [vmem:[#allocation4 + $0x3e4] sm:$0xf0]  ;;  %v6400_v14 = vld [vmem:[#allocation4 + $0x368] sm:$0xf0] }
 0x1b4   :  { %v6234_v36 = vor.u32 %v7311_v28, %v6231_v2  ;;  %v6463_v19 = vor.u32 %v7370_v6, %v6462_v5  ;;  %v7368_v24 = vld [vmem:[#allocation4 + $0x3d4] sm:$0xf0]  ;;  %v6456_v28 = vld [vmem:[#allocation4 + $0x3d8] sm:$0xf0] }
 0x1b5   :  { %3319 = vmatpush.bf16.msra.mxu2 %v6274_v30  ;;  %3294 = vmatpush.bf16.msra.mxu0 %v6262_v26  ;;  %v8121_v13 = vpop.f32.mrf.mxu3  ;;  %v7327_v30 = vld [vmem:[#allocation4 + $0x294] sm:$0xf] }
 0x1b7   :  { %3332 = vmatpush.bf16.msra.mxu3 %v6338_v34  ;;  %3307 = vmatpush.bf16.msra.mxu1 %v6326_v41  ;;  %v7310_v34 = vld [vmem:[#allocation4 + $0x204] sm:$0xf0]  ;;  %v6298_v41 = vor.u32 %v7327_v30, %v6295_v31  ;;  %v6455_v31 = vor.u32 %v7368_v24, %v6454_v22  ;;  %v7359_v22 = vld [vmem:[#allocation4 + $0x394] sm:$0xf]  ;;  %v2059_v24 = vmax.f32 %v8111_v29, 0.0 }
 0x1b8   :  { %v6222_v50 = vor.u32 %v7310_v34, %v6221_v33  ;;  %v6382_v33 = vld [vmem:[#allocation4 + $0x340] sm:$0xf]  ;;  %v7350_v34 = vld [vmem:[#allocation4 + $0x344] sm:$0xf0]  ;;  %v6535_v29 = vld [vmem:[#allocation4 + $0x470] sm:$0xf] }
 0x1b9   :  { %3320 = vmatpush.bf16.msra.mxu2 %v6266_v42  ;;  %3295 = vmatpush.bf16.msra.mxu0 %v6254_v58  ;;  %v6223_v42 = vld [vmem:[#allocation4 + $0x208] sm:$0xf0]  ;;  %v6408_v58 = vld [vmem:[#allocation4 + $0x378] sm:$0xf0] }
 0x1bb   :  { %3333 = vmatpush.bf16.msra.mxu3 %v6330_v46  ;;  %3308 = vmatpush.bf16.msra.mxu1 %v6318_v60  ;;  %v2038_v26 = vpop.f32.mrf.mxu2  ;;  %v6406_v46 = vld [vmem:[#allocation4 + $0x370] sm:$0xf]  ;;  %v6286_v60 = vor.u32 %v7326_v39, %v6285_v37  ;;  %v7366_v37 = vld [vmem:[#allocation4 + $0x3c4] sm:$0xf0]  ;;  %v7349_v39 = vld [vmem:[#allocation4 + $0x344] sm:$0xf] }
 0x1bc   :  { %v6407_v9 = vor.u32 %v7356_v47, %v6406_v46  ;;  %v7365_v26 = vld [vmem:[#allocation4 + $0x3c4] sm:$0xf]  ;;  %v6374_v46 = vld [vmem:[#allocation4 + $0x330] sm:$0xf]  ;;  %v7348_v47 = vld [vmem:[#allocation4 + $0x334] sm:$0xf0] }
 0x1bd   :  { %3321 = vmatpush.bf16.msra.mxu2 %v6258_v61  ;;  %3296 = vmatpush.bf16.msra.mxu0 %v6246_v57  ;;  %v2051_v45 = vpop.f32.mrf.mxu3  ;;  %v6226_v61 = vor.u32 %v7309_v40, %v6223_v42  ;;  %v6411_v57 = vor.u32 %v7355_v56, %v6408_v58  ;;  %v6384_v40 = vld [vmem:[#allocation4 + $0x348] sm:$0xf0]  ;;  %v7364_v56 = vld [vmem:[#allocation4 + $0x3b4] sm:$0xf0]  ;;  %v7347_v58 = vld [vmem:[#allocation4 + $0x334] sm:$0xf]  ;;  %v6375_v1 = vor.u32 %v7348_v47, %v6374_v46 }
 0x1be   :  { %v6387_v45 = vor.u32 %v7349_v39, %v6384_v40  ;;  %v6439_v3 = vor.u32 %v7364_v56, %v6438_v49  ;;  %v6416_v39 = vld [vmem:[#allocation4 + $0x388] sm:$0xf0]  ;;  %v7403_v49 = vld [vmem:[#allocation4 + $0x4f4] sm:$0xf] }
 0x1bf   :  { %3334 = vmatpush.bf16.msra.mxu3 %v6322_v48  ;;  %3309 = vmatpush.bf16.msra.mxu1 %v6310_v52  ;;  %v7493_v48 = vld [vmem:[%s8412_s3] sm:$0xff] }
 0x1c0   :  { %v348_v4 = vperm.slane %v7493_v48, 7  ;;  %v6398_v52 = vld [vmem:[#allocation4 + $0x360] sm:$0xf] }
 0x1c1   :  { %3322 = vmatpush.bf16.msra.mxu2 %v6250_v10  ;;  %3297 = vmatpush.bf16.msra.mxu0 %v6238_v18  ;;  %v7354_v10 = vld [vmem:[#allocation4 + $0x364] sm:$0xf0]  ;;  %v3129_v18 = vpack.c.b16 %v3127_v51, %v3127_v51 }
 0x1c2   :  { %v2011_v17 = vadd.f32 %v8115_v59, %v348_v4  ;;  %v6399_v0 = vor.u32 %v7354_v10, %v6398_v52  ;;  %v7367_v59 = vld [vmem:[#allocation4 + $0x3d4] sm:$0xf]  ;;  %v6366_v4 = vld [vmem:[#allocation4 + $0x320] sm:$0xf]  ;;  %v7345_v52 = vld [vmem:[#allocation4 + $0x324] sm:$0xf] }
 0x1c3   :  { %3335 = vmatpush.bf16.msra.mxu3 %v6314_v12  ;;  %3310 = vmatpush.bf16.msra.mxu1 %v6302_v38  ;;  %v7353_v12 = vld [vmem:[#allocation4 + $0x364] sm:$0xf]  ;;  %v6368_v10 = vld [vmem:[#allocation4 + $0x328] sm:$0xf0] }
 0x1c4   :  { %v6403_v38 = vor.u32 %v7353_v12, %v6400_v14  ;;  %v2024_v2 = vadd.f32 %v8117_v62, %v2011_v17  ;;  %v6383_v62 = vor.u32 %v7350_v34, %v6382_v33  ;;  %v6371_v7 = vor.u32 %v7345_v52, %v6368_v10  ;;  %v7344_v17 = vld [vmem:[#allocation4 + $0x314] sm:$0xf0]  ;;  %v6593_v52 = vld [vmem:[#allocation4 + $0x4e8] sm:$0xf0] }
 0x1c5   :  { %3323 = vmatpush.bf16.msra.mxu2 %v6242_v20  ;;  %3298 = vmatpush.bf16.msra.mxu0 %v6230_v32  ;;  %v6390_v20 = vld [vmem:[#allocation4 + $0x350] sm:$0xf] }
 0x1c6   :  { %v6391_v30 = vor.u32 %v7352_v21, %v6390_v20  ;;  %v2037_v42 = vadd.f32 %v8119_v11, %v2024_v2  ;;  %v6440_v11 = vld [vmem:[#allocation4 + $0x3b8] sm:$0xf0]  ;;  %v7343_v20 = vld [vmem:[#allocation4 + $0x314] sm:$0xf] }
 0x1c7   :  { %3336 = vmatpush.bf16.msra.mxu3 %v6306_v25  ;;  %3311 = vmatpush.bf16.msra.mxu1 %v6294_v35  ;;  %v7351_v25 = vld [vmem:[#allocation4 + $0x354] sm:$0xf]  ;;  %v6446_v35 = vld [vmem:[#allocation4 + $0x3c0] sm:$0xf]  ;;  %v6360_v21 = vld [vmem:[#allocation4 + $0x318] sm:$0xf0] }
 0x1c8   :  { %v6395_v32 = vor.u32 %v7351_v25, %v6392_v27  ;;  %v6447_v44 = vor.u32 %v7366_v37, %v6446_v35  ;;  %v2050_v63 = vadd.f32 %v8121_v13, %v2037_v42  ;;  %v6432_v13 = vld [vmem:[#allocation4 + $0x3a8] sm:$0xf0]  ;;  %v6350_v27 = vld [vmem:[#allocation4 + $0x300] sm:$0xf]  ;;  %v6363_v2 = vor.u32 %v7343_v20, %v6360_v21  ;;  %v7357_v37 = vld [vmem:[#allocation4 + $0x384] sm:$0xf] }
 0x1c9   :  { %3324 = vmatpush.bf16.msra.mxu2 %v6234_v36  ;;  %3299 = vmatpush.bf16.msra.mxu0 %v6222_v50  ;;  %v6459_v36 = vor.u32 %v7367_v59, %v6456_v28  ;;  %v8131_v43 = vpop.f32.mrf.mxu0  ;;  %v7342_v59 = vld [vmem:[#allocation4 + $0x304] sm:$0xf0]  ;;  %v6585_v20 = vld [vmem:[#allocation4 + $0x4d8] sm:$0xf0] }
 0x1ca   :  { %v2060_v6 = vmax.f32 %v2050_v63, 0.0  ;;  %v6351_v42 = vor.u32 %v7342_v59, %v6350_v27  ;;  %v6511_v27 = vld [vmem:[#allocation4 + $0x440] sm:$0xf]  ;;  %v7382_v59 = vld [vmem:[#allocation4 + $0x444] sm:$0xf0] }
 0x1cb   :  { %3337 = vmatpush.bf16.msra.mxu3 %v6298_v41  ;;  %3312 = vmatpush.bf16.msra.mxu1 %v6286_v60  ;;  %v6448_v41 = vld [vmem:[#allocation4 + $0x3c8] sm:$0xf0]  ;;  %v8133_v50 = vpop.f32.mrf.mxu1  ;;  %v6376_v60 = vld [vmem:[#allocation4 + $0x338] sm:$0xf0] }
 0x1cc   :  { %3300 = vmatmul.bf16.vlgmr.msra.gmra.mxu0 %v3128_v16  ;;  %v6451_v55 = vor.u32 %v7365_v26, %v6448_v41  ;;  %v6379_v48 = vor.u32 %v7347_v58, %v6376_v60  ;;  %v2064_v34 = vpack.c.bf16 %v2060_v6, %v2059_v24  ;;  %v7388_v26 = vld [vmem:[#allocation4 + $0x474] sm:$0xf0]  ;;  %v6599_v41 = vld [vmem:[#allocation4 + $0x4f0] sm:$0xf]  ;;  %v6419_v58 = vor.u32 %v7357_v37, %v6416_v39 }
 0x1cd   :  { %3325 = vmatpush.bf16.msra.mxu2 %v6226_v61  ;;  %3554 = vmatpush.bf16.msrb.mxu0 %v6407_v9  ;;  %v7363_v61 = vld [vmem:[#allocation4 + $0x3b4] sm:$0xf]  ;;  %v6430_v9 = vld [vmem:[#allocation4 + $0x3a0] sm:$0xf]  ;;  %v6536_v60 = vor.u32 %v7388_v26, %v6535_v29  ;;  %v6512_v37 = vor.u32 %v7382_v59, %v6511_v27  ;;  %v7374_v59 = vld [vmem:[#allocation4 + $0x404] sm:$0xf0] }
 0x1ce   :  { %3313 = vmatmul.bf16.vlgmr.msra.gmra.mxu1 %v3129_v18  ;;  %v3388_v56 = vunpack.c.l.b16 %v2064_v34  ;;  %v6479_v27 = vld [vmem:[#allocation4 + $0x400] sm:$0xf] }
 0x1cf   :  { %3338 = vmatpush.bf16.msra.mxu3 %v6290_v8  ;;  %3567 = vmatpush.bf16.msrb.mxu1 %v6471_v53  ;;  %v7346_v8 = vld [vmem:[#allocation4 + $0x324] sm:$0xf0]  ;;  %v6443_v53 = vor.u32 %v7363_v61, %v6440_v11  ;;  %v3389_v61 = vunpack.c.h.b16 %v2064_v34  ;;  %v6577_v34 = vld [vmem:[#allocation4 + $0x4c8] sm:$0xf0] }
 0x1d0   :  { %3326 = vmatmul.bf16.vlgmr.msra.gmra.mxu2 %v3128_v16  ;;  %v6367_v12 = vor.u32 %v7346_v8, %v6366_v4  ;;  %v6358_v16 = vld [vmem:[#allocation4 + $0x310] sm:$0xf]  ;;  %v7402_v8 = vld [vmem:[#allocation4 + $0x4e4] sm:$0xf0]  ;;  %v3390_v10 = vpack.c.b16 %v3388_v56, %v3388_v56 }
 0x1d1   :  { %3580 = vmatpush.bf16.msrb.mxu2 %v6411_v57  ;;  %3555 = vmatpush.bf16.msrb.mxu0 %v6399_v0  ;;  %v7362_v57 = vld [vmem:[#allocation4 + $0x3a4] sm:$0xf0]  ;;  %v2466_v14 = vpop.f32.mrf.mxu0  ;;  %v6422_v0 = vld [vmem:[#allocation4 + $0x390] sm:$0xf]  ;;  %v6359_v25 = vor.u32 %v7344_v17, %v6358_v16  ;;  %v3391_v6 = vpack.c.b16 %v3389_v61, %v3389_v61 }
 0x1d2   :  { %3339 = vmatmul.bf16.vlgmr.msra.gmra.mxu3 %v3129_v18  ;;  %v6431_v15 = vor.u32 %v7362_v57, %v6430_v9  ;;  %v7385_v9 = vld [vmem:[#allocation4 + $0x464] sm:$0xf]  ;;  %v6583_v16 = vld [vmem:[#allocation4 + $0x4d0] sm:$0xf] }
 0x1d3   :  { %3593 = vmatpush.bf16.msrb.mxu3 %v6475_v54  ;;  %3568 = vmatpush.bf16.msrb.mxu1 %v6463_v19  ;;  %v8136_v51 = vpop.f32.mrf.mxu2  ;;  %v7361_v54 = vld [vmem:[#allocation4 + $0x3a4] sm:$0xf]  ;;  %v2479_v18 = vpop.f32.mrf.mxu1 }
 0x1d4   :  { %v6435_v19 = vor.u32 %v7361_v54, %v6432_v13  ;;  %v7401_v57 = vld [vmem:[#allocation4 + $0x4e4] sm:$0xf]  ;;  %v2129_v54 = vld [vmem:[%s8414_s5] sm:$0x3]  ;;  %v7383_v18 = vld [vmem:[#allocation4 + $0x454] sm:$0xf] }
 0x1d5   :  { %3581 = vmatpush.bf16.msrb.mxu2 %v6403_v38  ;;  %3556 = vmatpush.bf16.msrb.mxu0 %v6391_v30  ;;  %v8138_v5 = vpop.f32.mrf.mxu3  ;;  %v7360_v38 = vld [vmem:[#allocation4 + $0x394] sm:$0xf0]  ;;  %v6414_v30 = vld [vmem:[#allocation4 + $0x380] sm:$0xf]  ;;  %v6596_v17 = vor.u32 %v7401_v57, %v6593_v52  ;;  %v2131_v21 = vperm.slane %v2129_v54, 0 }
 0x1d6   :  { %v6423_v28 = vor.u32 %v7360_v38, %v6422_v0  ;;  %v7400_v0 = vld [vmem:[#allocation4 + $0x4d4] sm:$0xf0]  ;;  %v7399_v38 = vld [vmem:[#allocation4 + $0x4d4] sm:$0xf]  ;;  %v7393_v57 = vld [vmem:[#allocation4 + $0x4a4] sm:$0xf] }
 0x1d7   :  { %3594 = vmatpush.bf16.msrb.mxu3 %v6467_v23  ;;  %3569 = vmatpush.bf16.msrb.mxu1 %v6455_v31  ;;  %v6424_v23 = vld [vmem:[#allocation4 + $0x398] sm:$0xf0]  ;;  %v7358_v31 = vld [vmem:[#allocation4 + $0x384] sm:$0xf0]  ;;  %v6584_v24 = vor.u32 %v7400_v0, %v6583_v16  ;;  %v6561_v52 = vld [vmem:[#allocation4 + $0x4a8] sm:$0xf0] }
 0x1d8   :  { %v6427_v35 = vor.u32 %v7359_v22, %v6424_v23  ;;  %v6415_v46 = vor.u32 %v7358_v31, %v6414_v30  ;;  %v2132_v23 = vperm.slane %v2129_v54, 1  ;;  %v7398_v30 = vld [vmem:[#allocation4 + $0x4c4] sm:$0xf0]  ;;  %v7381_v31 = vld [vmem:[#allocation4 + $0x444] sm:$0xf] }
 0x1d9   :  { %3582 = vmatpush.bf16.msrb.mxu2 %v6395_v32  ;;  %3557 = vmatpush.bf16.msrb.mxu0 %v6383_v62  ;;  %v7341_v32 = vld [vmem:[#allocation4 + $0x304] sm:$0xf]  ;;  %v7404_v62 = vld [vmem:[#allocation4 + $0x4f4] sm:$0xf0]  ;;  %v6551_v16 = vld [vmem:[#allocation4 + $0x490] sm:$0xf] }
 0x1da   :  { %v6600_v11 = vor.u32 %v7404_v62, %v6599_v41  ;;  %v6503_v41 = vld [vmem:[#allocation4 + $0x430] sm:$0xf]  ;;  %v7392_v0 = vld [vmem:[#allocation4 + $0x494] sm:$0xf0] }
 0x1db   :  { %3595 = vmatpush.bf16.msrb.mxu3 %v6459_v36  ;;  %3570 = vmatpush.bf16.msrb.mxu1 %v6447_v44  ;;  %v2492_v33 = vpop.f32.mrf.mxu2  ;;  %v6352_v36 = vld [vmem:[#allocation4 + $0x308] sm:$0xf0]  ;;  %v7387_v44 = vld [vmem:[#allocation4 + $0x474] sm:$0xf]  ;;  %v6567_v62 = vld [vmem:[#allocation4 + $0x4b0] sm:$0xf] }
 0x1dc   :  { %v6355_v47 = vor.u32 %v7341_v32, %v6352_v36  ;;  %v6513_v32 = vld [vmem:[#allocation4 + $0x448] sm:$0xf0]  ;;  %v7397_v33 = vld [vmem:[#allocation4 + $0x4c4] sm:$0xf] }
 0x1dd   :  { %3583 = vmatpush.bf16.msrb.mxu2 %v6387_v45  ;;  %3558 = vmatpush.bf16.msrb.mxu0 %v6375_v1  ;;  %v2505_v40 = vpop.f32.mrf.mxu3  ;;  %v6537_v45 = vld [vmem:[#allocation4 + $0x478] sm:$0xf0]  ;;  %v6527_v1 = vld [vmem:[#allocation4 + $0x460] sm:$0xf]  ;;  %v6516_v29 = vor.u32 %v7381_v31, %v6513_v32  ;;  %v7390_v31 = vld [vmem:[#allocation4 + $0x484] sm:$0xf0] }
 0x1de   :  { %v6540_v63 = vor.u32 %v7387_v44, %v6537_v45  ;;  %v6580_v44 = vor.u32 %v7397_v33, %v6577_v34  ;;  %v7396_v45 = vld [vmem:[#allocation4 + $0x4b4] sm:$0xf0]  ;;  %v7373_v32 = vld [vmem:[#allocation4 + $0x404] sm:$0xf]  ;;  %v6481_v33 = vld [vmem:[#allocation4 + $0x408] sm:$0xf0] }
 0x1df   :  { %3596 = vmatpush.bf16.msrb.mxu3 %v6451_v55  ;;  %3571 = vmatpush.bf16.msrb.mxu1 %v6439_v3  ;;  %v6601_v55 = vld [vmem:[#allocation4 + $0x4f8] sm:$0xf0]  ;;  %v7386_v3 = vld [vmem:[#allocation4 + $0x464] sm:$0xf0]  ;;  %v7389_v34 = vld [vmem:[#allocation4 + $0x484] sm:$0xf] }
 0x1e0   :  { %v6604_v4 = vor.u32 %v7403_v49, %v6601_v55  ;;  %v6528_v13 = vor.u32 %v7386_v3, %v6527_v1  ;;  %v7395_v49 = vld [vmem:[#allocation4 + $0x4b4] sm:$0xf]  ;;  %v6569_v55 = vld [vmem:[#allocation4 + $0x4b8] sm:$0xf0]  ;;  %v7378_v1 = vld [vmem:[#allocation4 + $0x424] sm:$0xf0] }
 0x1e1   :  { %3584 = vmatpush.bf16.msrb.mxu2 %v6379_v48  ;;  %3559 = vmatpush.bf16.msrb.mxu0 %v6367_v12  ;;  %v6591_v48 = vld [vmem:[#allocation4 + $0x4e0] sm:$0xf] }
 0x1e2   :  { %v6592_v12 = vor.u32 %v7402_v8, %v6591_v48  ;;  %v6559_v3 = vld [vmem:[#allocation4 + $0x4a0] sm:$0xf]  ;;  %v6572_v48 = vor.u32 %v7395_v49, %v6569_v55  ;;  %v7394_v8 = vld [vmem:[#allocation4 + $0x4a4] sm:$0xf0]  ;;  %v7427_v49 = vld [vmem:[%s8417_s8 + $0xb0] sm:$0xff] }
 0x1e3   :  { %3597 = vmatpush.bf16.msrb.mxu3 %v6443_v53  ;;  %3572 = vmatpush.bf16.msrb.mxu1 %v6431_v15  ;;  %v6529_v53 = vld [vmem:[#allocation4 + $0x468] sm:$0xf0]  ;;  %v6519_v15 = vld [vmem:[#allocation4 + $0x450] sm:$0xf] }
 0x1e4   :  { %v6532_v14 = vor.u32 %v7385_v9, %v6529_v53  ;;  %v7377_v9 = vld [vmem:[#allocation4 + $0x424] sm:$0xf]  ;;  %v6497_v53 = vld [vmem:[#allocation4 + $0x428] sm:$0xf0] }
 0x1e5   :  { %3585 = vmatpush.bf16.msrb.mxu2 %v6371_v7  ;;  %3560 = vmatpush.bf16.msrb.mxu0 %v6359_v25  ;;  %v7384_v7 = vld [vmem:[#allocation4 + $0x454] sm:$0xf0]  ;;  %v7410_v55 = vld [vmem:[%s8417_s8 + $0x28] sm:$0xff] }
 0x1e6   :  { %v6520_v22 = vor.u32 %v7384_v7, %v6519_v15  ;;  %v6487_v15 = vld [vmem:[#allocation4 + $0x410] sm:$0xf]  ;;  %v7376_v7 = vld [vmem:[#allocation4 + $0x414] sm:$0xf0] }
 0x1e7   :  { %3598 = vmatpush.bf16.msrb.mxu3 %v6435_v19  ;;  %3573 = vmatpush.bf16.msrb.mxu1 %v6423_v28  ;;  %v6521_v19 = vld [vmem:[#allocation4 + $0x458] sm:$0xf0]  ;;  %v6575_v28 = vld [vmem:[#allocation4 + $0x4c0] sm:$0xf] }
 0x1e8   :  { %v6524_v25 = vor.u32 %v7383_v18, %v6521_v19  ;;  %v6576_v40 = vor.u32 %v7398_v30, %v6575_v28  ;;  %v7375_v18 = vld [vmem:[#allocation4 + $0x414] sm:$0xf]  ;;  %v6489_v19 = vld [vmem:[#allocation4 + $0x418] sm:$0xf0]  ;;  %v6543_v28 = vld [vmem:[#allocation4 + $0x480] sm:$0xf] }
 0x1e9   :  { %3586 = vmatpush.bf16.msrb.mxu2 %v6363_v2  ;;  %3561 = vmatpush.bf16.msrb.mxu0 %v6351_v42  ;;  %v6588_v2 = vor.u32 %v7399_v38, %v6585_v20  ;;  %v2516_v36 = vpop.f32.mrf.mxu0  ;;  %v7380_v42 = vld [vmem:[#allocation4 + $0x434] sm:$0xf0]  ;;  %v7391_v38 = vld [vmem:[#allocation4 + $0x494] sm:$0xf]  ;;  %v6553_v20 = vld [vmem:[#allocation4 + $0x498] sm:$0xf0] }
 0x1ea   :  { %v2517_v39 = vadd.f32 %v2516_v36, %v2132_v23  ;;  %v6504_v56 = vor.u32 %v7380_v42, %v6503_v41  ;;  %v6552_v23 = vor.u32 %v7392_v0, %v6551_v16  ;;  %v7420_v41 = vld [vmem:[%s8417_s8 + $0x78] sm:$0xff] }
 0x1eb   :  { %3599 = vmatpush.bf16.msrb.mxu3 %v6427_v35  ;;  %3574 = vmatpush.bf16.msrb.mxu1 %v6415_v46  ;;  %v2465_v35 = vadd.f32 %v8131_v43, %v2131_v21  ;;  %v2529_v26 = vpop.f32.mrf.mxu1  ;;  %v7379_v46 = vld [vmem:[#allocation4 + $0x434] sm:$0xf] }
 0x1ec   :  { %3562 = vmatmul.bf16.vlgmr.msrb.gmra.mxu0 %v3390_v10  ;;  %v2530_v43 = vadd.f32 %v2529_v26, %v2517_v39  ;;  %v6544_v39 = vor.u32 %v7390_v31, %v6543_v28  ;;  %v7412_v26 = vld [vmem:[%s8417_s8 + $0x38] sm:$0xff]  ;;  %v7430_v28 = vld [vmem:[%s8417_s8 + $0xc8] sm:$0xff] }
 0x1ed   :  { %3587 = vmatpush.bf16.msrb.mxu2 %v6355_v47  ;;  %3809 = vmatpush.bf16.msra.mxu0 %v6536_v60  ;;  %v6505_v47 = vld [vmem:[#allocation4 + $0x438] sm:$0xf0]  ;;  %v6568_v60 = vor.u32 %v7396_v45, %v6567_v62  ;;  %v7411_v45 = vld [vmem:[%s8417_s8 + $0x30] sm:$0xff] }
 0x1ee   :  { %3575 = vmatmul.bf16.vlgmr.msrb.gmra.mxu1 %v3391_v6  ;;  %v6508_v61 = vor.u32 %v7379_v46, %v6505_v47  ;;  %v7436_v46 = vld [vmem:[%s8417_s8 + $0xf8] sm:$0xff]  ;;  %v7419_v47 = vld [vmem:[%s8417_s8 + $0x70] sm:$0xff] }
 0x1ef   :  { %3600 = vmatpush.bf16.msrb.mxu3 %v6419_v58  ;;  %3822 = vmatpush.bf16.msra.mxu1 %v6600_v11  ;;  %v2478_v58 = vadd.f32 %v8133_v50, %v2465_v35  ;;  %v6545_v35 = vld [vmem:[#allocation4 + $0x488] sm:$0xf0]  ;;  %v7452_v31 = vld [vmem:[%s8417_s8 + $0x178] sm:$0xff] }
 0x1f0   :  { %3588 = vmatmul.bf16.vlgmr.msrb.gmra.mxu2 %v3390_v10 }
 0x1f1   :  { %3835 = vmatpush.bf16.msra.mxu2 %v6540_v63  ;;  %3810 = vmatpush.bf16.msra.mxu0 %v6528_v13  ;;  %v6495_v63 = vld [vmem:[#allocation4 + $0x420] sm:$0xf]  ;;  %v2518_v54 = vpop.f32.mrf.mxu0  ;;  %v2491_v13 = vadd.f32 %v8136_v51, %v2478_v58  ;;  %v7418_v58 = vld [vmem:[%s8417_s8 + $0x68] sm:$0xff] }
 0x1f2   :  { %3601 = vmatmul.bf16.vlgmr.msrb.gmra.mxu3 %v3391_v6  ;;  %v6496_v50 = vor.u32 %v7378_v1, %v6495_v63  ;;  %v6560_v6 = vor.u32 %v7394_v8, %v6559_v3  ;;  %v7409_v1 = vld [vmem:[%s8417_s8 + $0x20] sm:$0xff]  ;;  %v7434_v3 = vld [vmem:[%s8417_s8 + $0xe8] sm:$0xff] }
 0x1f3   :  { %3848 = vmatpush.bf16.msra.mxu3 %v6604_v4  ;;  %3823 = vmatpush.bf16.msra.mxu1 %v6592_v12  ;;  %v2542_v11 = vpop.f32.mrf.mxu2  ;;  %v6500_v12 = vor.u32 %v7377_v9, %v6497_v53  ;;  %v2504_v51 = vadd.f32 %v8138_v5, %v2491_v13  ;;  %v7425_v9 = vld [vmem:[%s8417_s8 + $0xa0] sm:$0xff]  ;;  %v7408_v53 = vld [vmem:[%s8417_s8 + $0x18] sm:$0xff] }
 0x1f4   :  { %v2543_v10 = vadd.f32 %v2542_v11, %v2530_v43  ;;  %v2595_v43 = vld [vmem:[%s8416_s7] sm:$0x3]  ;;  %v7426_v11 = vld [vmem:[%s8417_s8 + $0xa8] sm:$0xff] }
 0x1f5   :  { %3836 = vmatpush.bf16.msra.mxu2 %v6532_v14  ;;  %3811 = vmatpush.bf16.msra.mxu0 %v6520_v22  ;;  %v2555_v4 = vpop.f32.mrf.mxu3  ;;  %v2531_v14 = vpop.f32.mrf.mxu1  ;;  %v6488_v22 = vor.u32 %v7376_v7, %v6487_v15  ;;  %v2559_v5 = vmax.f32 %v2504_v51, 0.0  ;;  %v2598_v8 = vperm.slane %v2595_v43, 1  ;;  %v7407_v15 = vld [vmem:[%s8417_s8 + $0x10] sm:$0xff]  ;;  %v7432_v7 = vld [vmem:[%s8417_s8 + $0xd8] sm:$0xff] }
 0x1f6   :  { %v2556_v21 = vadd.f32 %v2555_v4, %v2543_v10 }
 0x1f7   :  { %3849 = vmatpush.bf16.msra.mxu3 %v6596_v17  ;;  %3824 = vmatpush.bf16.msra.mxu1 %v6584_v24  ;;  %v6564_v17 = vor.u32 %v7393_v57, %v6561_v52  ;;  %v6492_v24 = vor.u32 %v7375_v18, %v6489_v19  ;;  %v2561_v62 = vpack.c.bf16 %v2559_v5, %v2559_v5  ;;  %v7433_v57 = vld [vmem:[%s8417_s8 + $0xe0] sm:$0xff]  ;;  %v7416_v52 = vld [vmem:[%s8417_s8 + $0x58] sm:$0xff]  ;;  %v7423_v19 = vld [vmem:[%s8417_s8 + $0x90] sm:$0xff] }
 0x1f8   :  { %v2560_v36 = vmax.f32 %v2556_v21, 0.0  ;;  %v7442_v5 = vld [vmem:[%s8417_s8 + $0x128] sm:$0xff] }
 0x1f9   :  { %3837 = vmatpush.bf16.msra.mxu2 %v6524_v25  ;;  %3812 = vmatpush.bf16.msra.mxu0 %v6512_v37  ;;  %v6480_v37 = vor.u32 %v7374_v59, %v6479_v27  ;;  %v7405_v59 = vld [vmem:[%s8417_s8] sm:$0xff] }
 0x1fa   :  { %v2562_v42 = vpack.c.bf16 %v2560_v36, %v2560_v36  ;;  %v7443_v36 = vld [vmem:[%s8417_s8 + $0x130] sm:$0xff] }
 0x1fb   :  { %3850 = vmatpush.bf16.msra.mxu3 %v6588_v2  ;;  %3825 = vmatpush.bf16.msra.mxu1 %v6576_v40  ;;  %v2544_v25 = vpop.f32.mrf.mxu2  ;;  %v6556_v2 = vor.u32 %v7391_v38, %v6553_v20  ;;  %v6484_v40 = vor.u32 %v7373_v32, %v6481_v33  ;;  %v7406_v38 = vld [vmem:[%s8417_s8 + $0x8] sm:$0xff]  ;;  %v7431_v20 = vld [vmem:[%s8417_s8 + $0xd0] sm:$0xff]  ;;  %v7421_v33 = vld [vmem:[%s8417_s8 + $0x80] sm:$0xff] }
 0x1fc   :  { %v7422_v25 = vld [vmem:[%s8417_s8 + $0x88] sm:$0xff] }
 0x1fd   :  { %3838 = vmatpush.bf16.msra.mxu2 %v6516_v29  ;;  %3813 = vmatpush.bf16.msra.mxu0 %v6504_v56  ;;  %v2557_v30 = vpop.f32.mrf.mxu3  ;;  %v6548_v29 = vor.u32 %v7389_v34, %v6545_v35  ;;  %v7435_v56 = vld [vmem:[%s8417_s8 + $0xf0] sm:$0xff]  ;;  %v7429_v35 = vld [vmem:[%s8417_s8 + $0xc0] sm:$0xff] }
 0x1fe   :  { %v7444_v30 = vld [vmem:[%s8417_s8 + $0x138] sm:$0xff] }
 0x1ff   :  { %3851 = vmatpush.bf16.msra.mxu3 %v6580_v44  ;;  %3826 = vmatpush.bf16.msra.mxu1 %v6568_v60  ;;  %v7428_v44 = vld [vmem:[%s8417_s8 + $0xb8] sm:$0xff]  ;;  %v2597_v60 = vperm.slane %v2595_v43, 0 }
 0x201   :  { %3839 = vmatpush.bf16.msra.mxu2 %v6508_v61  ;;  %3814 = vmatpush.bf16.msra.mxu0 %v6496_v50 }
 0x203   :  { %3852 = vmatpush.bf16.msra.mxu3 %v6572_v48  ;;  %3827 = vmatpush.bf16.msra.mxu1 %v6560_v6  ;;  %v7417_v48 = vld [vmem:[%s8417_s8 + $0x60] sm:$0xff] }
 0x205   :  { %3840 = vmatpush.bf16.msra.mxu2 %v6500_v12  ;;  %3815 = vmatpush.bf16.msra.mxu0 %v6488_v22  ;;  %v7424_v12 = vld [vmem:[%s8417_s8 + $0x98] sm:$0xff]  ;;  %v7414_v22 = vld [vmem:[%s8417_s8 + $0x48] sm:$0xff] }
 0x207   :  { %3853 = vmatpush.bf16.msra.mxu3 %v6564_v17  ;;  %3828 = vmatpush.bf16.msra.mxu1 %v6552_v23  ;;  %v7415_v17 = vld [vmem:[%s8417_s8 + $0x50] sm:$0xff] }
 0x209   :  { %3841 = vmatpush.bf16.msra.mxu2 %v6492_v24  ;;  %3816 = vmatpush.bf16.msra.mxu0 %v6480_v37  ;;  %v2777_v61 = vpop.f32.mrf.mxu0  ;;  %v7451_v37 = vld [vmem:[%s8417_s8 + $0x170] sm:$0xff] }
 0x20a   :  { %v2778_v4 = vadd.f32 %v2777_v61, %v2597_v60  ;;  %v7439_v60 = vld [vmem:[%s8417_s8 + $0x110] sm:$0xff] }
 0x20b   :  { %3854 = vmatpush.bf16.msra.mxu3 %v6556_v2  ;;  %3829 = vmatpush.bf16.msra.mxu1 %v6544_v39  ;;  %v2790_v63 = vpop.f32.mrf.mxu1  ;;  %v7413_v2 = vld [vmem:[%s8417_s8 + $0x40] sm:$0xff] }
 0x20c   :  { %3817 = vmatmul.bf16.vlgmr.msra.gmra.mxu0 %v2561_v62  ;;  %v2791_v54 = vadd.f32 %v2790_v63, %v2778_v4  ;;  %v6089_v39 = vld [vmem:[%s8416_s7 + $0x2] sm:$0x3]  ;;  %v7446_v4 = vld [vmem:[%s8417_s8 + $0x148] sm:$0xff] }
 0x20d   :  { %3842 = vmatpush.bf16.msra.mxu2 %v6484_v40  ;;  %4543 = vmatpush.bf16.msrb.mxu0 %v7412_v26  ;;  %v7450_v40 = vld [vmem:[%s8417_s8 + $0x168] sm:$0xff] }
 0x20e   :  { %3830 = vmatmul.bf16.vlgmr.msra.gmra.mxu1 %v2562_v42  ;;  %v2820_v0 = vmax.f32 %v2791_v54, 0.0  ;;  %v7468_v54 = vld [vmem:[%s8417_s8 + $0x1f8] sm:$0xff] }
 0x20f   :  { %3855 = vmatpush.bf16.msra.mxu3 %v6548_v29  ;;  %4556 = vmatpush.bf16.msrb.mxu1 %v7420_v41  ;;  %v2859_v29 = vperm.slane %v6089_v39, 0  ;;  %v7441_v41 = vld [vmem:[%s8417_s8 + $0x120] sm:$0xff] }
 0x210   :  { %3843 = vmatmul.bf16.vlgmr.msra.gmra.mxu2 %v2561_v62  ;;  %v7449_v62 = vld [vmem:[%s8417_s8 + $0x160] sm:$0xff] }
 0x211   :  { %4569 = vmatpush.bf16.msrb.mxu2 %v7428_v44  ;;  %4544 = vmatpush.bf16.msrb.mxu0 %v7411_v45  ;;  %v2779_v6 = vpop.f32.mrf.mxu0  ;;  %v2860_v45 = vperm.slane %v6089_v39, 1  ;;  %v7461_v39 = vld [vmem:[%s8417_s8 + $0x1c0] sm:$0xff] }
 0x212   :  { %3856 = vmatmul.bf16.vlgmr.msra.gmra.mxu3 %v2562_v42 }
 0x213   :  { %4582 = vmatpush.bf16.msrb.mxu3 %v7436_v46  ;;  %4557 = vmatpush.bf16.msrb.mxu1 %v7419_v47  ;;  %v2803_v10 = vpop.f32.mrf.mxu2  ;;  %v2792_v14 = vpop.f32.mrf.mxu1  ;;  %v7440_v46 = vld [vmem:[%s8417_s8 + $0x118] sm:$0xff] }
 0x214   :  { %v2804_v50 = vadd.f32 %v2803_v10, %v2598_v8  ;;  %v7448_v47 = vld [vmem:[%s8417_s8 + $0x158] sm:$0xff]  ;;  %v7459_v14 = vld [vmem:[%s8417_s8 + $0x1b0] sm:$0xff] }
 0x215   :  { %4570 = vmatpush.bf16.msrb.mxu2 %v7427_v49  ;;  %4545 = vmatpush.bf16.msrb.mxu0 %v7410_v55  ;;  %v2816_v13 = vpop.f32.mrf.mxu3  ;;  %v7460_v10 = vld [vmem:[%s8417_s8 + $0x1b8] sm:$0xff] }
 0x216   :  { %v2817_v16 = vadd.f32 %v2816_v13, %v2804_v50  ;;  %v7437_v50 = vld [vmem:[%s8417_s8 + $0x100] sm:$0xff] }
 0x217   :  { %4583 = vmatpush.bf16.msrb.mxu3 %v7435_v56  ;;  %4558 = vmatpush.bf16.msrb.mxu1 %v7418_v58  ;;  %v7445_v13 = vld [vmem:[%s8417_s8 + $0x140] sm:$0xff] }
 0x218   :  { %v2821_v18 = vmax.f32 %v2817_v16, 0.0  ;;  %v7466_v16 = vld [vmem:[%s8417_s8 + $0x1e8] sm:$0xff] }
 0x219   :  { %4571 = vmatpush.bf16.msrb.mxu2 %v7426_v11  ;;  %4546 = vmatpush.bf16.msrb.mxu0 %v7409_v1  ;;  %v7447_v11 = vld [vmem:[%s8417_s8 + $0x150] sm:$0xff] }
 0x21a   :  { %v2822_v21 = vpack.c.bf16 %v2821_v18, %v2820_v0  ;;  %v7457_v0 = vld [vmem:[%s8417_s8 + $0x1a0] sm:$0xff] }
 0x21b   :  { %4584 = vmatpush.bf16.msrb.mxu3 %v7434_v3  ;;  %4559 = vmatpush.bf16.msrb.mxu1 %v7417_v48  ;;  %v2805_v51 = vpop.f32.mrf.mxu2  ;;  %v7438_v48 = vld [vmem:[%s8417_s8 + $0x108] sm:$0xff]  ;;  %v7465_v18 = vld [vmem:[%s8417_s8 + $0x1e0] sm:$0xff] }
 0x21c   :  { %v3865_v23 = vunpack.c.l.b16 %v2822_v21  ;;  %v3866_v27 = vunpack.c.h.b16 %v2822_v21  ;;  %v7456_v21 = vld [vmem:[%s8417_s8 + $0x198] sm:$0xff] }
 0x21d   :  { %4572 = vmatpush.bf16.msrb.mxu2 %v7425_v9  ;;  %4547 = vmatpush.bf16.msrb.mxu0 %v7408_v53  ;;  %v2818_v24 = vpop.f32.mrf.mxu3 }
 0x21e   :  { %v3867_v32 = vpack.c.b16 %v3865_v23, %v3865_v23  ;;  %v3868_v34 = vpack.c.b16 %v3866_v27, %v3866_v27  ;;  %v7455_v24 = vld [vmem:[%s8417_s8 + $0x190] sm:$0xff] }
 0x21f   :  { %4585 = vmatpush.bf16.msrb.mxu3 %v7433_v57  ;;  %4560 = vmatpush.bf16.msrb.mxu1 %v7416_v52 }
 0x221   :  { %4573 = vmatpush.bf16.msrb.mxu2 %v7424_v12  ;;  %4548 = vmatpush.bf16.msrb.mxu0 %v7407_v15  ;;  %v7467_v15 = vld [vmem:[%s8417_s8 + $0x1f0] sm:$0xff] }
 0x223   :  { %4586 = vmatpush.bf16.msrb.mxu3 %v7432_v7  ;;  %4561 = vmatpush.bf16.msrb.mxu1 %v7415_v17  ;;  %v7458_v7 = vld [vmem:[%s8417_s8 + $0x1a8] sm:$0xff]  ;;  %v6218_v17 = vld [vmem:[%s8416_s7 + $0x4] sm:$0x3] }
 0x224   :  { %v3122_v23 = vperm.slane %v6218_v17, 1 }
 0x225   :  { %4574 = vmatpush.bf16.msrb.mxu2 %v7423_v19  ;;  %4549 = vmatpush.bf16.msrb.mxu0 %v7406_v38  ;;  %v3121_v19 = vperm.slane %v6218_v17, 0 }
 0x227   :  { %4587 = vmatpush.bf16.msrb.mxu3 %v7431_v20  ;;  %4562 = vmatpush.bf16.msrb.mxu1 %v7414_v22  ;;  %v7464_v22 = vld [vmem:[%s8417_s8 + $0x1d8] sm:$0xff] }
 0x229   :  { %4575 = vmatpush.bf16.msrb.mxu2 %v7422_v25  ;;  %4550 = vmatpush.bf16.msrb.mxu0 %v7405_v59  ;;  %v3039_v26 = vpop.f32.mrf.mxu0  ;;  %v7463_v25 = vld [vmem:[%s8417_s8 + $0x1d0] sm:$0xff] }
 0x22a   :  { %v3040_v44 = vadd.f32 %v3039_v26, %v2859_v29  ;;  %v7476_v29 = vld [vmem:[%s8417_s8 + $0x238] sm:$0xff] }
 0x22b   :  { %4588 = vmatpush.bf16.msrb.mxu3 %v7430_v28  ;;  %4563 = vmatpush.bf16.msrb.mxu1 %v7413_v2  ;;  %v3052_v42 = vpop.f32.mrf.mxu1  ;;  %v7484_v26 = vld [vmem:[%s8417_s8 + $0x278] sm:$0xff] }
 0x22c   :  { %4551 = vmatmul.bf16.vlgmr.msrb.gmra.mxu0 %v3867_v32  ;;  %v3053_v55 = vadd.f32 %v3052_v42, %v3040_v44 }
 0x22d   :  { %4595 = vmatpush.bf16.msra.mxu0 %v7444_v30  ;;  %4576 = vmatpush.bf16.msrb.mxu2 %v7421_v33  ;;  %v7454_v33 = vld [vmem:[%s8417_s8 + $0x188] sm:$0xff] }
 0x22e   :  { %4564 = vmatmul.bf16.vlgmr.msrb.gmra.mxu1 %v3868_v34  ;;  %v3082_v1 = vmax.f32 %v3053_v55, 0.0  ;;  %v7462_v34 = vld [vmem:[%s8417_s8 + $0x1c8] sm:$0xff] }
 0x22f   :  { %4608 = vmatpush.bf16.msra.mxu1 %v7452_v31  ;;  %4589 = vmatpush.bf16.msrb.mxu3 %v7429_v35  ;;  %v7482_v55 = vld [vmem:[%s8417_s8 + $0x268] sm:$0xff] }
 0x231   :  { %4596 = vmatpush.bf16.msra.mxu0 %v7443_v36  ;;  %v3041_v58 = vpop.f32.mrf.mxu0  ;;  %4621 = vmatpush.bf16.msra.mxu2 %v7460_v10 }
 0x232   :  { %v7481_v58 = vld [vmem:[%s8417_s8 + $0x260] sm:$0xff] }
 0x233   :  { %4609 = vmatpush.bf16.msra.mxu1 %v7451_v37  ;;  %v3065_v49 = vpop.f32.mrf.mxu2  ;;  %v3054_v61 = vpop.f32.mrf.mxu1  ;;  %4634 = vmatpush.bf16.msra.mxu3 %v7468_v54 }
 0x234   :  { %v3066_v43 = vadd.f32 %v3065_v49, %v2860_v45  ;;  %v7474_v49 = vld [vmem:[%s8417_s8 + $0x228] sm:$0xff] }
 0x235   :  { %4597 = vmatpush.bf16.msra.mxu0 %v7442_v5  ;;  %v3078_v56 = vpop.f32.mrf.mxu3  ;;  %4622 = vmatpush.bf16.msra.mxu2 %v7459_v14  ;;  %v7453_v5 = vld [vmem:[%s8417_s8 + $0x180] sm:$0xff] }
 0x236   :  { %v3079_v63 = vadd.f32 %v3078_v56, %v3066_v43  ;;  %v6347_v43 = vld [vmem:[%s8416_s7 + $0x6] sm:$0x3] }
 0x237   :  { %4610 = vmatpush.bf16.msra.mxu1 %v7450_v40  ;;  %4635 = vmatpush.bf16.msra.mxu3 %v7467_v15  ;;  %v7473_v56 = vld [vmem:[%s8417_s8 + $0x220] sm:$0xff] }
 0x238   :  { %v3083_v3 = vmax.f32 %v3079_v63, 0.0  ;;  %v7472_v63 = vld [vmem:[%s8417_s8 + $0x218] sm:$0xff]  ;;  %v7469_v15 = vld [vmem:[%s8417_s8 + $0x200] sm:$0xff] }
 0x239   :  { %4598 = vmatpush.bf16.msra.mxu0 %v7441_v41  ;;  %4623 = vmatpush.bf16.msra.mxu2 %v7458_v7  ;;  %v7477_v7 = vld [vmem:[%s8417_s8 + $0x240] sm:$0xff] }
 0x23a   :  { %v3084_v8 = vpack.c.bf16 %v3083_v3, %v3082_v1  ;;  %v7480_v1 = vld [vmem:[%s8417_s8 + $0x258] sm:$0xff] }
 0x23b   :  { %4611 = vmatpush.bf16.msra.mxu1 %v7449_v62  ;;  %v3067_v9 = vpop.f32.mrf.mxu2  ;;  %4636 = vmatpush.bf16.msra.mxu3 %v7466_v16 }
 0x23c   :  { %v3872_v53 = vunpack.c.l.b16 %v3084_v8  ;;  %v3873_v57 = vunpack.c.h.b16 %v3084_v8  ;;  %v7479_v8 = vld [vmem:[%s8417_s8 + $0x250] sm:$0xff] }
 0x23d   :  { %4599 = vmatpush.bf16.msra.mxu0 %v7440_v46  ;;  %v3080_v52 = vpop.f32.mrf.mxu3  ;;  %4624 = vmatpush.bf16.msra.mxu2 %v7457_v0  ;;  %v7475_v46 = vld [vmem:[%s8417_s8 + $0x230] sm:$0xff] }
 0x23e   :  { %v3874_v6 = vpack.c.b16 %v3872_v53, %v3872_v53  ;;  %v3875_v12 = vpack.c.b16 %v3873_v57, %v3873_v57 }
 0x23f   :  { %4612 = vmatpush.bf16.msra.mxu1 %v7448_v47  ;;  %4637 = vmatpush.bf16.msra.mxu3 %v7465_v18  ;;  %v7483_v47 = vld [vmem:[%s8417_s8 + $0x270] sm:$0xff] }
 0x240   :  { %4577 = vmatmul.bf16.vlgmr.msrb.gmra.mxu2 %v3874_v6  ;;  %4590 = vmatmul.bf16.vlgmr.msrb.gmra.mxu3 %v3875_v12 }
 0x241   :  { %4600 = vmatpush.bf16.msra.mxu0 %v7439_v60  ;;  %4625 = vmatpush.bf16.msra.mxu2 %v7456_v21  ;;  %v3383_v60 = vperm.slane %v6347_v43, 0  ;;  %v6476_v21 = vld [vmem:[%s8416_s7 + $0x8] sm:$0x3] }
 0x243   :  { %4613 = vmatpush.bf16.msra.mxu1 %v7447_v11  ;;  %4638 = vmatpush.bf16.msra.mxu3 %v7464_v22  ;;  %v3645_v22 = vperm.slane %v6476_v21, 0 }
 0x245   :  { %4601 = vmatpush.bf16.msra.mxu0 %v7438_v48  ;;  %4626 = vmatpush.bf16.msra.mxu2 %v7455_v24  ;;  %v3384_v48 = vperm.slane %v6347_v43, 1 }
 0x247   :  { %4614 = vmatpush.bf16.msra.mxu1 %v7446_v4  ;;  %4639 = vmatpush.bf16.msra.mxu3 %v7463_v25  ;;  %v7471_v4 = vld [vmem:[%s8417_s8 + $0x210] sm:$0xff]  ;;  %v3646_v25 = vperm.slane %v6476_v21, 1 }
 0x249   :  { %4602 = vmatpush.bf16.msra.mxu0 %v7437_v50  ;;  %v3301_v38 = vpop.f32.mrf.mxu0  ;;  %4627 = vmatpush.bf16.msra.mxu2 %v7454_v33  ;;  %v7470_v50 = vld [vmem:[%s8417_s8 + $0x208] sm:$0xff] }
 0x24a   :  { %v3302_v51 = vadd.f32 %v3301_v38, %v3121_v19 }
 0x24b   :  { %4615 = vmatpush.bf16.msra.mxu1 %v7445_v13  ;;  %v3314_v20 = vpop.f32.mrf.mxu1  ;;  %4640 = vmatpush.bf16.msra.mxu3 %v7462_v34  ;;  %v7478_v13 = vld [vmem:[%s8417_s8 + $0x248] sm:$0xff] }
 0x24c   :  { %v3315_v59 = vadd.f32 %v3314_v20, %v3302_v51 }
 0x24d   :  { %4628 = vmatpush.bf16.msra.mxu2 %v7453_v5  ;;  %4647 = vmatpush.bf16.msrb.mxu0 %v7476_v29 }
 0x24e   :  { %v3344_v35 = vmax.f32 %v3315_v59, 0.0 }
 0x24f   :  { %4641 = vmatpush.bf16.msra.mxu3 %v7461_v39  ;;  %4660 = vmatpush.bf16.msrb.mxu1 %v7484_v26  ;;  %v7491_v26 = vld [vmem:[%s8418_s9] ss:$0 sm:$0xff] }
 0x251   :  { %v3303_v30 = vpop.f32.mrf.mxu0  ;;  %4648 = vmatpush.bf16.msrb.mxu0 %v7475_v46 }
 0x253   :  { %v3327_v27 = vpop.f32.mrf.mxu2  ;;  %v3316_v31 = vpop.f32.mrf.mxu1  ;;  %4661 = vmatpush.bf16.msrb.mxu1 %v7483_v47 }
 0x254   :  { %v3328_v28 = vadd.f32 %v3327_v27, %v3122_v23 }
 0x255   :  { %v3340_v2 = vpop.f32.mrf.mxu3  ;;  %4649 = vmatpush.bf16.msrb.mxu0 %v7474_v49 }
 0x256   :  { %v3341_v32 = vadd.f32 %v3340_v2, %v3328_v28 }
 0x257   :  { %4662 = vmatpush.bf16.msrb.mxu1 %v7482_v55 }
 0x258   :  { %v3345_v36 = vmax.f32 %v3341_v32, 0.0 }
 0x259   :  { %4650 = vmatpush.bf16.msrb.mxu0 %v7473_v56 }
 0x25a   :  { %v3346_v37 = vpack.c.bf16 %v3345_v36, %v3344_v35 }
 0x25b   :  { %v3329_v40 = vpop.f32.mrf.mxu2  ;;  %4663 = vmatpush.bf16.msrb.mxu1 %v7481_v58 }
 0x25c   :  { %v3879_v41 = vunpack.c.l.b16 %v3346_v37  ;;  %v3880_v42 = vunpack.c.h.b16 %v3346_v37 }
 0x25d   :  { %v3342_v62 = vpop.f32.mrf.mxu3  ;;  %4651 = vmatpush.bf16.msrb.mxu0 %v7472_v63 }
 0x25e   :  { %v3881_v44 = vpack.c.b16 %v3879_v41, %v3879_v41  ;;  %v3882_v45 = vpack.c.b16 %v3880_v42, %v3880_v42 }
 0x25f   :  { %4664 = vmatpush.bf16.msrb.mxu1 %v7480_v1 }
 0x260   :  { %4603 = vmatmul.bf16.vlgmr.msra.gmra.mxu0 %v3881_v44  ;;  %4616 = vmatmul.bf16.vlgmr.msra.gmra.mxu1 %v3882_v45 }
 0x261   :  { %4652 = vmatpush.bf16.msrb.mxu0 %v7471_v4 }
 0x263   :  { %4665 = vmatpush.bf16.msrb.mxu1 %v7479_v8 }
 0x265   :  { %4653 = vmatpush.bf16.msrb.mxu0 %v7470_v50 }
 0x267   :  { %4666 = vmatpush.bf16.msrb.mxu1 %v7478_v13 }
 0x269   :  { %v3563_v61 = vpop.f32.mrf.mxu0  ;;  %4654 = vmatpush.bf16.msrb.mxu0 %v7469_v15 }
 0x26a   :  { %v3564_v3 = vadd.f32 %v3563_v61, %v3383_v60 }
 0x26b   :  { %v3576_v11 = vpop.f32.mrf.mxu1  ;;  %4667 = vmatpush.bf16.msrb.mxu1 %v7477_v7 }
 0x26c   :  { %v3577_v53 = vadd.f32 %v3576_v11, %v3564_v3 }
 0x26e   :  { %v3606_v12 = vmax.f32 %v3577_v53, 0.0 }
 0x271   :  { %v3565_v10 = vpop.f32.mrf.mxu0 }
 0x273   :  { %v3589_v9 = vpop.f32.mrf.mxu2  ;;  %v3578_v54 = vpop.f32.mrf.mxu1 }
 0x274   :  { %v3590_v57 = vadd.f32 %v3589_v9, %v3384_v48 }
 0x275   :  { %v3602_v52 = vpop.f32.mrf.mxu3 }
 0x276   :  { %v3603_v6 = vadd.f32 %v3602_v52, %v3590_v57 }
 0x278   :  { %v3607_v14 = vmax.f32 %v3603_v6, 0.0 }
 0x27a   :  { %v3608_v16 = vpack.c.bf16 %v3607_v14, %v3606_v12 }
 0x27b   :  { %v3591_v17 = vpop.f32.mrf.mxu2 }
 0x27c   :  { %v3886_v0 = vunpack.c.l.b16 %v3608_v16  ;;  %v3887_v18 = vunpack.c.h.b16 %v3608_v16 }
 0x27d   :  { %v3604_v19 = vpop.f32.mrf.mxu3 }
 0x27e   :  { %v3888_v38 = vpack.c.b16 %v3886_v0, %v3886_v0  ;;  %v3889_v20 = vpack.c.b16 %v3887_v18, %v3887_v18 }
 0x280   :  { %4629 = vmatmul.bf16.vlgmr.msra.gmra.mxu2 %v3888_v38  ;;  %4642 = vmatmul.bf16.vlgmr.msra.gmra.mxu3 %v3889_v20 }
 0x289   :  { %v3818_v51 = vpop.f32.mrf.mxu0 }
 0x28a   :  { %v3819_v24 = vadd.f32 %v3818_v51, %v3645_v22 }
 0x28b   :  { %v3831_v23 = vpop.f32.mrf.mxu1 }
 0x28c   :  { %v3832_v59 = vadd.f32 %v3831_v23, %v3819_v24 }
 0x28e   :  { %v3861_v33 = vmax.f32 %v3832_v59, 0.0 }
 0x291   :  { %v3820_v30 = vpop.f32.mrf.mxu0 }
 0x293   :  { %v3844_v27 = vpop.f32.mrf.mxu2  ;;  %v3833_v31 = vpop.f32.mrf.mxu1 }
 0x294   :  { %v3845_v28 = vadd.f32 %v3844_v27, %v3646_v25 }
 0x295   :  { %v3857_v2 = vpop.f32.mrf.mxu3 }
 0x296   :  { %v3858_v32 = vadd.f32 %v3857_v2, %v3845_v28 }
 0x298   :  { %v3862_v34 = vmax.f32 %v3858_v32, 0.0 }
 0x29a   :  { %v3863_v35 = vpack.c.bf16 %v3862_v34, %v3861_v33 }
 0x29b   :  { %v3846_v36 = vpop.f32.mrf.mxu2 }
 0x29c   :  { %v3893_v37 = vunpack.c.l.b16 %v3863_v35  ;;  %v3894_v5 = vunpack.c.h.b16 %v3863_v35 }
 0x29d   :  { %v3859_v39 = vpop.f32.mrf.mxu3 }
 0x29e   :  { %v3895_v40 = vpack.c.b16 %v3893_v37, %v3893_v37  ;;  %v3896_v29 = vpack.c.b16 %v3894_v5, %v3894_v5 }
 0x2a0   :  { %4655 = vmatmul.bf16.vlgmr.msrb.gmra.mxu0 %v3895_v40  ;;  %4668 = vmatmul.bf16.vlgmr.msrb.gmra.mxu1 %v3896_v29 }
 0x2a9   :  { %v4552_v41 = vpop.f32.mrf.mxu0 }
 0x2aa   :  { %v4553_v42 = vadd.f32 %v7491_v26, %v4552_v41 }
 0x2ab   :  { %v4565_v62 = vpop.f32.mrf.mxu1 }
 0x2ac   :  { %v4566_v44 = vadd.f32 %v4565_v62, %v4553_v42 }
 0x2b1   :  { %v4554_v45 = vpop.f32.mrf.mxu0 }
 0x2b3   :  { %v4567_v46 = vpop.f32.mrf.mxu1 }
 0x2c3   :  { %v4578_v47 = vpop.f32.mrf.mxu2  ;;  %v4591_v49 = vpop.f32.mrf.mxu3 }
 0x2c4   :  { %v4579_v55 = vadd.f32 %v4578_v47, %v4566_v44 }
 0x2c6   :  { %v4592_v43 = vadd.f32 %v4591_v49, %v4579_v55 }
 0x2cb   :  { %v4580_v56 = vpop.f32.mrf.mxu2  ;;  %v4593_v58 = vpop.f32.mrf.mxu3 }
 0x2dd   :  { %v4604_v60 = vpop.f32.mrf.mxu0  ;;  %v4617_v61 = vpop.f32.mrf.mxu1 }
 0x2de   :  { %v4605_v8 = vadd.f32 %v4604_v60, %v4592_v43 }
 0x2e0   :  { %v4618_v9 = vadd.f32 %v4617_v61, %v4605_v8 }
 0x2e5   :  { %v4606_v11 = vpop.f32.mrf.mxu0  ;;  %v4619_v63 = vpop.f32.mrf.mxu1 }
 0x303   :  { %v4630_v1 = vpop.f32.mrf.mxu2  ;;  %v4643_v3 = vpop.f32.mrf.mxu3 }
 0x304   :  { %v4631_v53 = vadd.f32 %v4630_v1, %v4618_v9 }
 0x306   :  { %v4644_v57 = vadd.f32 %v4643_v3, %v4631_v53 }
 0x30b   :  { %v4632_v48 = vpop.f32.mrf.mxu2  ;;  %v4645_v4 = vpop.f32.mrf.mxu3 }
 0x31d   :  { %v4656_v52 = vpop.f32.mrf.mxu0  ;;  %v4669_v10 = vpop.f32.mrf.mxu1 }
 0x31e   :  { %v4657_v54 = vadd.f32 %v4656_v52, %v4644_v57 }
 0x320   :  { %v4670_v50 = vadd.f32 %v4669_v10, %v4657_v54 }
 0x322   :  { %4674 = vst.msk [vmem:[%s8419_s10] sm:$0xff] %vm4673_vm0, %v4670_v50 }
 0x325   :  { %v4658_v13 = vpop.f32.mrf.mxu0  ;;  %v4671_v6 = vpop.f32.mrf.mxu1 }
 0x326   :  { %4679 = vsyncpa [#allocation3], 1 }
 0x327   :  { %4680 = vsyncpa [#allocation5], 1 }

</bundles_post_ra>
